<compile_context>
chip_gen: v6e
topology: v6e:2x2x1
jax: 0.10.0
libtpu: 0.0.40
codegen_flags: <defaults>
</compile_context>

<pallas_src>
import numpy as np
import jax
import jax.numpy as jnp
from jax.experimental import pallas as pl
from jax.experimental.pallas import tpu as pltpu

IN_CH = 4     # n_channels
OUT_CH = 3    # n_classes
STAGE = 2
RES = 16      # H == W of the example input

CIN_PAD = 8             # pad 4 input channels to 8 so every im2col concat is sublane-aligned
PAD = 128               # lane offset of the activation inside the padded scratch row-buffer
CMAX = 32               # max channel count of any activation (the concat inside up1)
SCRATCH_SHAPE = (CMAX, RES * RES + 2 * PAD)

# (in, out, mid) per block -- mirrors DoubleConv(in, out, mid) / Down / Up / OutConv
CFG = {
    "inc":   (IN_CH, 8, 8),
    "down1": (8, 16, 16),
    "down2": (16, 16, 16),
    "up1":   (32, 8, 16),   # cat(skip 16ch, up 16ch) -> 32 -> mid 16 -> out 8
    "up2":   (16, 8, 8),    # cat(skip 8ch,  up 8ch)  -> 16 -> mid 8  -> out 8
    "out":   (8, OUT_CH),
}

_PARAM_ORDER = (
    "inc_w1", "inc_b1", "inc_w2", "inc_b2",
    "down1_w1", "down1_b1", "down1_w2", "down1_b2",
    "down2_w1", "down2_b1", "down2_w2", "down2_b2",
    "up1_w1", "up1_b1", "up1_w2", "up1_b2",
    "up2_w1", "up2_b1", "up2_w2", "up2_b2",
    "out_w", "out_b",
    "pool1", "pool2", "upmat1", "upmat2",
)


# ---------------------------------------------------------------- in-kernel helpers
def _fill_pad(pad_ref, x):
    """Write activation x (C, H*W) into the zero-padded scratch row-buffer."""
    cin, hw = x.shape
    pad_ref[...] = jnp.zeros(pad_ref.shape, jnp.float32)
    pad_ref[:cin, PAD:PAD + hw] = x


def _tap(pad_ref, cin, hw, off):
    """Flattened activation shifted by `off` lanes (zero outside the image)."""
    return pad_ref[:cin, PAD + off:PAD + off + hw]


def _conv3x3(pad_ref, x, w, b, width, relu=True):
    """3x3 conv (pad=1) + folded-BN bias (+ ReLU).  x: (Cin, H*W), w: (Cout, 9*Cin)."""
    cin, hw = x.shape
    _fill_pad(pad_ref, x)
    col = jax.lax.broadcasted_iota(jnp.int32, (1, hw), 1) % width
    lmask = (col != 0).astype(jnp.float32)          # valid when reading column j-1
    rmask = (col != width - 1).astype(jnp.float32)  # valid when reading column j+1
    taps = []
    for dy in (-1, 0, 1):
        for dx in (-1, 0, 1):
            t = _tap(pad_ref, cin, hw, dy * width + dx)
            if dx == -1:
                t = t * lmask
            elif dx == 1:
                t = t * rmask
            taps.append(t)
    patches = jnp.concatenate(taps, axis=0)          # (9*Cin, H*W), sublane-aligned pieces
    y = jnp.dot(w, patches, preferred_element_type=jnp.float32) + b
    return jnp.maximum(y, 0.0) if relu else y


def _double_conv(pad_ref, x, w1, b1, w2, b2, width):
    return _conv3x3(pad_ref, _conv3x3(pad_ref, x, w1, b1, width), w2, b2, width)


def _maxpool2x2(pad_ref, x, width, sel):
    """MaxPool2d(2): max of the 4 shifted views, then a 0/1 selection matmul."""
    cin, hw = x.shape
    _fill_pad(pad_ref, x)
    m = x
    for off in (1, width, width + 1):
        m = jnp.maximum(m, _tap(pad_ref, cin, hw, off))
    return jnp.dot(m, sel, preferred_element_type=jnp.float32)      # (C, H*W/4)


# ---------------------------------------------------------------- fused UNet kernel
def _unet_kernel(x_ref, *rest):
    pad_ref = rest[-1]                       # VMEM scratch row-buffer (CMAX, HW + 2*PAD)
    o_ref = rest[-2]
    P = dict(zip(_PARAM_ORDER, rest[:-2]))

    x = x_ref[0]                                                          # (8, 256)

    # -------- encoder
    x0 = _double_conv(pad_ref, x, P["inc_w1"][...], P["inc_b1"][...],
                      P["inc_w2"][...], P["inc_b2"][...], RES)            # (8, 256)
    p1 = _maxpool2x2(pad_ref, x0, RES, P["pool1"][...])                   # (8, 64)
    x1 = _double_conv(pad_ref, p1, P["down1_w1"][...], P["down1_b1"][...],
                      P["down1_w2"][...], P["down1_b2"][...], RES // 2)   # (16, 64)
    p2 = _maxpool2x2(pad_ref, x1, RES // 2, P["pool2"][...])              # (16, 16)
    x2 = _double_conv(pad_ref, p2, P["down2_w1"][...], P["down2_b1"][...],
                      P["down2_w2"][...], P["down2_b2"][...], RES // 4)   # (16, 16)

    # -------- decoder (bilinear 2x upsample = matmul with precomputed kron matrix)
    u1 = jnp.dot(x2, P["upmat1"][...], preferred_element_type=jnp.float32)   # (16, 64)
    c1 = jnp.concatenate([x1, u1], axis=0)                                   # (32, 64)  cat([skip, up])
    y1 = _double_conv(pad_ref, c1, P["up1_w1"][...], P["up1_b1"][...],
                      P["up1_w2"][...], P["up1_b2"][...], RES // 2)          # (8, 64)
    u2 = jnp.dot(y1, P["upmat2"][...], preferred_element_type=jnp.float32)   # (8, 256)
    c2 = jnp.concatenate([x0, u2], axis=0)                                   # (16, 256)
    y2 = _double_conv(pad_ref, c2, P["up2_w1"][...], P["up2_b1"][...],
                      P["up2_w2"][...], P["up2_b2"][...], RES)               # (8, 256)

    # -------- OutConv (1x1 conv + bias, no activation)
    logits = jnp.dot(P["out_w"][...], y2,
                     preferred_element_type=jnp.float32) + P["out_b"][...]   # (3, 256)
    o_ref[0] = logits


# ---------------------------------------------------------------- wrapper
def arbitary_unet_forward(x_nchw, kp):
    """x_nchw: (N, IN_CH, RES, RES) float32 -> logits (N, OUT_CH, RES, RES)."""
    n, c, h, w = x_nchw.shape
    assert (c, h, w) == (IN_CH, RES, RES), (c, h, w)
    hw = h * w
    x = x_nchw.reshape(n, c, hw)                                  # channels on sublanes, H*W on lanes
    x = jnp.pad(x, ((0, 0), (0, CIN_PAD - c), (0, 0)))            # zero-pad channels 4 -> 8

    flat = [kp[name] for name in _PARAM_ORDER]
    in_specs = [pl.BlockSpec((1, CIN_PAD, hw), lambda b: (b, 0, 0))]
    for p in flat:
        nd = p.ndim
        in_specs.append(pl.BlockSpec(p.shape, lambda b, _nd=nd: (0,) * _nd))

    out = pl.pallas_call(
        _unet_kernel,
        out_shape=jax.ShapeDtypeStruct((n, OUT_CH, hw), jnp.float32),
        grid=(n,),
        in_specs=in_specs,
        out_specs=pl.BlockSpec((1, OUT_CH, hw), lambda b: (b, 0, 0)),
        scratch_shapes=[pltpu.VMEM(SCRATCH_SHAPE, jnp.float32)],
        compiler_params=pltpu.CompilerParams(
            dimension_semantics=("parallel",)),      # batch axis -> both TCs on v7x
    )(x, *flat)
    return out.reshape(n, OUT_CH, h, w)


# ---------------------------------------------------------------- constant matrices
def _pool_select(h, w):
    """0/1 matrix (H*W, H*W/4) gathering the top-left corner of each 2x2 window."""
    h2, w2 = h // 2, w // 2
    s = np.zeros((h * w, h2 * w2), np.float32)
    for r in range(h2):
        for c in range(w2):
            s[(2 * r) * w + 2 * c, r * w2 + c] = 1.0
    return s


def _bilinear_1d(n_in, n_out):
    """1-D bilinear interpolation matrix, scale 2, align_corners=True."""
    if n_in == 1:
        return np.ones((n_out, 1), np.float32)
    a = np.zeros((n_out, n_in), np.float32)
    for o in range(n_out):
        src = o * (n_in - 1) / (n_out - 1)
        i0 = min(int(np.floor(src)), n_in - 2)
        f = src - i0
        a[o, i0] += 1.0 - f
        a[o, i0 + 1] += f
    return a


def _up_matrix(h, w):
    """(H*W, 4*H*W) separable bilinear 2x upsample on the flattened spatial axis."""
    ah = _bilinear_1d(h, 2 * h)
    aw = _bilinear_1d(w, 2 * w)
    return np.kron(ah.T, aw.T).astype(np.float32)


# ---------------------------------------------------------------- parameter prep
def _fold_conv(cp, pad_cin_to=None, eps=1e-5):
    """Fold inference BatchNorm into a 3x3 conv: (Cout, 9*Cin) weight + (Cout, 1) bias."""
    w = cp["w"]                                               # (Cout, Cin, 3, 3) torch layout
    scale = cp["gamma"] / jnp.sqrt(cp["var"] + eps)
    bias = cp["beta"] - cp["mean"] * scale
    w = w * scale[:, None, None, None]
    if pad_cin_to is not None and pad_cin_to > w.shape[1]:
        w = jnp.pad(w, ((0, 0), (0, pad_cin_to - w.shape[1]), (0, 0), (0, 0)))
    cout = w.shape[0]
    wf = jnp.transpose(w, (0, 2, 3, 1)).reshape(cout, -1)     # tap-major: (ky, kx, Cin)
    return wf.astype(jnp.float32), bias.reshape(cout, 1).astype(jnp.float32)


def prepare_params(raw):
    kp = {}
    for blk in ("inc", "down1", "down2", "up1", "up2"):
        pad_to = CIN_PAD if blk == "inc" else None
        kp[f"{blk}_w1"], kp[f"{blk}_b1"] = _fold_conv(raw[blk]["c1"], pad_cin_to=pad_to)
        kp[f"{blk}_w2"], kp[f"{blk}_b2"] = _fold_conv(raw[blk]["c2"])
    kp["out_w"] = raw["out"]["w"].astype(jnp.float32)                     # (OUT_CH, 8)
    kp["out_b"] = raw["out"]["b"].reshape(-1, 1).astype(jnp.float32)      # (OUT_CH, 1)
    kp["pool1"] = jnp.asarray(_pool_select(RES, RES))                     # (256, 64)
    kp["pool2"] = jnp.asarray(_pool_select(RES // 2, RES // 2))           # (64, 16)
    kp["upmat1"] = jnp.asarray(_up_matrix(RES // 4, RES // 4))            # (16, 64)
    kp["upmat2"] = jnp.asarray(_up_matrix(RES // 2, RES // 2))            # (64, 256)
    return kp


def _init_conv_bn(key, cin, cout):
    kw, kg, kb, km, kv = jax.random.split(key, 5)
    return dict(
        w=jax.random.normal(kw, (cout, cin, 3, 3), jnp.float32) / np.sqrt(9 * cin),
        gamma=1.0 + 0.1 * jax.random.normal(kg, (cout,), jnp.float32),
        beta=0.1 * jax.random.normal(kb, (cout,), jnp.float32),
        mean=0.1 * jax.random.normal(km, (cout,), jnp.float32),
        var=1.0 + 0.5 * jax.random.uniform(kv, (cout,), jnp.float32),
    )


def init_params(key):
    params = {}
    keys = jax.random.split(key, len(CFG))
    for k, (name, cfg) in zip(keys, CFG.items()):
        if name == "out":
            cin, cout = cfg
            kw, kb = jax.random.split(k)
            params[name] = dict(
                w=jax.random.normal(kw, (cout, cin), jnp.float32) / np.sqrt(cin),
                b=0.1 * jax.random.normal(kb, (cout,), jnp.float32))
        else:
            cin, cout, cmid = cfg
            k1, k2 = jax.random.split(k)
            params[name] = dict(c1=_init_conv_bn(k1, cin, cmid),
                                c2=_init_conv_bn(k2, cmid, cout))
    return params


# ---------------------------------------------------------------- main
if __name__ == "__main__":
    x = jax.random.normal(jax.random.PRNGKey(0), (2, IN_CH, RES, RES), jnp.float32)
    kparams = prepare_params(init_params(jax.random.PRNGKey(1234)))

    fwd = jax.jit(arbitary_unet_forward)
    logits = jax.block_until_ready(fwd(x, kparams))

    assert logits.shape == (2, OUT_CH, RES, RES), logits.shape
    assert bool(jnp.all(jnp.isfinite(logits)))
    print("KERNEL_OK")
</pallas_src>

<mosaic_0001>
module attributes {stable_mosaic.version = 11 : i64} {
  func.func @_unet_kernel(%arg0: i32, %arg1: memref<1x8x256xf32, #tpu.memory_space<vmem>>, %arg2: memref<8x72xf32, #tpu.memory_space<vmem>>, %arg3: memref<8x1xf32, #tpu.memory_space<vmem>>, %arg4: memref<8x72xf32, #tpu.memory_space<vmem>>, %arg5: memref<8x1xf32, #tpu.memory_space<vmem>>, %arg6: memref<16x72xf32, #tpu.memory_space<vmem>>, %arg7: memref<16x1xf32, #tpu.memory_space<vmem>>, %arg8: memref<16x144xf32, #tpu.memory_space<vmem>>, %arg9: memref<16x1xf32, #tpu.memory_space<vmem>>, %arg10: memref<16x144xf32, #tpu.memory_space<vmem>>, %arg11: memref<16x1xf32, #tpu.memory_space<vmem>>, %arg12: memref<16x144xf32, #tpu.memory_space<vmem>>, %arg13: memref<16x1xf32, #tpu.memory_space<vmem>>, %arg14: memref<16x288xf32, #tpu.memory_space<vmem>>, %arg15: memref<16x1xf32, #tpu.memory_space<vmem>>, %arg16: memref<8x144xf32, #tpu.memory_space<vmem>>, %arg17: memref<8x1xf32, #tpu.memory_space<vmem>>, %arg18: memref<8x144xf32, #tpu.memory_space<vmem>>, %arg19: memref<8x1xf32, #tpu.memory_space<vmem>>, %arg20: memref<8x72xf32, #tpu.memory_space<vmem>>, %arg21: memref<8x1xf32, #tpu.memory_space<vmem>>, %arg22: memref<3x8xf32, #tpu.memory_space<vmem>>, %arg23: memref<3x1xf32, #tpu.memory_space<vmem>>, %arg24: memref<256x64xf32, #tpu.memory_space<vmem>>, %arg25: memref<64x16xf32, #tpu.memory_space<vmem>>, %arg26: memref<16x64xf32, #tpu.memory_space<vmem>>, %arg27: memref<64x256xf32, #tpu.memory_space<vmem>>, %arg28: memref<1x3x256xf32, #tpu.memory_space<vmem>>, %arg29: memref<32x512xf32, #tpu.memory_space<vmem>>) attributes {dimension_semantics = [#tpu.dimension_semantics<parallel>], iteration_bounds = array<i64: 2>, scalar_prefetch = 0 : i64, scratch_operands = 1 : i64, tpu.core_type = #tpu.core_type<tc>, window_params = [{transform_indices = @transform_0, window_bounds = array<i64: 1, 8, 256>}, {pipeline_mode = #tpu.pipeline_mode<synchronous>, transform_indices = @transform_1, window_bounds = array<i64: 8, 72>}, {pipeline_mode = #tpu.pipeline_mode<synchronous>, transform_indices = @transform_2, window_bounds = array<i64: 8, 1>}, {pipeline_mode = #tpu.pipeline_mode<synchronous>, transform_indices = @transform_3, window_bounds = array<i64: 8, 72>}, {pipeline_mode = #tpu.pipeline_mode<synchronous>, transform_indices = @transform_4, window_bounds = array<i64: 8, 1>}, {pipeline_mode = #tpu.pipeline_mode<synchronous>, transform_indices = @transform_5, window_bounds = array<i64: 16, 72>}, {pipeline_mode = #tpu.pipeline_mode<synchronous>, transform_indices = @transform_6, window_bounds = array<i64: 16, 1>}, {pipeline_mode = #tpu.pipeline_mode<synchronous>, transform_indices = @transform_7, window_bounds = array<i64: 16, 144>}, {pipeline_mode = #tpu.pipeline_mode<synchronous>, transform_indices = @transform_8, window_bounds = array<i64: 16, 1>}, {pipeline_mode = #tpu.pipeline_mode<synchronous>, transform_indices = @transform_9, window_bounds = array<i64: 16, 144>}, {pipeline_mode = #tpu.pipeline_mode<synchronous>, transform_indices = @transform_10, window_bounds = array<i64: 16, 1>}, {pipeline_mode = #tpu.pipeline_mode<synchronous>, transform_indices = @transform_11, window_bounds = array<i64: 16, 144>}, {pipeline_mode = #tpu.pipeline_mode<synchronous>, transform_indices = @transform_12, window_bounds = array<i64: 16, 1>}, {pipeline_mode = #tpu.pipeline_mode<synchronous>, transform_indices = @transform_13, window_bounds = array<i64: 16, 288>}, {pipeline_mode = #tpu.pipeline_mode<synchronous>, transform_indices = @transform_14, window_bounds = array<i64: 16, 1>}, {pipeline_mode = #tpu.pipeline_mode<synchronous>, transform_indices = @transform_15, window_bounds = array<i64: 8, 144>}, {pipeline_mode = #tpu.pipeline_mode<synchronous>, transform_indices = @transform_16, window_bounds = array<i64: 8, 1>}, {pipeline_mode = #tpu.pipeline_mode<synchronous>, transform_indices = @transform_17, window_bounds = array<i64: 8, 144>}, {pipeline_mode = #tpu.pipeline_mode<synchronous>, transform_indices = @transform_18, window_bounds = array<i64: 8, 1>}, {pipeline_mode = #tpu.pipeline_mode<synchronous>, transform_indices = @transform_19, window_bounds = array<i64: 8, 72>}, {pipeline_mode = #tpu.pipeline_mode<synchronous>, transform_indices = @transform_20, window_bounds = array<i64: 8, 1>}, {pipeline_mode = #tpu.pipeline_mode<synchronous>, transform_indices = @transform_21, window_bounds = array<i64: 3, 8>}, {pipeline_mode = #tpu.pipeline_mode<synchronous>, transform_indices = @transform_22, window_bounds = array<i64: 3, 1>}, {pipeline_mode = #tpu.pipeline_mode<synchronous>, transform_indices = @transform_23, window_bounds = array<i64: 256, 64>}, {pipeline_mode = #tpu.pipeline_mode<synchronous>, transform_indices = @transform_24, window_bounds = array<i64: 64, 16>}, {pipeline_mode = #tpu.pipeline_mode<synchronous>, transform_indices = @transform_25, window_bounds = array<i64: 16, 64>}, {pipeline_mode = #tpu.pipeline_mode<synchronous>, transform_indices = @transform_26, window_bounds = array<i64: 64, 256>}, {transform_indices = @transform_27, window_bounds = array<i64: 1, 3, 256>}]} {
    %c0 = arith.constant 0 : index
    %c0_0 = arith.constant 0 : index
    %c0_1 = arith.constant 0 : index
    %0 = vector.load %arg1[%c0, %c0_0, %c0_1] : memref<1x8x256xf32, #tpu.memory_space<vmem>>, vector<1x8x256xf32>
    %1 = vector.shape_cast %0 : vector<1x8x256xf32> to vector<8x256xf32>
    %c0_2 = arith.constant 0 : index
    %c0_3 = arith.constant 0 : index
    %2 = vector.load %arg2[%c0_2, %c0_3] : memref<8x72xf32, #tpu.memory_space<vmem>>, vector<8x72xf32>
    %c0_4 = arith.constant 0 : index
    %c0_5 = arith.constant 0 : index
    %3 = vector.load %arg3[%c0_4, %c0_5] : memref<8x1xf32, #tpu.memory_space<vmem>>, vector<8x1xf32>
    %c0_6 = arith.constant 0 : index
    %c0_7 = arith.constant 0 : index
    %4 = vector.load %arg4[%c0_6, %c0_7] : memref<8x72xf32, #tpu.memory_space<vmem>>, vector<8x72xf32>
    %c0_8 = arith.constant 0 : index
    %c0_9 = arith.constant 0 : index
    %5 = vector.load %arg5[%c0_8, %c0_9] : memref<8x1xf32, #tpu.memory_space<vmem>>, vector<8x1xf32>
    %cst = arith.constant 0.000000e+00 : f32
    %6 = vector.broadcast %cst : f32 to vector<32x512xf32>
    %c0_10 = arith.constant 0 : index
    %c0_11 = arith.constant 0 : index
    %7 = vector.load %arg29[%c0_10, %c0_11] : memref<32x512xf32, #tpu.memory_space<vmem>>, vector<32x512xf32>
    tpu.vector_store %arg29[%c0_10, %c0_11], %6 {strides = array<i32>} : memref<32x512xf32, #tpu.memory_space<vmem>>, vector<32x512xf32>,
    %c0_12 = arith.constant 0 : index
    %c128 = arith.constant 128 : index
    %8 = vector.load %arg29[%c0_12, %c128] : memref<32x512xf32, #tpu.memory_space<vmem>>, vector<8x256xf32>
    tpu.vector_store %arg29[%c0_12, %c128], %1 {strides = array<i32>} : memref<32x512xf32, #tpu.memory_space<vmem>>, vector<8x256xf32>,
    %9 = tpu.iota {dimensions = array<i32: 1>} : vector<1x256xi32>
    %c16_i32 = arith.constant 16 : i32
    %c0_i32 = arith.constant 0 : i32
    %10 = arith.cmpi eq, %c16_i32, %c0_i32 : i32
    %c1_i32 = arith.constant 1 : i32
    %11 = arith.select %10, %c1_i32, %c16_i32 : i32
    %12 = vector.broadcast %11 : i32 to vector<1x256xi32>
    %13 = arith.remsi %9, %12 : vector<1x256xi32>
    %c0_i32_13 = arith.constant 0 : i32
    %14 = vector.broadcast %c0_i32_13 : i32 to vector<1x256xi32>
    %15 = arith.cmpi ne, %13, %14 : vector<1x256xi32>
    %c0_i32_14 = arith.constant 0 : i32
    %16 = vector.broadcast %c0_i32_14 : i32 to vector<1x256xi32>
    %17 = arith.cmpi slt, %13, %16 : vector<1x256xi32>
    %c0_i32_15 = arith.constant 0 : i32
    %18 = arith.cmpi slt, %11, %c0_i32_15 : i32
    %19 = vector.broadcast %18 : i1 to vector<1x256xi1>
    %20 = vector.broadcast %19 : vector<1x256xi1> to vector<1x256xi1>
    %21 = arith.xori %17, %20 : vector<1x256xi1>
    %22 = arith.andi %21, %15 : vector<1x256xi1>
    %23 = vector.broadcast %11 : i32 to vector<1x256xi32>
    %24 = arith.addi %13, %23 : vector<1x256xi32>
    %25 = arith.select %22, %24, %13 : vector<1x256xi1>, vector<1x256xi32>
    %c0_i32_16 = arith.constant 0 : i32
    %26 = vector.broadcast %c0_i32_16 : i32 to vector<1x256xi32>
    %27 = arith.cmpi ne, %25, %26 : vector<1x256xi32>
    %28 = arith.extui %27 : vector<1x256xi1> to vector<1x256xi32>
    %29 = arith.sitofp %28 : vector<1x256xi32> to vector<1x256xf32>
    %c15_i32 = arith.constant 15 : i32
    %30 = vector.broadcast %c15_i32 : i32 to vector<1x256xi32>
    %31 = arith.cmpi ne, %25, %30 : vector<1x256xi32>
    %32 = arith.extui %31 : vector<1x256xi1> to vector<1x256xi32>
    %33 = arith.sitofp %32 : vector<1x256xi32> to vector<1x256xf32>
    %c0_17 = arith.constant 0 : index
    %c111 = arith.constant 111 : index
    %34 = vector.load %arg29[%c0_17, %c111] : memref<32x512xf32, #tpu.memory_space<vmem>>, vector<8x256xf32>
    %35 = vector.broadcast %29 : vector<1x256xf32> to vector<8x256xf32>
    %36 = arith.mulf %34, %35 : vector<8x256xf32>
    %c0_18 = arith.constant 0 : index
    %c112 = arith.constant 112 : index
    %37 = vector.load %arg29[%c0_18, %c112] : memref<32x512xf32, #tpu.memory_space<vmem>>, vector<8x256xf32>
    %c0_19 = arith.constant 0 : index
    %c113 = arith.constant 113 : index
    %38 = vector.load %arg29[%c0_19, %c113] : memref<32x512xf32, #tpu.memory_space<vmem>>, vector<8x256xf32>
    %39 = vector.broadcast %33 : vector<1x256xf32> to vector<8x256xf32>
    %40 = arith.mulf %38, %39 : vector<8x256xf32>
    %c0_20 = arith.constant 0 : index
    %c127 = arith.constant 127 : index
    %41 = vector.load %arg29[%c0_20, %c127] : memref<32x512xf32, #tpu.memory_space<vmem>>, vector<8x256xf32>
    %42 = vector.broadcast %29 : vector<1x256xf32> to vector<8x256xf32>
    %43 = arith.mulf %41, %42 : vector<8x256xf32>
    %c0_21 = arith.constant 0 : index
    %c128_22 = arith.constant 128 : index
    %44 = vector.load %arg29[%c0_21, %c128_22] : memref<32x512xf32, #tpu.memory_space<vmem>>, vector<8x256xf32>
    %c0_23 = arith.constant 0 : index
    %c129 = arith.constant 129 : index
    %45 = vector.load %arg29[%c0_23, %c129] : memref<32x512xf32, #tpu.memory_space<vmem>>, vector<8x256xf32>
    %46 = vector.broadcast %33 : vector<1x256xf32> to vector<8x256xf32>
    %47 = arith.mulf %45, %46 : vector<8x256xf32>
    %c0_24 = arith.constant 0 : index
    %c143 = arith.constant 143 : index
    %48 = vector.load %arg29[%c0_24, %c143] : memref<32x512xf32, #tpu.memory_space<vmem>>, vector<8x256xf32>
    %49 = vector.broadcast %29 : vector<1x256xf32> to vector<8x256xf32>
    %50 = arith.mulf %48, %49 : vector<8x256xf32>
    %c0_25 = arith.constant 0 : index
    %c144 = arith.constant 144 : index
    %51 = vector.load %arg29[%c0_25, %c144] : memref<32x512xf32, #tpu.memory_space<vmem>>, vector<8x256xf32>
    %c0_26 = arith.constant 0 : index
    %c145 = arith.constant 145 : index
    %52 = vector.load %arg29[%c0_26, %c145] : memref<32x512xf32, #tpu.memory_space<vmem>>, vector<8x256xf32>
    %53 = vector.broadcast %33 : vector<1x256xf32> to vector<8x256xf32>
    %54 = arith.mulf %52, %53 : vector<8x256xf32>
    %55 = tpu.concatenate %36, %37, %40, %43, %44, %47, %50, %51, %54 in 0 : vector<8x256xf32>, vector<8x256xf32>, vector<8x256xf32>, vector<8x256xf32>, vector<8x256xf32>, vector<8x256xf32>, vector<8x256xf32>, vector<8x256xf32>, vector<8x256xf32> -> vector<72x256xf32>
    %cst_27 = arith.constant dense<0.000000e+00> : vector<8x256xf32>
    %56 = tpu.matmul %2, %55, %cst_27 {dimension_numbers = #tpu.dot_dimension_numbers<[1], [0], [0], [1], [0, 0, 1, 1], [], []>} : vector<8x72xf32>, vector<72x256xf32>, vector<8x256xf32> -> vector<8x256xf32>
    %57 = vector.broadcast %3 : vector<8x1xf32> to vector<8x256xf32>
    %58 = arith.addf %56, %57 : vector<8x256xf32>
    %cst_28 = arith.constant 0.000000e+00 : f32
    %59 = vector.broadcast %cst_28 : f32 to vector<8x256xf32>
    %60 = arith.maximumf %58, %59 : vector<8x256xf32>
    %cst_29 = arith.constant 0.000000e+00 : f32
    %61 = vector.broadcast %cst_29 : f32 to vector<32x512xf32>
    %c0_30 = arith.constant 0 : index
    %c0_31 = arith.constant 0 : index
    %62 = vector.load %arg29[%c0_30, %c0_31] : memref<32x512xf32, #tpu.memory_space<vmem>>, vector<32x512xf32>
    tpu.vector_store %arg29[%c0_30, %c0_31], %61 {strides = array<i32>} : memref<32x512xf32, #tpu.memory_space<vmem>>, vector<32x512xf32>,
    %c0_32 = arith.constant 0 : index
    %c128_33 = arith.constant 128 : index
    %63 = vector.load %arg29[%c0_32, %c128_33] : memref<32x512xf32, #tpu.memory_space<vmem>>, vector<8x256xf32>
    tpu.vector_store %arg29[%c0_32, %c128_33], %60 {strides = array<i32>} : memref<32x512xf32, #tpu.memory_space<vmem>>, vector<8x256xf32>,
    %64 = tpu.iota {dimensions = array<i32: 1>} : vector<1x256xi32>
    %c16_i32_34 = arith.constant 16 : i32
    %c0_i32_35 = arith.constant 0 : i32
    %65 = arith.cmpi eq, %c16_i32_34, %c0_i32_35 : i32
    %c1_i32_36 = arith.constant 1 : i32
    %66 = arith.select %65, %c1_i32_36, %c16_i32_34 : i32
    %67 = vector.broadcast %66 : i32 to vector<1x256xi32>
    %68 = arith.remsi %64, %67 : vector<1x256xi32>
    %c0_i32_37 = arith.constant 0 : i32
    %69 = vector.broadcast %c0_i32_37 : i32 to vector<1x256xi32>
    %70 = arith.cmpi ne, %68, %69 : vector<1x256xi32>
    %c0_i32_38 = arith.constant 0 : i32
    %71 = vector.broadcast %c0_i32_38 : i32 to vector<1x256xi32>
    %72 = arith.cmpi slt, %68, %71 : vector<1x256xi32>
    %c0_i32_39 = arith.constant 0 : i32
    %73 = arith.cmpi slt, %66, %c0_i32_39 : i32
    %74 = vector.broadcast %73 : i1 to vector<1x256xi1>
    %75 = vector.broadcast %74 : vector<1x256xi1> to vector<1x256xi1>
    %76 = arith.xori %72, %75 : vector<1x256xi1>
    %77 = arith.andi %76, %70 : vector<1x256xi1>
    %78 = vector.broadcast %66 : i32 to vector<1x256xi32>
    %79 = arith.addi %68, %78 : vector<1x256xi32>
    %80 = arith.select %77, %79, %68 : vector<1x256xi1>, vector<1x256xi32>
    %c0_i32_40 = arith.constant 0 : i32
    %81 = vector.broadcast %c0_i32_40 : i32 to vector<1x256xi32>
    %82 = arith.cmpi ne, %80, %81 : vector<1x256xi32>
    %83 = arith.extui %82 : vector<1x256xi1> to vector<1x256xi32>
    %84 = arith.sitofp %83 : vector<1x256xi32> to vector<1x256xf32>
    %c15_i32_41 = arith.constant 15 : i32
    %85 = vector.broadcast %c15_i32_41 : i32 to vector<1x256xi32>
    %86 = arith.cmpi ne, %80, %85 : vector<1x256xi32>
    %87 = arith.extui %86 : vector<1x256xi1> to vector<1x256xi32>
    %88 = arith.sitofp %87 : vector<1x256xi32> to vector<1x256xf32>
    %c0_42 = arith.constant 0 : index
    %c111_43 = arith.constant 111 : index
    %89 = vector.load %arg29[%c0_42, %c111_43] : memref<32x512xf32, #tpu.memory_space<vmem>>, vector<8x256xf32>
    %90 = vector.broadcast %84 : vector<1x256xf32> to vector<8x256xf32>
    %91 = arith.mulf %89, %90 : vector<8x256xf32>
    %c0_44 = arith.constant 0 : index
    %c112_45 = arith.constant 112 : index
    %92 = vector.load %arg29[%c0_44, %c112_45] : memref<32x512xf32, #tpu.memory_space<vmem>>, vector<8x256xf32>
    %c0_46 = arith.constant 0 : index
    %c113_47 = arith.constant 113 : index
    %93 = vector.load %arg29[%c0_46, %c113_47] : memref<32x512xf32, #tpu.memory_space<vmem>>, vector<8x256xf32>
    %94 = vector.broadcast %88 : vector<1x256xf32> to vector<8x256xf32>
    %95 = arith.mulf %93, %94 : vector<8x256xf32>
    %c0_48 = arith.constant 0 : index
    %c127_49 = arith.constant 127 : index
    %96 = vector.load %arg29[%c0_48, %c127_49] : memref<32x512xf32, #tpu.memory_space<vmem>>, vector<8x256xf32>
    %97 = vector.broadcast %84 : vector<1x256xf32> to vector<8x256xf32>
    %98 = arith.mulf %96, %97 : vector<8x256xf32>
    %c0_50 = arith.constant 0 : index
    %c128_51 = arith.constant 128 : index
    %99 = vector.load %arg29[%c0_50, %c128_51] : memref<32x512xf32, #tpu.memory_space<vmem>>, vector<8x256xf32>
    %c0_52 = arith.constant 0 : index
    %c129_53 = arith.constant 129 : index
    %100 = vector.load %arg29[%c0_52, %c129_53] : memref<32x512xf32, #tpu.memory_space<vmem>>, vector<8x256xf32>
    %101 = vector.broadcast %88 : vector<1x256xf32> to vector<8x256xf32>
    %102 = arith.mulf %100, %101 : vector<8x256xf32>
    %c0_54 = arith.constant 0 : index
    %c143_55 = arith.constant 143 : index
    %103 = vector.load %arg29[%c0_54, %c143_55] : memref<32x512xf32, #tpu.memory_space<vmem>>, vector<8x256xf32>
    %104 = vector.broadcast %84 : vector<1x256xf32> to vector<8x256xf32>
    %105 = arith.mulf %103, %104 : vector<8x256xf32>
    %c0_56 = arith.constant 0 : index
    %c144_57 = arith.constant 144 : index
    %106 = vector.load %arg29[%c0_56, %c144_57] : memref<32x512xf32, #tpu.memory_space<vmem>>, vector<8x256xf32>
    %c0_58 = arith.constant 0 : index
    %c145_59 = arith.constant 145 : index
    %107 = vector.load %arg29[%c0_58, %c145_59] : memref<32x512xf32, #tpu.memory_space<vmem>>, vector<8x256xf32>
    %108 = vector.broadcast %88 : vector<1x256xf32> to vector<8x256xf32>
    %109 = arith.mulf %107, %108 : vector<8x256xf32>
    %110 = tpu.concatenate %91, %92, %95, %98, %99, %102, %105, %106, %109 in 0 : vector<8x256xf32>, vector<8x256xf32>, vector<8x256xf32>, vector<8x256xf32>, vector<8x256xf32>, vector<8x256xf32>, vector<8x256xf32>, vector<8x256xf32>, vector<8x256xf32> -> vector<72x256xf32>
    %cst_60 = arith.constant dense<0.000000e+00> : vector<8x256xf32>
    %111 = tpu.matmul %4, %110, %cst_60 {dimension_numbers = #tpu.dot_dimension_numbers<[1], [0], [0], [1], [0, 0, 1, 1], [], []>} : vector<8x72xf32>, vector<72x256xf32>, vector<8x256xf32> -> vector<8x256xf32>
    %112 = vector.broadcast %5 : vector<8x1xf32> to vector<8x256xf32>
    %113 = arith.addf %111, %112 : vector<8x256xf32>
    %cst_61 = arith.constant 0.000000e+00 : f32
    %114 = vector.broadcast %cst_61 : f32 to vector<8x256xf32>
    %115 = arith.maximumf %113, %114 : vector<8x256xf32>
    %c0_62 = arith.constant 0 : index
    %c0_63 = arith.constant 0 : index
    %116 = vector.load %arg24[%c0_62, %c0_63] : memref<256x64xf32, #tpu.memory_space<vmem>>, vector<256x64xf32>
    %cst_64 = arith.constant 0.000000e+00 : f32
    %117 = vector.broadcast %cst_64 : f32 to vector<32x512xf32>
    %c0_65 = arith.constant 0 : index
    %c0_66 = arith.constant 0 : index
    %118 = vector.load %arg29[%c0_65, %c0_66] : memref<32x512xf32, #tpu.memory_space<vmem>>, vector<32x512xf32>
    tpu.vector_store %arg29[%c0_65, %c0_66], %117 {strides = array<i32>} : memref<32x512xf32, #tpu.memory_space<vmem>>, vector<32x512xf32>,
    %c0_67 = arith.constant 0 : index
    %c128_68 = arith.constant 128 : index
    %119 = vector.load %arg29[%c0_67, %c128_68] : memref<32x512xf32, #tpu.memory_space<vmem>>, vector<8x256xf32>
    tpu.vector_store %arg29[%c0_67, %c128_68], %115 {strides = array<i32>} : memref<32x512xf32, #tpu.memory_space<vmem>>, vector<8x256xf32>,
    %c0_69 = arith.constant 0 : index
    %c129_70 = arith.constant 129 : index
    %120 = vector.load %arg29[%c0_69, %c129_70] : memref<32x512xf32, #tpu.memory_space<vmem>>, vector<8x256xf32>
    %121 = arith.maximumf %115, %120 : vector<8x256xf32>
    %c0_71 = arith.constant 0 : index
    %c144_72 = arith.constant 144 : index
    %122 = vector.load %arg29[%c0_71, %c144_72] : memref<32x512xf32, #tpu.memory_space<vmem>>, vector<8x256xf32>
    %123 = arith.maximumf %121, %122 : vector<8x256xf32>
    %c0_73 = arith.constant 0 : index
    %c145_74 = arith.constant 145 : index
    %124 = vector.load %arg29[%c0_73, %c145_74] : memref<32x512xf32, #tpu.memory_space<vmem>>, vector<8x256xf32>
    %125 = arith.maximumf %123, %124 : vector<8x256xf32>
    %cst_75 = arith.constant dense<0.000000e+00> : vector<8x64xf32>
    %126 = tpu.matmul %125, %116, %cst_75 {dimension_numbers = #tpu.dot_dimension_numbers<[1], [0], [0], [1], [0, 0, 1, 1], [], []>} : vector<8x256xf32>, vector<256x64xf32>, vector<8x64xf32> -> vector<8x64xf32>
    %c0_76 = arith.constant 0 : index
    %c0_77 = arith.constant 0 : index
    %127 = vector.load %arg6[%c0_76, %c0_77] : memref<16x72xf32, #tpu.memory_space<vmem>>, vector<16x72xf32>
    %c0_78 = arith.constant 0 : index
    %c0_79 = arith.constant 0 : index
    %128 = vector.load %arg7[%c0_78, %c0_79] : memref<16x1xf32, #tpu.memory_space<vmem>>, vector<16x1xf32>
    %c0_80 = arith.constant 0 : index
    %c0_81 = arith.constant 0 : index
    %129 = vector.load %arg8[%c0_80, %c0_81] : memref<16x144xf32, #tpu.memory_space<vmem>>, vector<16x144xf32>
    %c0_82 = arith.constant 0 : index
    %c0_83 = arith.constant 0 : index
    %130 = vector.load %arg9[%c0_82, %c0_83] : memref<16x1xf32, #tpu.memory_space<vmem>>, vector<16x1xf32>
    %cst_84 = arith.constant 0.000000e+00 : f32
    %131 = vector.broadcast %cst_84 : f32 to vector<32x512xf32>
    %c0_85 = arith.constant 0 : index
    %c0_86 = arith.constant 0 : index
    %132 = vector.load %arg29[%c0_85, %c0_86] : memref<32x512xf32, #tpu.memory_space<vmem>>, vector<32x512xf32>
    tpu.vector_store %arg29[%c0_85, %c0_86], %131 {strides = array<i32>} : memref<32x512xf32, #tpu.memory_space<vmem>>, vector<32x512xf32>,
    %c0_87 = arith.constant 0 : index
    %c128_88 = arith.constant 128 : index
    %133 = vector.load %arg29[%c0_87, %c128_88] : memref<32x512xf32, #tpu.memory_space<vmem>>, vector<8x64xf32>
    tpu.vector_store %arg29[%c0_87, %c128_88], %126 {strides = array<i32>} : memref<32x512xf32, #tpu.memory_space<vmem>>, vector<8x64xf32>,
    %134 = tpu.iota {dimensions = array<i32: 1>} : vector<1x64xi32>
    %c8_i32 = arith.constant 8 : i32
    %c0_i32_89 = arith.constant 0 : i32
    %135 = arith.cmpi eq, %c8_i32, %c0_i32_89 : i32
    %c1_i32_90 = arith.constant 1 : i32
    %136 = arith.select %135, %c1_i32_90, %c8_i32 : i32
    %137 = vector.broadcast %136 : i32 to vector<1x64xi32>
    %138 = arith.remsi %134, %137 : vector<1x64xi32>
    %c0_i32_91 = arith.constant 0 : i32
    %139 = vector.broadcast %c0_i32_91 : i32 to vector<1x64xi32>
    %140 = arith.cmpi ne, %138, %139 : vector<1x64xi32>
    %c0_i32_92 = arith.constant 0 : i32
    %141 = vector.broadcast %c0_i32_92 : i32 to vector<1x64xi32>
    %142 = arith.cmpi slt, %138, %141 : vector<1x64xi32>
    %c0_i32_93 = arith.constant 0 : i32
    %143 = arith.cmpi slt, %136, %c0_i32_93 : i32
    %144 = vector.broadcast %143 : i1 to vector<1x64xi1>
    %145 = vector.broadcast %144 : vector<1x64xi1> to vector<1x64xi1>
    %146 = arith.xori %142, %145 : vector<1x64xi1>
    %147 = arith.andi %146, %140 : vector<1x64xi1>
    %148 = vector.broadcast %136 : i32 to vector<1x64xi32>
    %149 = arith.addi %138, %148 : vector<1x64xi32>
    %150 = arith.select %147, %149, %138 : vector<1x64xi1>, vector<1x64xi32>
    %c0_i32_94 = arith.constant 0 : i32
    %151 = vector.broadcast %c0_i32_94 : i32 to vector<1x64xi32>
    %152 = arith.cmpi ne, %150, %151 : vector<1x64xi32>
    %153 = arith.extui %152 : vector<1x64xi1> to vector<1x64xi32>
    %154 = arith.sitofp %153 : vector<1x64xi32> to vector<1x64xf32>
    %c7_i32 = arith.constant 7 : i32
    %155 = vector.broadcast %c7_i32 : i32 to vector<1x64xi32>
    %156 = arith.cmpi ne, %150, %155 : vector<1x64xi32>
    %157 = arith.extui %156 : vector<1x64xi1> to vector<1x64xi32>
    %158 = arith.sitofp %157 : vector<1x64xi32> to vector<1x64xf32>
    %c0_95 = arith.constant 0 : index
    %c119 = arith.constant 119 : index
    %159 = vector.load %arg29[%c0_95, %c119] : memref<32x512xf32, #tpu.memory_space<vmem>>, vector<8x64xf32>
    %160 = vector.broadcast %154 : vector<1x64xf32> to vector<8x64xf32>
    %161 = arith.mulf %159, %160 : vector<8x64xf32>
    %c0_96 = arith.constant 0 : index
    %c120 = arith.constant 120 : index
    %162 = vector.load %arg29[%c0_96, %c120] : memref<32x512xf32, #tpu.memory_space<vmem>>, vector<8x64xf32>
    %c0_97 = arith.constant 0 : index
    %c121 = arith.constant 121 : index
    %163 = vector.load %arg29[%c0_97, %c121] : memref<32x512xf32, #tpu.memory_space<vmem>>, vector<8x64xf32>
    %164 = vector.broadcast %158 : vector<1x64xf32> to vector<8x64xf32>
    %165 = arith.mulf %163, %164 : vector<8x64xf32>
    %c0_98 = arith.constant 0 : index
    %c127_99 = arith.constant 127 : index
    %166 = vector.load %arg29[%c0_98, %c127_99] : memref<32x512xf32, #tpu.memory_space<vmem>>, vector<8x64xf32>
    %167 = vector.broadcast %154 : vector<1x64xf32> to vector<8x64xf32>
    %168 = arith.mulf %166, %167 : vector<8x64xf32>
    %c0_100 = arith.constant 0 : index
    %c128_101 = arith.constant 128 : index
    %169 = vector.load %arg29[%c0_100, %c128_101] : memref<32x512xf32, #tpu.memory_space<vmem>>, vector<8x64xf32>
    %c0_102 = arith.constant 0 : index
    %c129_103 = arith.constant 129 : index
    %170 = vector.load %arg29[%c0_102, %c129_103] : memref<32x512xf32, #tpu.memory_space<vmem>>, vector<8x64xf32>
    %171 = vector.broadcast %158 : vector<1x64xf32> to vector<8x64xf32>
    %172 = arith.mulf %170, %171 : vector<8x64xf32>
    %c0_104 = arith.constant 0 : index
    %c135 = arith.constant 135 : index
    %173 = vector.load %arg29[%c0_104, %c135] : memref<32x512xf32, #tpu.memory_space<vmem>>, vector<8x64xf32>
    %174 = vector.broadcast %154 : vector<1x64xf32> to vector<8x64xf32>
    %175 = arith.mulf %173, %174 : vector<8x64xf32>
    %c0_105 = arith.constant 0 : index
    %c136 = arith.constant 136 : index
    %176 = vector.load %arg29[%c0_105, %c136] : memref<32x512xf32, #tpu.memory_space<vmem>>, vector<8x64xf32>
    %c0_106 = arith.constant 0 : index
    %c137 = arith.constant 137 : index
    %177 = vector.load %arg29[%c0_106, %c137] : memref<32x512xf32, #tpu.memory_space<vmem>>, vector<8x64xf32>
    %178 = vector.broadcast %158 : vector<1x64xf32> to vector<8x64xf32>
    %179 = arith.mulf %177, %178 : vector<8x64xf32>
    %180 = tpu.concatenate %161, %162, %165, %168, %169, %172, %175, %176, %179 in 0 : vector<8x64xf32>, vector<8x64xf32>, vector<8x64xf32>, vector<8x64xf32>, vector<8x64xf32>, vector<8x64xf32>, vector<8x64xf32>, vector<8x64xf32>, vector<8x64xf32> -> vector<72x64xf32>
    %cst_107 = arith.constant dense<0.000000e+00> : vector<16x64xf32>
    %181 = tpu.matmul %127, %180, %cst_107 {dimension_numbers = #tpu.dot_dimension_numbers<[1], [0], [0], [1], [0, 0, 1, 1], [], []>} : vector<16x72xf32>, vector<72x64xf32>, vector<16x64xf32> -> vector<16x64xf32>
    %182 = vector.broadcast %128 : vector<16x1xf32> to vector<16x64xf32>
    %183 = arith.addf %181, %182 : vector<16x64xf32>
    %cst_108 = arith.constant 0.000000e+00 : f32
    %184 = vector.broadcast %cst_108 : f32 to vector<16x64xf32>
    %185 = arith.maximumf %183, %184 : vector<16x64xf32>
    %cst_109 = arith.constant 0.000000e+00 : f32
    %186 = vector.broadcast %cst_109 : f32 to vector<32x512xf32>
    %c0_110 = arith.constant 0 : index
    %c0_111 = arith.constant 0 : index
    %187 = vector.load %arg29[%c0_110, %c0_111] : memref<32x512xf32, #tpu.memory_space<vmem>>, vector<32x512xf32>
    tpu.vector_store %arg29[%c0_110, %c0_111], %186 {strides = array<i32>} : memref<32x512xf32, #tpu.memory_space<vmem>>, vector<32x512xf32>,
    %c0_112 = arith.constant 0 : index
    %c128_113 = arith.constant 128 : index
    %188 = vector.load %arg29[%c0_112, %c128_113] : memref<32x512xf32, #tpu.memory_space<vmem>>, vector<16x64xf32>
    tpu.vector_store %arg29[%c0_112, %c128_113], %185 {strides = array<i32>} : memref<32x512xf32, #tpu.memory_space<vmem>>, vector<16x64xf32>,
    %189 = tpu.iota {dimensions = array<i32: 1>} : vector<1x64xi32>
    %c8_i32_114 = arith.constant 8 : i32
    %c0_i32_115 = arith.constant 0 : i32
    %190 = arith.cmpi eq, %c8_i32_114, %c0_i32_115 : i32
    %c1_i32_116 = arith.constant 1 : i32
    %191 = arith.select %190, %c1_i32_116, %c8_i32_114 : i32
    %192 = vector.broadcast %191 : i32 to vector<1x64xi32>
    %193 = arith.remsi %189, %192 : vector<1x64xi32>
    %c0_i32_117 = arith.constant 0 : i32
    %194 = vector.broadcast %c0_i32_117 : i32 to vector<1x64xi32>
    %195 = arith.cmpi ne, %193, %194 : vector<1x64xi32>
    %c0_i32_118 = arith.constant 0 : i32
    %196 = vector.broadcast %c0_i32_118 : i32 to vector<1x64xi32>
    %197 = arith.cmpi slt, %193, %196 : vector<1x64xi32>
    %c0_i32_119 = arith.constant 0 : i32
    %198 = arith.cmpi slt, %191, %c0_i32_119 : i32
    %199 = vector.broadcast %198 : i1 to vector<1x64xi1>
    %200 = vector.broadcast %199 : vector<1x64xi1> to vector<1x64xi1>
    %201 = arith.xori %197, %200 : vector<1x64xi1>
    %202 = arith.andi %201, %195 : vector<1x64xi1>
    %203 = vector.broadcast %191 : i32 to vector<1x64xi32>
    %204 = arith.addi %193, %203 : vector<1x64xi32>
    %205 = arith.select %202, %204, %193 : vector<1x64xi1>, vector<1x64xi32>
    %c0_i32_120 = arith.constant 0 : i32
    %206 = vector.broadcast %c0_i32_120 : i32 to vector<1x64xi32>
    %207 = arith.cmpi ne, %205, %206 : vector<1x64xi32>
    %208 = arith.extui %207 : vector<1x64xi1> to vector<1x64xi32>
    %209 = arith.sitofp %208 : vector<1x64xi32> to vector<1x64xf32>
    %c7_i32_121 = arith.constant 7 : i32
    %210 = vector.broadcast %c7_i32_121 : i32 to vector<1x64xi32>
    %211 = arith.cmpi ne, %205, %210 : vector<1x64xi32>
    %212 = arith.extui %211 : vector<1x64xi1> to vector<1x64xi32>
    %213 = arith.sitofp %212 : vector<1x64xi32> to vector<1x64xf32>
    %c0_122 = arith.constant 0 : index
    %c119_123 = arith.constant 119 : index
    %214 = vector.load %arg29[%c0_122, %c119_123] : memref<32x512xf32, #tpu.memory_space<vmem>>, vector<16x64xf32>
    %215 = vector.broadcast %209 : vector<1x64xf32> to vector<16x64xf32>
    %216 = arith.mulf %214, %215 : vector<16x64xf32>
    %c0_124 = arith.constant 0 : index
    %c120_125 = arith.constant 120 : index
    %217 = vector.load %arg29[%c0_124, %c120_125] : memref<32x512xf32, #tpu.memory_space<vmem>>, vector<16x64xf32>
    %c0_126 = arith.constant 0 : index
    %c121_127 = arith.constant 121 : index
    %218 = vector.load %arg29[%c0_126, %c121_127] : memref<32x512xf32, #tpu.memory_space<vmem>>, vector<16x64xf32>
    %219 = vector.broadcast %213 : vector<1x64xf32> to vector<16x64xf32>
    %220 = arith.mulf %218, %219 : vector<16x64xf32>
    %c0_128 = arith.constant 0 : index
    %c127_129 = arith.constant 127 : index
    %221 = vector.load %arg29[%c0_128, %c127_129] : memref<32x512xf32, #tpu.memory_space<vmem>>, vector<16x64xf32>
    %222 = vector.broadcast %209 : vector<1x64xf32> to vector<16x64xf32>
    %223 = arith.mulf %221, %222 : vector<16x64xf32>
    %c0_130 = arith.constant 0 : index
    %c128_131 = arith.constant 128 : index
    %224 = vector.load %arg29[%c0_130, %c128_131] : memref<32x512xf32, #tpu.memory_space<vmem>>, vector<16x64xf32>
    %c0_132 = arith.constant 0 : index
    %c129_133 = arith.constant 129 : index
    %225 = vector.load %arg29[%c0_132, %c129_133] : memref<32x512xf32, #tpu.memory_space<vmem>>, vector<16x64xf32>
    %226 = vector.broadcast %213 : vector<1x64xf32> to vector<16x64xf32>
    %227 = arith.mulf %225, %226 : vector<16x64xf32>
    %c0_134 = arith.constant 0 : index
    %c135_135 = arith.constant 135 : index
    %228 = vector.load %arg29[%c0_134, %c135_135] : memref<32x512xf32, #tpu.memory_space<vmem>>, vector<16x64xf32>
    %229 = vector.broadcast %209 : vector<1x64xf32> to vector<16x64xf32>
    %230 = arith.mulf %228, %229 : vector<16x64xf32>
    %c0_136 = arith.constant 0 : index
    %c136_137 = arith.constant 136 : index
    %231 = vector.load %arg29[%c0_136, %c136_137] : memref<32x512xf32, #tpu.memory_space<vmem>>, vector<16x64xf32>
    %c0_138 = arith.constant 0 : index
    %c137_139 = arith.constant 137 : index
    %232 = vector.load %arg29[%c0_138, %c137_139] : memref<32x512xf32, #tpu.memory_space<vmem>>, vector<16x64xf32>
    %233 = vector.broadcast %213 : vector<1x64xf32> to vector<16x64xf32>
    %234 = arith.mulf %232, %233 : vector<16x64xf32>
    %235 = tpu.concatenate %216, %217, %220, %223, %224, %227, %230, %231, %234 in 0 : vector<16x64xf32>, vector<16x64xf32>, vector<16x64xf32>, vector<16x64xf32>, vector<16x64xf32>, vector<16x64xf32>, vector<16x64xf32>, vector<16x64xf32>, vector<16x64xf32> -> vector<144x64xf32>
    %cst_140 = arith.constant dense<0.000000e+00> : vector<16x64xf32>
    %236 = tpu.matmul %129, %235, %cst_140 {dimension_numbers = #tpu.dot_dimension_numbers<[1], [0], [0], [1], [0, 0, 1, 1], [], []>} : vector<16x144xf32>, vector<144x64xf32>, vector<16x64xf32> -> vector<16x64xf32>
    %237 = vector.broadcast %130 : vector<16x1xf32> to vector<16x64xf32>
    %238 = arith.addf %236, %237 : vector<16x64xf32>
    %cst_141 = arith.constant 0.000000e+00 : f32
    %239 = vector.broadcast %cst_141 : f32 to vector<16x64xf32>
    %240 = arith.maximumf %238, %239 : vector<16x64xf32>
    %c0_142 = arith.constant 0 : index
    %c0_143 = arith.constant 0 : index
    %241 = vector.load %arg25[%c0_142, %c0_143] : memref<64x16xf32, #tpu.memory_space<vmem>>, vector<64x16xf32>
    %cst_144 = arith.constant 0.000000e+00 : f32
    %242 = vector.broadcast %cst_144 : f32 to vector<32x512xf32>
    %c0_145 = arith.constant 0 : index
    %c0_146 = arith.constant 0 : index
    %243 = vector.load %arg29[%c0_145, %c0_146] : memref<32x512xf32, #tpu.memory_space<vmem>>, vector<32x512xf32>
    tpu.vector_store %arg29[%c0_145, %c0_146], %242 {strides = array<i32>} : memref<32x512xf32, #tpu.memory_space<vmem>>, vector<32x512xf32>,
    %c0_147 = arith.constant 0 : index
    %c128_148 = arith.constant 128 : index
    %244 = vector.load %arg29[%c0_147, %c128_148] : memref<32x512xf32, #tpu.memory_space<vmem>>, vector<16x64xf32>
    tpu.vector_store %arg29[%c0_147, %c128_148], %240 {strides = array<i32>} : memref<32x512xf32, #tpu.memory_space<vmem>>, vector<16x64xf32>,
    %c0_149 = arith.constant 0 : index
    %c129_150 = arith.constant 129 : index
    %245 = vector.load %arg29[%c0_149, %c129_150] : memref<32x512xf32, #tpu.memory_space<vmem>>, vector<16x64xf32>
    %246 = arith.maximumf %240, %245 : vector<16x64xf32>
    %c0_151 = arith.constant 0 : index
    %c136_152 = arith.constant 136 : index
    %247 = vector.load %arg29[%c0_151, %c136_152] : memref<32x512xf32, #tpu.memory_space<vmem>>, vector<16x64xf32>
    %248 = arith.maximumf %246, %247 : vector<16x64xf32>
    %c0_153 = arith.constant 0 : index
    %c137_154 = arith.constant 137 : index
    %249 = vector.load %arg29[%c0_153, %c137_154] : memref<32x512xf32, #tpu.memory_space<vmem>>, vector<16x64xf32>
    %250 = arith.maximumf %248, %249 : vector<16x64xf32>
    %cst_155 = arith.constant dense<0.000000e+00> : vector<16x16xf32>
    %251 = tpu.matmul %250, %241, %cst_155 {dimension_numbers = #tpu.dot_dimension_numbers<[1], [0], [0], [1], [0, 0, 1, 1], [], []>} : vector<16x64xf32>, vector<64x16xf32>, vector<16x16xf32> -> vector<16x16xf32>
    %c0_156 = arith.constant 0 : index
    %c0_157 = arith.constant 0 : index
    %252 = vector.load %arg10[%c0_156, %c0_157] : memref<16x144xf32, #tpu.memory_space<vmem>>, vector<16x144xf32>
    %c0_158 = arith.constant 0 : index
    %c0_159 = arith.constant 0 : index
    %253 = vector.load %arg11[%c0_158, %c0_159] : memref<16x1xf32, #tpu.memory_space<vmem>>, vector<16x1xf32>
    %c0_160 = arith.constant 0 : index
    %c0_161 = arith.constant 0 : index
    %254 = vector.load %arg12[%c0_160, %c0_161] : memref<16x144xf32, #tpu.memory_space<vmem>>, vector<16x144xf32>
    %c0_162 = arith.constant 0 : index
    %c0_163 = arith.constant 0 : index
    %255 = vector.load %arg13[%c0_162, %c0_163] : memref<16x1xf32, #tpu.memory_space<vmem>>, vector<16x1xf32>
    %cst_164 = arith.constant 0.000000e+00 : f32
    %256 = vector.broadcast %cst_164 : f32 to vector<32x512xf32>
    %c0_165 = arith.constant 0 : index
    %c0_166 = arith.constant 0 : index
    %257 = vector.load %arg29[%c0_165, %c0_166] : memref<32x512xf32, #tpu.memory_space<vmem>>, vector<32x512xf32>
    tpu.vector_store %arg29[%c0_165, %c0_166], %256 {strides = array<i32>} : memref<32x512xf32, #tpu.memory_space<vmem>>, vector<32x512xf32>,
    %c0_167 = arith.constant 0 : index
    %c128_168 = arith.constant 128 : index
    %258 = vector.load %arg29[%c0_167, %c128_168] : memref<32x512xf32, #tpu.memory_space<vmem>>, vector<16x16xf32>
    tpu.vector_store %arg29[%c0_167, %c128_168], %251 {strides = array<i32>} : memref<32x512xf32, #tpu.memory_space<vmem>>, vector<16x16xf32>,
    %259 = tpu.iota {dimensions = array<i32: 1>} : vector<1x16xi32>
    %c4_i32 = arith.constant 4 : i32
    %c0_i32_169 = arith.constant 0 : i32
    %260 = arith.cmpi eq, %c4_i32, %c0_i32_169 : i32
    %c1_i32_170 = arith.constant 1 : i32
    %261 = arith.select %260, %c1_i32_170, %c4_i32 : i32
    %262 = vector.broadcast %261 : i32 to vector<1x16xi32>
    %263 = arith.remsi %259, %262 : vector<1x16xi32>
    %c0_i32_171 = arith.constant 0 : i32
    %264 = vector.broadcast %c0_i32_171 : i32 to vector<1x16xi32>
    %265 = arith.cmpi ne, %263, %264 : vector<1x16xi32>
    %c0_i32_172 = arith.constant 0 : i32
    %266 = vector.broadcast %c0_i32_172 : i32 to vector<1x16xi32>
    %267 = arith.cmpi slt, %263, %266 : vector<1x16xi32>
    %c0_i32_173 = arith.constant 0 : i32
    %268 = arith.cmpi slt, %261, %c0_i32_173 : i32
    %269 = vector.broadcast %268 : i1 to vector<1x16xi1>
    %270 = vector.broadcast %269 : vector<1x16xi1> to vector<1x16xi1>
    %271 = arith.xori %267, %270 : vector<1x16xi1>
    %272 = arith.andi %271, %265 : vector<1x16xi1>
    %273 = vector.broadcast %261 : i32 to vector<1x16xi32>
    %274 = arith.addi %263, %273 : vector<1x16xi32>
    %275 = arith.select %272, %274, %263 : vector<1x16xi1>, vector<1x16xi32>
    %c0_i32_174 = arith.constant 0 : i32
    %276 = vector.broadcast %c0_i32_174 : i32 to vector<1x16xi32>
    %277 = arith.cmpi ne, %275, %276 : vector<1x16xi32>
    %278 = arith.extui %277 : vector<1x16xi1> to vector<1x16xi32>
    %279 = arith.sitofp %278 : vector<1x16xi32> to vector<1x16xf32>
    %c3_i32 = arith.constant 3 : i32
    %280 = vector.broadcast %c3_i32 : i32 to vector<1x16xi32>
    %281 = arith.cmpi ne, %275, %280 : vector<1x16xi32>
    %282 = arith.extui %281 : vector<1x16xi1> to vector<1x16xi32>
    %283 = arith.sitofp %282 : vector<1x16xi32> to vector<1x16xf32>
    %c0_175 = arith.constant 0 : index
    %c123 = arith.constant 123 : index
    %284 = vector.load %arg29[%c0_175, %c123] : memref<32x512xf32, #tpu.memory_space<vmem>>, vector<16x16xf32>
    %285 = vector.broadcast %279 : vector<1x16xf32> to vector<16x16xf32>
    %286 = arith.mulf %284, %285 : vector<16x16xf32>
    %c0_176 = arith.constant 0 : index
    %c124 = arith.constant 124 : index
    %287 = vector.load %arg29[%c0_176, %c124] : memref<32x512xf32, #tpu.memory_space<vmem>>, vector<16x16xf32>
    %c0_177 = arith.constant 0 : index
    %c125 = arith.constant 125 : index
    %288 = vector.load %arg29[%c0_177, %c125] : memref<32x512xf32, #tpu.memory_space<vmem>>, vector<16x16xf32>
    %289 = vector.broadcast %283 : vector<1x16xf32> to vector<16x16xf32>
    %290 = arith.mulf %288, %289 : vector<16x16xf32>
    %c0_178 = arith.constant 0 : index
    %c127_179 = arith.constant 127 : index
    %291 = vector.load %arg29[%c0_178, %c127_179] : memref<32x512xf32, #tpu.memory_space<vmem>>, vector<16x16xf32>
    %292 = vector.broadcast %279 : vector<1x16xf32> to vector<16x16xf32>
    %293 = arith.mulf %291, %292 : vector<16x16xf32>
    %c0_180 = arith.constant 0 : index
    %c128_181 = arith.constant 128 : index
    %294 = vector.load %arg29[%c0_180, %c128_181] : memref<32x512xf32, #tpu.memory_space<vmem>>, vector<16x16xf32>
    %c0_182 = arith.constant 0 : index
    %c129_183 = arith.constant 129 : index
    %295 = vector.load %arg29[%c0_182, %c129_183] : memref<32x512xf32, #tpu.memory_space<vmem>>, vector<16x16xf32>
    %296 = vector.broadcast %283 : vector<1x16xf32> to vector<16x16xf32>
    %297 = arith.mulf %295, %296 : vector<16x16xf32>
    %c0_184 = arith.constant 0 : index
    %c131 = arith.constant 131 : index
    %298 = vector.load %arg29[%c0_184, %c131] : memref<32x512xf32, #tpu.memory_space<vmem>>, vector<16x16xf32>
    %299 = vector.broadcast %279 : vector<1x16xf32> to vector<16x16xf32>
    %300 = arith.mulf %298, %299 : vector<16x16xf32>
    %c0_185 = arith.constant 0 : index
    %c132 = arith.constant 132 : index
    %301 = vector.load %arg29[%c0_185, %c132] : memref<32x512xf32, #tpu.memory_space<vmem>>, vector<16x16xf32>
    %c0_186 = arith.constant 0 : index
    %c133 = arith.constant 133 : index
    %302 = vector.load %arg29[%c0_186, %c133] : memref<32x512xf32, #tpu.memory_space<vmem>>, vector<16x16xf32>
    %303 = vector.broadcast %283 : vector<1x16xf32> to vector<16x16xf32>
    %304 = arith.mulf %302, %303 : vector<16x16xf32>
    %305 = tpu.concatenate %286, %287, %290, %293, %294, %297, %300, %301, %304 in 0 : vector<16x16xf32>, vector<16x16xf32>, vector<16x16xf32>, vector<16x16xf32>, vector<16x16xf32>, vector<16x16xf32>, vector<16x16xf32>, vector<16x16xf32>, vector<16x16xf32> -> vector<144x16xf32>
    %cst_187 = arith.constant dense<0.000000e+00> : vector<16x16xf32>
    %306 = tpu.matmul %252, %305, %cst_187 {dimension_numbers = #tpu.dot_dimension_numbers<[1], [0], [0], [1], [0, 0, 1, 1], [], []>} : vector<16x144xf32>, vector<144x16xf32>, vector<16x16xf32> -> vector<16x16xf32>
    %307 = vector.broadcast %253 : vector<16x1xf32> to vector<16x16xf32>
    %308 = arith.addf %306, %307 : vector<16x16xf32>
    %cst_188 = arith.constant 0.000000e+00 : f32
    %309 = vector.broadcast %cst_188 : f32 to vector<16x16xf32>
    %310 = arith.maximumf %308, %309 : vector<16x16xf32>
    %cst_189 = arith.constant 0.000000e+00 : f32
    %311 = vector.broadcast %cst_189 : f32 to vector<32x512xf32>
    %c0_190 = arith.constant 0 : index
    %c0_191 = arith.constant 0 : index
    %312 = vector.load %arg29[%c0_190, %c0_191] : memref<32x512xf32, #tpu.memory_space<vmem>>, vector<32x512xf32>
    tpu.vector_store %arg29[%c0_190, %c0_191], %311 {strides = array<i32>} : memref<32x512xf32, #tpu.memory_space<vmem>>, vector<32x512xf32>,
    %c0_192 = arith.constant 0 : index
    %c128_193 = arith.constant 128 : index
    %313 = vector.load %arg29[%c0_192, %c128_193] : memref<32x512xf32, #tpu.memory_space<vmem>>, vector<16x16xf32>
    tpu.vector_store %arg29[%c0_192, %c128_193], %310 {strides = array<i32>} : memref<32x512xf32, #tpu.memory_space<vmem>>, vector<16x16xf32>,
    %314 = tpu.iota {dimensions = array<i32: 1>} : vector<1x16xi32>
    %c4_i32_194 = arith.constant 4 : i32
    %c0_i32_195 = arith.constant 0 : i32
    %315 = arith.cmpi eq, %c4_i32_194, %c0_i32_195 : i32
    %c1_i32_196 = arith.constant 1 : i32
    %316 = arith.select %315, %c1_i32_196, %c4_i32_194 : i32
    %317 = vector.broadcast %316 : i32 to vector<1x16xi32>
    %318 = arith.remsi %314, %317 : vector<1x16xi32>
    %c0_i32_197 = arith.constant 0 : i32
    %319 = vector.broadcast %c0_i32_197 : i32 to vector<1x16xi32>
    %320 = arith.cmpi ne, %318, %319 : vector<1x16xi32>
    %c0_i32_198 = arith.constant 0 : i32
    %321 = vector.broadcast %c0_i32_198 : i32 to vector<1x16xi32>
    %322 = arith.cmpi slt, %318, %321 : vector<1x16xi32>
    %c0_i32_199 = arith.constant 0 : i32
    %323 = arith.cmpi slt, %316, %c0_i32_199 : i32
    %324 = vector.broadcast %323 : i1 to vector<1x16xi1>
    %325 = vector.broadcast %324 : vector<1x16xi1> to vector<1x16xi1>
    %326 = arith.xori %322, %325 : vector<1x16xi1>
    %327 = arith.andi %326, %320 : vector<1x16xi1>
    %328 = vector.broadcast %316 : i32 to vector<1x16xi32>
    %329 = arith.addi %318, %328 : vector<1x16xi32>
    %330 = arith.select %327, %329, %318 : vector<1x16xi1>, vector<1x16xi32>
    %c0_i32_200 = arith.constant 0 : i32
    %331 = vector.broadcast %c0_i32_200 : i32 to vector<1x16xi32>
    %332 = arith.cmpi ne, %330, %331 : vector<1x16xi32>
    %333 = arith.extui %332 : vector<1x16xi1> to vector<1x16xi32>
    %334 = arith.sitofp %333 : vector<1x16xi32> to vector<1x16xf32>
    %c3_i32_201 = arith.constant 3 : i32
    %335 = vector.broadcast %c3_i32_201 : i32 to vector<1x16xi32>
    %336 = arith.cmpi ne, %330, %335 : vector<1x16xi32>
    %337 = arith.extui %336 : vector<1x16xi1> to vector<1x16xi32>
    %338 = arith.sitofp %337 : vector<1x16xi32> to vector<1x16xf32>
    %c0_202 = arith.constant 0 : index
    %c123_203 = arith.constant 123 : index
    %339 = vector.load %arg29[%c0_202, %c123_203] : memref<32x512xf32, #tpu.memory_space<vmem>>, vector<16x16xf32>
    %340 = vector.broadcast %334 : vector<1x16xf32> to vector<16x16xf32>
    %341 = arith.mulf %339, %340 : vector<16x16xf32>
    %c0_204 = arith.constant 0 : index
    %c124_205 = arith.constant 124 : index
    %342 = vector.load %arg29[%c0_204, %c124_205] : memref<32x512xf32, #tpu.memory_space<vmem>>, vector<16x16xf32>
    %c0_206 = arith.constant 0 : index
    %c125_207 = arith.constant 125 : index
    %343 = vector.load %arg29[%c0_206, %c125_207] : memref<32x512xf32, #tpu.memory_space<vmem>>, vector<16x16xf32>
    %344 = vector.broadcast %338 : vector<1x16xf32> to vector<16x16xf32>
    %345 = arith.mulf %343, %344 : vector<16x16xf32>
    %c0_208 = arith.constant 0 : index
    %c127_209 = arith.constant 127 : index
    %346 = vector.load %arg29[%c0_208, %c127_209] : memref<32x512xf32, #tpu.memory_space<vmem>>, vector<16x16xf32>
    %347 = vector.broadcast %334 : vector<1x16xf32> to vector<16x16xf32>
    %348 = arith.mulf %346, %347 : vector<16x16xf32>
    %c0_210 = arith.constant 0 : index
    %c128_211 = arith.constant 128 : index
    %349 = vector.load %arg29[%c0_210, %c128_211] : memref<32x512xf32, #tpu.memory_space<vmem>>, vector<16x16xf32>
    %c0_212 = arith.constant 0 : index
    %c129_213 = arith.constant 129 : index
    %350 = vector.load %arg29[%c0_212, %c129_213] : memref<32x512xf32, #tpu.memory_space<vmem>>, vector<16x16xf32>
    %351 = vector.broadcast %338 : vector<1x16xf32> to vector<16x16xf32>
    %352 = arith.mulf %350, %351 : vector<16x16xf32>
    %c0_214 = arith.constant 0 : index
    %c131_215 = arith.constant 131 : index
    %353 = vector.load %arg29[%c0_214, %c131_215] : memref<32x512xf32, #tpu.memory_space<vmem>>, vector<16x16xf32>
    %354 = vector.broadcast %334 : vector<1x16xf32> to vector<16x16xf32>
    %355 = arith.mulf %353, %354 : vector<16x16xf32>
    %c0_216 = arith.constant 0 : index
    %c132_217 = arith.constant 132 : index
    %356 = vector.load %arg29[%c0_216, %c132_217] : memref<32x512xf32, #tpu.memory_space<vmem>>, vector<16x16xf32>
    %c0_218 = arith.constant 0 : index
    %c133_219 = arith.constant 133 : index
    %357 = vector.load %arg29[%c0_218, %c133_219] : memref<32x512xf32, #tpu.memory_space<vmem>>, vector<16x16xf32>
    %358 = vector.broadcast %338 : vector<1x16xf32> to vector<16x16xf32>
    %359 = arith.mulf %357, %358 : vector<16x16xf32>
    %360 = tpu.concatenate %341, %342, %345, %348, %349, %352, %355, %356, %359 in 0 : vector<16x16xf32>, vector<16x16xf32>, vector<16x16xf32>, vector<16x16xf32>, vector<16x16xf32>, vector<16x16xf32>, vector<16x16xf32>, vector<16x16xf32>, vector<16x16xf32> -> vector<144x16xf32>
    %cst_220 = arith.constant dense<0.000000e+00> : vector<16x16xf32>
    %361 = tpu.matmul %254, %360, %cst_220 {dimension_numbers = #tpu.dot_dimension_numbers<[1], [0], [0], [1], [0, 0, 1, 1], [], []>} : vector<16x144xf32>, vector<144x16xf32>, vector<16x16xf32> -> vector<16x16xf32>
    %362 = vector.broadcast %255 : vector<16x1xf32> to vector<16x16xf32>
    %363 = arith.addf %361, %362 : vector<16x16xf32>
    %cst_221 = arith.constant 0.000000e+00 : f32
    %364 = vector.broadcast %cst_221 : f32 to vector<16x16xf32>
    %365 = arith.maximumf %363, %364 : vector<16x16xf32>
    %c0_222 = arith.constant 0 : index
    %c0_223 = arith.constant 0 : index
    %366 = vector.load %arg26[%c0_222, %c0_223] : memref<16x64xf32, #tpu.memory_space<vmem>>, vector<16x64xf32>
    %cst_224 = arith.constant dense<0.000000e+00> : vector<16x64xf32>
    %367 = tpu.matmul %365, %366, %cst_224 {dimension_numbers = #tpu.dot_dimension_numbers<[1], [0], [0], [1], [0, 0, 1, 1], [], []>} : vector<16x16xf32>, vector<16x64xf32>, vector<16x64xf32> -> vector<16x64xf32>
    %368 = tpu.concatenate %240, %367 in 0 : vector<16x64xf32>, vector<16x64xf32> -> vector<32x64xf32>
    %c0_225 = arith.constant 0 : index
    %c0_226 = arith.constant 0 : index
    %369 = vector.load %arg14[%c0_225, %c0_226] : memref<16x288xf32, #tpu.memory_space<vmem>>, vector<16x288xf32>
    %c0_227 = arith.constant 0 : index
    %c0_228 = arith.constant 0 : index
    %370 = vector.load %arg15[%c0_227, %c0_228] : memref<16x1xf32, #tpu.memory_space<vmem>>, vector<16x1xf32>
    %c0_229 = arith.constant 0 : index
    %c0_230 = arith.constant 0 : index
    %371 = vector.load %arg16[%c0_229, %c0_230] : memref<8x144xf32, #tpu.memory_space<vmem>>, vector<8x144xf32>
    %c0_231 = arith.constant 0 : index
    %c0_232 = arith.constant 0 : index
    %372 = vector.load %arg17[%c0_231, %c0_232] : memref<8x1xf32, #tpu.memory_space<vmem>>, vector<8x1xf32>
    %cst_233 = arith.constant 0.000000e+00 : f32
    %373 = vector.broadcast %cst_233 : f32 to vector<32x512xf32>
    %c0_234 = arith.constant 0 : index
    %c0_235 = arith.constant 0 : index
    %374 = vector.load %arg29[%c0_234, %c0_235] : memref<32x512xf32, #tpu.memory_space<vmem>>, vector<32x512xf32>
    tpu.vector_store %arg29[%c0_234, %c0_235], %373 {strides = array<i32>} : memref<32x512xf32, #tpu.memory_space<vmem>>, vector<32x512xf32>,
    %c0_236 = arith.constant 0 : index
    %c128_237 = arith.constant 128 : index
    %375 = vector.load %arg29[%c0_236, %c128_237] : memref<32x512xf32, #tpu.memory_space<vmem>>, vector<32x64xf32>
    tpu.vector_store %arg29[%c0_236, %c128_237], %368 {strides = array<i32>} : memref<32x512xf32, #tpu.memory_space<vmem>>, vector<32x64xf32>,
    %376 = tpu.iota {dimensions = array<i32: 1>} : vector<1x64xi32>
    %c8_i32_238 = arith.constant 8 : i32
    %c0_i32_239 = arith.constant 0 : i32
    %377 = arith.cmpi eq, %c8_i32_238, %c0_i32_239 : i32
    %c1_i32_240 = arith.constant 1 : i32
    %378 = arith.select %377, %c1_i32_240, %c8_i32_238 : i32
    %379 = vector.broadcast %378 : i32 to vector<1x64xi32>
    %380 = arith.remsi %376, %379 : vector<1x64xi32>
    %c0_i32_241 = arith.constant 0 : i32
    %381 = vector.broadcast %c0_i32_241 : i32 to vector<1x64xi32>
    %382 = arith.cmpi ne, %380, %381 : vector<1x64xi32>
    %c0_i32_242 = arith.constant 0 : i32
    %383 = vector.broadcast %c0_i32_242 : i32 to vector<1x64xi32>
    %384 = arith.cmpi slt, %380, %383 : vector<1x64xi32>
    %c0_i32_243 = arith.constant 0 : i32
    %385 = arith.cmpi slt, %378, %c0_i32_243 : i32
    %386 = vector.broadcast %385 : i1 to vector<1x64xi1>
    %387 = vector.broadcast %386 : vector<1x64xi1> to vector<1x64xi1>
    %388 = arith.xori %384, %387 : vector<1x64xi1>
    %389 = arith.andi %388, %382 : vector<1x64xi1>
    %390 = vector.broadcast %378 : i32 to vector<1x64xi32>
    %391 = arith.addi %380, %390 : vector<1x64xi32>
    %392 = arith.select %389, %391, %380 : vector<1x64xi1>, vector<1x64xi32>
    %c0_i32_244 = arith.constant 0 : i32
    %393 = vector.broadcast %c0_i32_244 : i32 to vector<1x64xi32>
    %394 = arith.cmpi ne, %392, %393 : vector<1x64xi32>
    %395 = arith.extui %394 : vector<1x64xi1> to vector<1x64xi32>
    %396 = arith.sitofp %395 : vector<1x64xi32> to vector<1x64xf32>
    %c7_i32_245 = arith.constant 7 : i32
    %397 = vector.broadcast %c7_i32_245 : i32 to vector<1x64xi32>
    %398 = arith.cmpi ne, %392, %397 : vector<1x64xi32>
    %399 = arith.extui %398 : vector<1x64xi1> to vector<1x64xi32>
    %400 = arith.sitofp %399 : vector<1x64xi32> to vector<1x64xf32>
    %c0_246 = arith.constant 0 : index
    %c119_247 = arith.constant 119 : index
    %401 = vector.load %arg29[%c0_246, %c119_247] : memref<32x512xf32, #tpu.memory_space<vmem>>, vector<32x64xf32>
    %402 = vector.broadcast %396 : vector<1x64xf32> to vector<32x64xf32>
    %403 = arith.mulf %401, %402 : vector<32x64xf32>
    %c0_248 = arith.constant 0 : index
    %c120_249 = arith.constant 120 : index
    %404 = vector.load %arg29[%c0_248, %c120_249] : memref<32x512xf32, #tpu.memory_space<vmem>>, vector<32x64xf32>
    %c0_250 = arith.constant 0 : index
    %c121_251 = arith.constant 121 : index
    %405 = vector.load %arg29[%c0_250, %c121_251] : memref<32x512xf32, #tpu.memory_space<vmem>>, vector<32x64xf32>
    %406 = vector.broadcast %400 : vector<1x64xf32> to vector<32x64xf32>
    %407 = arith.mulf %405, %406 : vector<32x64xf32>
    %c0_252 = arith.constant 0 : index
    %c127_253 = arith.constant 127 : index
    %408 = vector.load %arg29[%c0_252, %c127_253] : memref<32x512xf32, #tpu.memory_space<vmem>>, vector<32x64xf32>
    %409 = vector.broadcast %396 : vector<1x64xf32> to vector<32x64xf32>
    %410 = arith.mulf %408, %409 : vector<32x64xf32>
    %c0_254 = arith.constant 0 : index
    %c128_255 = arith.constant 128 : index
    %411 = vector.load %arg29[%c0_254, %c128_255] : memref<32x512xf32, #tpu.memory_space<vmem>>, vector<32x64xf32>
    %c0_256 = arith.constant 0 : index
    %c129_257 = arith.constant 129 : index
    %412 = vector.load %arg29[%c0_256, %c129_257] : memref<32x512xf32, #tpu.memory_space<vmem>>, vector<32x64xf32>
    %413 = vector.broadcast %400 : vector<1x64xf32> to vector<32x64xf32>
    %414 = arith.mulf %412, %413 : vector<32x64xf32>
    %c0_258 = arith.constant 0 : index
    %c135_259 = arith.constant 135 : index
    %415 = vector.load %arg29[%c0_258, %c135_259] : memref<32x512xf32, #tpu.memory_space<vmem>>, vector<32x64xf32>
    %416 = vector.broadcast %396 : vector<1x64xf32> to vector<32x64xf32>
    %417 = arith.mulf %415, %416 : vector<32x64xf32>
    %c0_260 = arith.constant 0 : index
    %c136_261 = arith.constant 136 : index
    %418 = vector.load %arg29[%c0_260, %c136_261] : memref<32x512xf32, #tpu.memory_space<vmem>>, vector<32x64xf32>
    %c0_262 = arith.constant 0 : index
    %c137_263 = arith.constant 137 : index
    %419 = vector.load %arg29[%c0_262, %c137_263] : memref<32x512xf32, #tpu.memory_space<vmem>>, vector<32x64xf32>
    %420 = vector.broadcast %400 : vector<1x64xf32> to vector<32x64xf32>
    %421 = arith.mulf %419, %420 : vector<32x64xf32>
    %422 = tpu.concatenate %403, %404, %407, %410, %411, %414, %417, %418, %421 in 0 : vector<32x64xf32>, vector<32x64xf32>, vector<32x64xf32>, vector<32x64xf32>, vector<32x64xf32>, vector<32x64xf32>, vector<32x64xf32>, vector<32x64xf32>, vector<32x64xf32> -> vector<288x64xf32>
    %cst_264 = arith.constant dense<0.000000e+00> : vector<16x64xf32>
    %423 = tpu.matmul %369, %422, %cst_264 {dimension_numbers = #tpu.dot_dimension_numbers<[1], [0], [0], [1], [0, 0, 1, 1], [], []>} : vector<16x288xf32>, vector<288x64xf32>, vector<16x64xf32> -> vector<16x64xf32>
    %424 = vector.broadcast %370 : vector<16x1xf32> to vector<16x64xf32>
    %425 = arith.addf %423, %424 : vector<16x64xf32>
    %cst_265 = arith.constant 0.000000e+00 : f32
    %426 = vector.broadcast %cst_265 : f32 to vector<16x64xf32>
    %427 = arith.maximumf %425, %426 : vector<16x64xf32>
    %cst_266 = arith.constant 0.000000e+00 : f32
    %428 = vector.broadcast %cst_266 : f32 to vector<32x512xf32>
    %c0_267 = arith.constant 0 : index
    %c0_268 = arith.constant 0 : index
    %429 = vector.load %arg29[%c0_267, %c0_268] : memref<32x512xf32, #tpu.memory_space<vmem>>, vector<32x512xf32>
    tpu.vector_store %arg29[%c0_267, %c0_268], %428 {strides = array<i32>} : memref<32x512xf32, #tpu.memory_space<vmem>>, vector<32x512xf32>,
    %c0_269 = arith.constant 0 : index
    %c128_270 = arith.constant 128 : index
    %430 = vector.load %arg29[%c0_269, %c128_270] : memref<32x512xf32, #tpu.memory_space<vmem>>, vector<16x64xf32>
    tpu.vector_store %arg29[%c0_269, %c128_270], %427 {strides = array<i32>} : memref<32x512xf32, #tpu.memory_space<vmem>>, vector<16x64xf32>,
    %431 = tpu.iota {dimensions = array<i32: 1>} : vector<1x64xi32>
    %c8_i32_271 = arith.constant 8 : i32
    %c0_i32_272 = arith.constant 0 : i32
    %432 = arith.cmpi eq, %c8_i32_271, %c0_i32_272 : i32
    %c1_i32_273 = arith.constant 1 : i32
    %433 = arith.select %432, %c1_i32_273, %c8_i32_271 : i32
    %434 = vector.broadcast %433 : i32 to vector<1x64xi32>
    %435 = arith.remsi %431, %434 : vector<1x64xi32>
    %c0_i32_274 = arith.constant 0 : i32
    %436 = vector.broadcast %c0_i32_274 : i32 to vector<1x64xi32>
    %437 = arith.cmpi ne, %435, %436 : vector<1x64xi32>
    %c0_i32_275 = arith.constant 0 : i32
    %438 = vector.broadcast %c0_i32_275 : i32 to vector<1x64xi32>
    %439 = arith.cmpi slt, %435, %438 : vector<1x64xi32>
    %c0_i32_276 = arith.constant 0 : i32
    %440 = arith.cmpi slt, %433, %c0_i32_276 : i32
    %441 = vector.broadcast %440 : i1 to vector<1x64xi1>
    %442 = vector.broadcast %441 : vector<1x64xi1> to vector<1x64xi1>
    %443 = arith.xori %439, %442 : vector<1x64xi1>
    %444 = arith.andi %443, %437 : vector<1x64xi1>
    %445 = vector.broadcast %433 : i32 to vector<1x64xi32>
    %446 = arith.addi %435, %445 : vector<1x64xi32>
    %447 = arith.select %444, %446, %435 : vector<1x64xi1>, vector<1x64xi32>
    %c0_i32_277 = arith.constant 0 : i32
    %448 = vector.broadcast %c0_i32_277 : i32 to vector<1x64xi32>
    %449 = arith.cmpi ne, %447, %448 : vector<1x64xi32>
    %450 = arith.extui %449 : vector<1x64xi1> to vector<1x64xi32>
    %451 = arith.sitofp %450 : vector<1x64xi32> to vector<1x64xf32>
    %c7_i32_278 = arith.constant 7 : i32
    %452 = vector.broadcast %c7_i32_278 : i32 to vector<1x64xi32>
    %453 = arith.cmpi ne, %447, %452 : vector<1x64xi32>
    %454 = arith.extui %453 : vector<1x64xi1> to vector<1x64xi32>
    %455 = arith.sitofp %454 : vector<1x64xi32> to vector<1x64xf32>
    %c0_279 = arith.constant 0 : index
    %c119_280 = arith.constant 119 : index
    %456 = vector.load %arg29[%c0_279, %c119_280] : memref<32x512xf32, #tpu.memory_space<vmem>>, vector<16x64xf32>
    %457 = vector.broadcast %451 : vector<1x64xf32> to vector<16x64xf32>
    %458 = arith.mulf %456, %457 : vector<16x64xf32>
    %c0_281 = arith.constant 0 : index
    %c120_282 = arith.constant 120 : index
    %459 = vector.load %arg29[%c0_281, %c120_282] : memref<32x512xf32, #tpu.memory_space<vmem>>, vector<16x64xf32>
    %c0_283 = arith.constant 0 : index
    %c121_284 = arith.constant 121 : index
    %460 = vector.load %arg29[%c0_283, %c121_284] : memref<32x512xf32, #tpu.memory_space<vmem>>, vector<16x64xf32>
    %461 = vector.broadcast %455 : vector<1x64xf32> to vector<16x64xf32>
    %462 = arith.mulf %460, %461 : vector<16x64xf32>
    %c0_285 = arith.constant 0 : index
    %c127_286 = arith.constant 127 : index
    %463 = vector.load %arg29[%c0_285, %c127_286] : memref<32x512xf32, #tpu.memory_space<vmem>>, vector<16x64xf32>
    %464 = vector.broadcast %451 : vector<1x64xf32> to vector<16x64xf32>
    %465 = arith.mulf %463, %464 : vector<16x64xf32>
    %c0_287 = arith.constant 0 : index
    %c128_288 = arith.constant 128 : index
    %466 = vector.load %arg29[%c0_287, %c128_288] : memref<32x512xf32, #tpu.memory_space<vmem>>, vector<16x64xf32>
    %c0_289 = arith.constant 0 : index
    %c129_290 = arith.constant 129 : index
    %467 = vector.load %arg29[%c0_289, %c129_290] : memref<32x512xf32, #tpu.memory_space<vmem>>, vector<16x64xf32>
    %468 = vector.broadcast %455 : vector<1x64xf32> to vector<16x64xf32>
    %469 = arith.mulf %467, %468 : vector<16x64xf32>
    %c0_291 = arith.constant 0 : index
    %c135_292 = arith.constant 135 : index
    %470 = vector.load %arg29[%c0_291, %c135_292] : memref<32x512xf32, #tpu.memory_space<vmem>>, vector<16x64xf32>
    %471 = vector.broadcast %451 : vector<1x64xf32> to vector<16x64xf32>
    %472 = arith.mulf %470, %471 : vector<16x64xf32>
    %c0_293 = arith.constant 0 : index
    %c136_294 = arith.constant 136 : index
    %473 = vector.load %arg29[%c0_293, %c136_294] : memref<32x512xf32, #tpu.memory_space<vmem>>, vector<16x64xf32>
    %c0_295 = arith.constant 0 : index
    %c137_296 = arith.constant 137 : index
    %474 = vector.load %arg29[%c0_295, %c137_296] : memref<32x512xf32, #tpu.memory_space<vmem>>, vector<16x64xf32>
    %475 = vector.broadcast %455 : vector<1x64xf32> to vector<16x64xf32>
    %476 = arith.mulf %474, %475 : vector<16x64xf32>
    %477 = tpu.concatenate %458, %459, %462, %465, %466, %469, %472, %473, %476 in 0 : vector<16x64xf32>, vector<16x64xf32>, vector<16x64xf32>, vector<16x64xf32>, vector<16x64xf32>, vector<16x64xf32>, vector<16x64xf32>, vector<16x64xf32>, vector<16x64xf32> -> vector<144x64xf32>
    %cst_297 = arith.constant dense<0.000000e+00> : vector<8x64xf32>
    %478 = tpu.matmul %371, %477, %cst_297 {dimension_numbers = #tpu.dot_dimension_numbers<[1], [0], [0], [1], [0, 0, 1, 1], [], []>} : vector<8x144xf32>, vector<144x64xf32>, vector<8x64xf32> -> vector<8x64xf32>
    %479 = vector.broadcast %372 : vector<8x1xf32> to vector<8x64xf32>
    %480 = arith.addf %478, %479 : vector<8x64xf32>
    %cst_298 = arith.constant 0.000000e+00 : f32
    %481 = vector.broadcast %cst_298 : f32 to vector<8x64xf32>
    %482 = arith.maximumf %480, %481 : vector<8x64xf32>
    %c0_299 = arith.constant 0 : index
    %c0_300 = arith.constant 0 : index
    %483 = vector.load %arg27[%c0_299, %c0_300] : memref<64x256xf32, #tpu.memory_space<vmem>>, vector<64x256xf32>
    %cst_301 = arith.constant dense<0.000000e+00> : vector<8x256xf32>
    %484 = tpu.matmul %482, %483, %cst_301 {dimension_numbers = #tpu.dot_dimension_numbers<[1], [0], [0], [1], [0, 0, 1, 1], [], []>} : vector<8x64xf32>, vector<64x256xf32>, vector<8x256xf32> -> vector<8x256xf32>
    %485 = tpu.concatenate %115, %484 in 0 : vector<8x256xf32>, vector<8x256xf32> -> vector<16x256xf32>
    %c0_302 = arith.constant 0 : index
    %c0_303 = arith.constant 0 : index
    %486 = vector.load %arg18[%c0_302, %c0_303] : memref<8x144xf32, #tpu.memory_space<vmem>>, vector<8x144xf32>
    %c0_304 = arith.constant 0 : index
    %c0_305 = arith.constant 0 : index
    %487 = vector.load %arg19[%c0_304, %c0_305] : memref<8x1xf32, #tpu.memory_space<vmem>>, vector<8x1xf32>
    %c0_306 = arith.constant 0 : index
    %c0_307 = arith.constant 0 : index
    %488 = vector.load %arg20[%c0_306, %c0_307] : memref<8x72xf32, #tpu.memory_space<vmem>>, vector<8x72xf32>
    %c0_308 = arith.constant 0 : index
    %c0_309 = arith.constant 0 : index
    %489 = vector.load %arg21[%c0_308, %c0_309] : memref<8x1xf32, #tpu.memory_space<vmem>>, vector<8x1xf32>
    %cst_310 = arith.constant 0.000000e+00 : f32
    %490 = vector.broadcast %cst_310 : f32 to vector<32x512xf32>
    %c0_311 = arith.constant 0 : index
    %c0_312 = arith.constant 0 : index
    %491 = vector.load %arg29[%c0_311, %c0_312] : memref<32x512xf32, #tpu.memory_space<vmem>>, vector<32x512xf32>
    tpu.vector_store %arg29[%c0_311, %c0_312], %490 {strides = array<i32>} : memref<32x512xf32, #tpu.memory_space<vmem>>, vector<32x512xf32>,
    %c0_313 = arith.constant 0 : index
    %c128_314 = arith.constant 128 : index
    %492 = vector.load %arg29[%c0_313, %c128_314] : memref<32x512xf32, #tpu.memory_space<vmem>>, vector<16x256xf32>
    tpu.vector_store %arg29[%c0_313, %c128_314], %485 {strides = array<i32>} : memref<32x512xf32, #tpu.memory_space<vmem>>, vector<16x256xf32>,
    %493 = tpu.iota {dimensions = array<i32: 1>} : vector<1x256xi32>
    %c16_i32_315 = arith.constant 16 : i32
    %c0_i32_316 = arith.constant 0 : i32
    %494 = arith.cmpi eq, %c16_i32_315, %c0_i32_316 : i32
    %c1_i32_317 = arith.constant 1 : i32
    %495 = arith.select %494, %c1_i32_317, %c16_i32_315 : i32
    %496 = vector.broadcast %495 : i32 to vector<1x256xi32>
    %497 = arith.remsi %493, %496 : vector<1x256xi32>
    %c0_i32_318 = arith.constant 0 : i32
    %498 = vector.broadcast %c0_i32_318 : i32 to vector<1x256xi32>
    %499 = arith.cmpi ne, %497, %498 : vector<1x256xi32>
    %c0_i32_319 = arith.constant 0 : i32
    %500 = vector.broadcast %c0_i32_319 : i32 to vector<1x256xi32>
    %501 = arith.cmpi slt, %497, %500 : vector<1x256xi32>
    %c0_i32_320 = arith.constant 0 : i32
    %502 = arith.cmpi slt, %495, %c0_i32_320 : i32
    %503 = vector.broadcast %502 : i1 to vector<1x256xi1>
    %504 = vector.broadcast %503 : vector<1x256xi1> to vector<1x256xi1>
    %505 = arith.xori %501, %504 : vector<1x256xi1>
    %506 = arith.andi %505, %499 : vector<1x256xi1>
    %507 = vector.broadcast %495 : i32 to vector<1x256xi32>
    %508 = arith.addi %497, %507 : vector<1x256xi32>
    %509 = arith.select %506, %508, %497 : vector<1x256xi1>, vector<1x256xi32>
    %c0_i32_321 = arith.constant 0 : i32
    %510 = vector.broadcast %c0_i32_321 : i32 to vector<1x256xi32>
    %511 = arith.cmpi ne, %509, %510 : vector<1x256xi32>
    %512 = arith.extui %511 : vector<1x256xi1> to vector<1x256xi32>
    %513 = arith.sitofp %512 : vector<1x256xi32> to vector<1x256xf32>
    %c15_i32_322 = arith.constant 15 : i32
    %514 = vector.broadcast %c15_i32_322 : i32 to vector<1x256xi32>
    %515 = arith.cmpi ne, %509, %514 : vector<1x256xi32>
    %516 = arith.extui %515 : vector<1x256xi1> to vector<1x256xi32>
    %517 = arith.sitofp %516 : vector<1x256xi32> to vector<1x256xf32>
    %c0_323 = arith.constant 0 : index
    %c111_324 = arith.constant 111 : index
    %518 = vector.load %arg29[%c0_323, %c111_324] : memref<32x512xf32, #tpu.memory_space<vmem>>, vector<16x256xf32>
    %519 = vector.broadcast %513 : vector<1x256xf32> to vector<16x256xf32>
    %520 = arith.mulf %518, %519 : vector<16x256xf32>
    %c0_325 = arith.constant 0 : index
    %c112_326 = arith.constant 112 : index
    %521 = vector.load %arg29[%c0_325, %c112_326] : memref<32x512xf32, #tpu.memory_space<vmem>>, vector<16x256xf32>
    %c0_327 = arith.constant 0 : index
    %c113_328 = arith.constant 113 : index
    %522 = vector.load %arg29[%c0_327, %c113_328] : memref<32x512xf32, #tpu.memory_space<vmem>>, vector<16x256xf32>
    %523 = vector.broadcast %517 : vector<1x256xf32> to vector<16x256xf32>
    %524 = arith.mulf %522, %523 : vector<16x256xf32>
    %c0_329 = arith.constant 0 : index
    %c127_330 = arith.constant 127 : index
    %525 = vector.load %arg29[%c0_329, %c127_330] : memref<32x512xf32, #tpu.memory_space<vmem>>, vector<16x256xf32>
    %526 = vector.broadcast %513 : vector<1x256xf32> to vector<16x256xf32>
    %527 = arith.mulf %525, %526 : vector<16x256xf32>
    %c0_331 = arith.constant 0 : index
    %c128_332 = arith.constant 128 : index
    %528 = vector.load %arg29[%c0_331, %c128_332] : memref<32x512xf32, #tpu.memory_space<vmem>>, vector<16x256xf32>
    %c0_333 = arith.constant 0 : index
    %c129_334 = arith.constant 129 : index
    %529 = vector.load %arg29[%c0_333, %c129_334] : memref<32x512xf32, #tpu.memory_space<vmem>>, vector<16x256xf32>
    %530 = vector.broadcast %517 : vector<1x256xf32> to vector<16x256xf32>
    %531 = arith.mulf %529, %530 : vector<16x256xf32>
    %c0_335 = arith.constant 0 : index
    %c143_336 = arith.constant 143 : index
    %532 = vector.load %arg29[%c0_335, %c143_336] : memref<32x512xf32, #tpu.memory_space<vmem>>, vector<16x256xf32>
    %533 = vector.broadcast %513 : vector<1x256xf32> to vector<16x256xf32>
    %534 = arith.mulf %532, %533 : vector<16x256xf32>
    %c0_337 = arith.constant 0 : index
    %c144_338 = arith.constant 144 : index
    %535 = vector.load %arg29[%c0_337, %c144_338] : memref<32x512xf32, #tpu.memory_space<vmem>>, vector<16x256xf32>
    %c0_339 = arith.constant 0 : index
    %c145_340 = arith.constant 145 : index
    %536 = vector.load %arg29[%c0_339, %c145_340] : memref<32x512xf32, #tpu.memory_space<vmem>>, vector<16x256xf32>
    %537 = vector.broadcast %517 : vector<1x256xf32> to vector<16x256xf32>
    %538 = arith.mulf %536, %537 : vector<16x256xf32>
    %539 = tpu.concatenate %520, %521, %524, %527, %528, %531, %534, %535, %538 in 0 : vector<16x256xf32>, vector<16x256xf32>, vector<16x256xf32>, vector<16x256xf32>, vector<16x256xf32>, vector<16x256xf32>, vector<16x256xf32>, vector<16x256xf32>, vector<16x256xf32> -> vector<144x256xf32>
    %cst_341 = arith.constant dense<0.000000e+00> : vector<8x256xf32>
    %540 = tpu.matmul %486, %539, %cst_341 {dimension_numbers = #tpu.dot_dimension_numbers<[1], [0], [0], [1], [0, 0, 1, 1], [], []>} : vector<8x144xf32>, vector<144x256xf32>, vector<8x256xf32> -> vector<8x256xf32>
    %541 = vector.broadcast %487 : vector<8x1xf32> to vector<8x256xf32>
    %542 = arith.addf %540, %541 : vector<8x256xf32>
    %cst_342 = arith.constant 0.000000e+00 : f32
    %543 = vector.broadcast %cst_342 : f32 to vector<8x256xf32>
    %544 = arith.maximumf %542, %543 : vector<8x256xf32>
    %cst_343 = arith.constant 0.000000e+00 : f32
    %545 = vector.broadcast %cst_343 : f32 to vector<32x512xf32>
    %c0_344 = arith.constant 0 : index
    %c0_345 = arith.constant 0 : index
    %546 = vector.load %arg29[%c0_344, %c0_345] : memref<32x512xf32, #tpu.memory_space<vmem>>, vector<32x512xf32>
    tpu.vector_store %arg29[%c0_344, %c0_345], %545 {strides = array<i32>} : memref<32x512xf32, #tpu.memory_space<vmem>>, vector<32x512xf32>,
    %c0_346 = arith.constant 0 : index
    %c128_347 = arith.constant 128 : index
    %547 = vector.load %arg29[%c0_346, %c128_347] : memref<32x512xf32, #tpu.memory_space<vmem>>, vector<8x256xf32>
    tpu.vector_store %arg29[%c0_346, %c128_347], %544 {strides = array<i32>} : memref<32x512xf32, #tpu.memory_space<vmem>>, vector<8x256xf32>,
    %548 = tpu.iota {dimensions = array<i32: 1>} : vector<1x256xi32>
    %c16_i32_348 = arith.constant 16 : i32
    %c0_i32_349 = arith.constant 0 : i32
    %549 = arith.cmpi eq, %c16_i32_348, %c0_i32_349 : i32
    %c1_i32_350 = arith.constant 1 : i32
    %550 = arith.select %549, %c1_i32_350, %c16_i32_348 : i32
    %551 = vector.broadcast %550 : i32 to vector<1x256xi32>
    %552 = arith.remsi %548, %551 : vector<1x256xi32>
    %c0_i32_351 = arith.constant 0 : i32
    %553 = vector.broadcast %c0_i32_351 : i32 to vector<1x256xi32>
    %554 = arith.cmpi ne, %552, %553 : vector<1x256xi32>
    %c0_i32_352 = arith.constant 0 : i32
    %555 = vector.broadcast %c0_i32_352 : i32 to vector<1x256xi32>
    %556 = arith.cmpi slt, %552, %555 : vector<1x256xi32>
    %c0_i32_353 = arith.constant 0 : i32
    %557 = arith.cmpi slt, %550, %c0_i32_353 : i32
    %558 = vector.broadcast %557 : i1 to vector<1x256xi1>
    %559 = vector.broadcast %558 : vector<1x256xi1> to vector<1x256xi1>
    %560 = arith.xori %556, %559 : vector<1x256xi1>
    %561 = arith.andi %560, %554 : vector<1x256xi1>
    %562 = vector.broadcast %550 : i32 to vector<1x256xi32>
    %563 = arith.addi %552, %562 : vector<1x256xi32>
    %564 = arith.select %561, %563, %552 : vector<1x256xi1>, vector<1x256xi32>
    %c0_i32_354 = arith.constant 0 : i32
    %565 = vector.broadcast %c0_i32_354 : i32 to vector<1x256xi32>
    %566 = arith.cmpi ne, %564, %565 : vector<1x256xi32>
    %567 = arith.extui %566 : vector<1x256xi1> to vector<1x256xi32>
    %568 = arith.sitofp %567 : vector<1x256xi32> to vector<1x256xf32>
    %c15_i32_355 = arith.constant 15 : i32
    %569 = vector.broadcast %c15_i32_355 : i32 to vector<1x256xi32>
    %570 = arith.cmpi ne, %564, %569 : vector<1x256xi32>
    %571 = arith.extui %570 : vector<1x256xi1> to vector<1x256xi32>
    %572 = arith.sitofp %571 : vector<1x256xi32> to vector<1x256xf32>
    %c0_356 = arith.constant 0 : index
    %c111_357 = arith.constant 111 : index
    %573 = vector.load %arg29[%c0_356, %c111_357] : memref<32x512xf32, #tpu.memory_space<vmem>>, vector<8x256xf32>
    %574 = vector.broadcast %568 : vector<1x256xf32> to vector<8x256xf32>
    %575 = arith.mulf %573, %574 : vector<8x256xf32>
    %c0_358 = arith.constant 0 : index
    %c112_359 = arith.constant 112 : index
    %576 = vector.load %arg29[%c0_358, %c112_359] : memref<32x512xf32, #tpu.memory_space<vmem>>, vector<8x256xf32>
    %c0_360 = arith.constant 0 : index
    %c113_361 = arith.constant 113 : index
    %577 = vector.load %arg29[%c0_360, %c113_361] : memref<32x512xf32, #tpu.memory_space<vmem>>, vector<8x256xf32>
    %578 = vector.broadcast %572 : vector<1x256xf32> to vector<8x256xf32>
    %579 = arith.mulf %577, %578 : vector<8x256xf32>
    %c0_362 = arith.constant 0 : index
    %c127_363 = arith.constant 127 : index
    %580 = vector.load %arg29[%c0_362, %c127_363] : memref<32x512xf32, #tpu.memory_space<vmem>>, vector<8x256xf32>
    %581 = vector.broadcast %568 : vector<1x256xf32> to vector<8x256xf32>
    %582 = arith.mulf %580, %581 : vector<8x256xf32>
    %c0_364 = arith.constant 0 : index
    %c128_365 = arith.constant 128 : index
    %583 = vector.load %arg29[%c0_364, %c128_365] : memref<32x512xf32, #tpu.memory_space<vmem>>, vector<8x256xf32>
    %c0_366 = arith.constant 0 : index
    %c129_367 = arith.constant 129 : index
    %584 = vector.load %arg29[%c0_366, %c129_367] : memref<32x512xf32, #tpu.memory_space<vmem>>, vector<8x256xf32>
    %585 = vector.broadcast %572 : vector<1x256xf32> to vector<8x256xf32>
    %586 = arith.mulf %584, %585 : vector<8x256xf32>
    %c0_368 = arith.constant 0 : index
    %c143_369 = arith.constant 143 : index
    %587 = vector.load %arg29[%c0_368, %c143_369] : memref<32x512xf32, #tpu.memory_space<vmem>>, vector<8x256xf32>
    %588 = vector.broadcast %568 : vector<1x256xf32> to vector<8x256xf32>
    %589 = arith.mulf %587, %588 : vector<8x256xf32>
    %c0_370 = arith.constant 0 : index
    %c144_371 = arith.constant 144 : index
    %590 = vector.load %arg29[%c0_370, %c144_371] : memref<32x512xf32, #tpu.memory_space<vmem>>, vector<8x256xf32>
    %c0_372 = arith.constant 0 : index
    %c145_373 = arith.constant 145 : index
    %591 = vector.load %arg29[%c0_372, %c145_373] : memref<32x512xf32, #tpu.memory_space<vmem>>, vector<8x256xf32>
    %592 = vector.broadcast %572 : vector<1x256xf32> to vector<8x256xf32>
    %593 = arith.mulf %591, %592 : vector<8x256xf32>
    %594 = tpu.concatenate %575, %576, %579, %582, %583, %586, %589, %590, %593 in 0 : vector<8x256xf32>, vector<8x256xf32>, vector<8x256xf32>, vector<8x256xf32>, vector<8x256xf32>, vector<8x256xf32>, vector<8x256xf32>, vector<8x256xf32>, vector<8x256xf32> -> vector<72x256xf32>
    %cst_374 = arith.constant dense<0.000000e+00> : vector<8x256xf32>
    %595 = tpu.matmul %488, %594, %cst_374 {dimension_numbers = #tpu.dot_dimension_numbers<[1], [0], [0], [1], [0, 0, 1, 1], [], []>} : vector<8x72xf32>, vector<72x256xf32>, vector<8x256xf32> -> vector<8x256xf32>
    %596 = vector.broadcast %489 : vector<8x1xf32> to vector<8x256xf32>
    %597 = arith.addf %595, %596 : vector<8x256xf32>
    %cst_375 = arith.constant 0.000000e+00 : f32
    %598 = vector.broadcast %cst_375 : f32 to vector<8x256xf32>
    %599 = arith.maximumf %597, %598 : vector<8x256xf32>
    %c0_376 = arith.constant 0 : index
    %c0_377 = arith.constant 0 : index
    %600 = vector.load %arg22[%c0_376, %c0_377] : memref<3x8xf32, #tpu.memory_space<vmem>>, vector<3x8xf32>
    %cst_378 = arith.constant dense<0.000000e+00> : vector<3x256xf32>
    %601 = tpu.matmul %600, %599, %cst_378 {dimension_numbers = #tpu.dot_dimension_numbers<[1], [0], [0], [1], [0, 0, 1, 1], [], []>} : vector<3x8xf32>, vector<8x256xf32>, vector<3x256xf32> -> vector<3x256xf32>
    %c0_379 = arith.constant 0 : index
    %c0_380 = arith.constant 0 : index
    %602 = vector.load %arg23[%c0_379, %c0_380] : memref<3x1xf32, #tpu.memory_space<vmem>>, vector<3x1xf32>
    %603 = vector.broadcast %602 : vector<3x1xf32> to vector<3x256xf32>
    %604 = arith.addf %601, %603 : vector<3x256xf32>
    %c0_381 = arith.constant 0 : index
    %c0_382 = arith.constant 0 : index
    %c0_383 = arith.constant 0 : index
    %605 = vector.load %arg28[%c0_381, %c0_382, %c0_383] : memref<1x3x256xf32, #tpu.memory_space<vmem>>, vector<1x3x256xf32>
    %606 = vector.shape_cast %605 : vector<1x3x256xf32> to vector<3x256xf32>
    %607 = vector.shape_cast %604 : vector<3x256xf32> to vector<1x3x256xf32>
    tpu.vector_store %arg28[%c0_381, %c0_382, %c0_383], %607 {strides = array<i32>} : memref<1x3x256xf32, #tpu.memory_space<vmem>>, vector<1x3x256xf32>,
    return
  }
  func.func @transform_0(%arg0: i32) -> (i32, i32, i32) {
    %c0_i32 = arith.constant 0 : i32
    %c0_i32_0 = arith.constant 0 : i32
    %c0_i32_1 = arith.constant 0 : i32
    return %arg0, %c0_i32, %c0_i32_0 : i32, i32, i32
  }
  func.func @transform_1(%arg0: i32) -> (i32, i32) {
    %c0_i32 = arith.constant 0 : i32
    %c0_i32_0 = arith.constant 0 : i32
    %c0_i32_1 = arith.constant 0 : i32
    return %c0_i32, %c0_i32_0 : i32, i32
  }
  func.func @transform_2(%arg0: i32) -> (i32, i32) {
    %c0_i32 = arith.constant 0 : i32
    %c0_i32_0 = arith.constant 0 : i32
    %c0_i32_1 = arith.constant 0 : i32
    return %c0_i32, %c0_i32_0 : i32, i32
  }
  func.func @transform_3(%arg0: i32) -> (i32, i32) {
    %c0_i32 = arith.constant 0 : i32
    %c0_i32_0 = arith.constant 0 : i32
    %c0_i32_1 = arith.constant 0 : i32
    return %c0_i32, %c0_i32_0 : i32, i32
  }
  func.func @transform_4(%arg0: i32) -> (i32, i32) {
    %c0_i32 = arith.constant 0 : i32
    %c0_i32_0 = arith.constant 0 : i32
    %c0_i32_1 = arith.constant 0 : i32
    return %c0_i32, %c0_i32_0 : i32, i32
  }
  func.func @transform_5(%arg0: i32) -> (i32, i32) {
    %c0_i32 = arith.constant 0 : i32
    %c0_i32_0 = arith.constant 0 : i32
    %c0_i32_1 = arith.constant 0 : i32
    return %c0_i32, %c0_i32_0 : i32, i32
  }
  func.func @transform_6(%arg0: i32) -> (i32, i32) {
    %c0_i32 = arith.constant 0 : i32
    %c0_i32_0 = arith.constant 0 : i32
    %c0_i32_1 = arith.constant 0 : i32
    return %c0_i32, %c0_i32_0 : i32, i32
  }
  func.func @transform_7(%arg0: i32) -> (i32, i32) {
    %c0_i32 = arith.constant 0 : i32
    %c0_i32_0 = arith.constant 0 : i32
    %c0_i32_1 = arith.constant 0 : i32
    return %c0_i32, %c0_i32_0 : i32, i32
  }
  func.func @transform_8(%arg0: i32) -> (i32, i32) {
    %c0_i32 = arith.constant 0 : i32
    %c0_i32_0 = arith.constant 0 : i32
    %c0_i32_1 = arith.constant 0 : i32
    return %c0_i32, %c0_i32_0 : i32, i32
  }
  func.func @transform_9(%arg0: i32) -> (i32, i32) {
    %c0_i32 = arith.constant 0 : i32
    %c0_i32_0 = arith.constant 0 : i32
    %c0_i32_1 = arith.constant 0 : i32
    return %c0_i32, %c0_i32_0 : i32, i32
  }
  func.func @transform_10(%arg0: i32) -> (i32, i32) {
    %c0_i32 = arith.constant 0 : i32
    %c0_i32_0 = arith.constant 0 : i32
    %c0_i32_1 = arith.constant 0 : i32
    return %c0_i32, %c0_i32_0 : i32, i32
  }
  func.func @transform_11(%arg0: i32) -> (i32, i32) {
    %c0_i32 = arith.constant 0 : i32
    %c0_i32_0 = arith.constant 0 : i32
    %c0_i32_1 = arith.constant 0 : i32
    return %c0_i32, %c0_i32_0 : i32, i32
  }
  func.func @transform_12(%arg0: i32) -> (i32, i32) {
    %c0_i32 = arith.constant 0 : i32
    %c0_i32_0 = arith.constant 0 : i32
    %c0_i32_1 = arith.constant 0 : i32
    return %c0_i32, %c0_i32_0 : i32, i32
  }
  func.func @transform_13(%arg0: i32) -> (i32, i32) {
    %c0_i32 = arith.constant 0 : i32
    %c0_i32_0 = arith.constant 0 : i32
    %c0_i32_1 = arith.constant 0 : i32
    return %c0_i32, %c0_i32_0 : i32, i32
  }
  func.func @transform_14(%arg0: i32) -> (i32, i32) {
    %c0_i32 = arith.constant 0 : i32
    %c0_i32_0 = arith.constant 0 : i32
    %c0_i32_1 = arith.constant 0 : i32
    return %c0_i32, %c0_i32_0 : i32, i32
  }
  func.func @transform_15(%arg0: i32) -> (i32, i32) {
    %c0_i32 = arith.constant 0 : i32
    %c0_i32_0 = arith.constant 0 : i32
    %c0_i32_1 = arith.constant 0 : i32
    return %c0_i32, %c0_i32_0 : i32, i32
  }
  func.func @transform_16(%arg0: i32) -> (i32, i32) {
    %c0_i32 = arith.constant 0 : i32
    %c0_i32_0 = arith.constant 0 : i32
    %c0_i32_1 = arith.constant 0 : i32
    return %c0_i32, %c0_i32_0 : i32, i32
  }
  func.func @transform_17(%arg0: i32) -> (i32, i32) {
    %c0_i32 = arith.constant 0 : i32
    %c0_i32_0 = arith.constant 0 : i32
    %c0_i32_1 = arith.constant 0 : i32
    return %c0_i32, %c0_i32_0 : i32, i32
  }
  func.func @transform_18(%arg0: i32) -> (i32, i32) {
    %c0_i32 = arith.constant 0 : i32
    %c0_i32_0 = arith.constant 0 : i32
    %c0_i32_1 = arith.constant 0 : i32
    return %c0_i32, %c0_i32_0 : i32, i32
  }
  func.func @transform_19(%arg0: i32) -> (i32, i32) {
    %c0_i32 = arith.constant 0 : i32
    %c0_i32_0 = arith.constant 0 : i32
    %c0_i32_1 = arith.constant 0 : i32
    return %c0_i32, %c0_i32_0 : i32, i32
  }
  func.func @transform_20(%arg0: i32) -> (i32, i32) {
    %c0_i32 = arith.constant 0 : i32
    %c0_i32_0 = arith.constant 0 : i32
    %c0_i32_1 = arith.constant 0 : i32
    return %c0_i32, %c0_i32_0 : i32, i32
  }
  func.func @transform_21(%arg0: i32) -> (i32, i32) {
    %c0_i32 = arith.constant 0 : i32
    %c0_i32_0 = arith.constant 0 : i32
    %c0_i32_1 = arith.constant 0 : i32
    return %c0_i32, %c0_i32_0 : i32, i32
  }
  func.func @transform_22(%arg0: i32) -> (i32, i32) {
    %c0_i32 = arith.constant 0 : i32
    %c0_i32_0 = arith.constant 0 : i32
    %c0_i32_1 = arith.constant 0 : i32
    return %c0_i32, %c0_i32_0 : i32, i32
  }
  func.func @transform_23(%arg0: i32) -> (i32, i32) {
    %c0_i32 = arith.constant 0 : i32
    %c0_i32_0 = arith.constant 0 : i32
    %c0_i32_1 = arith.constant 0 : i32
    return %c0_i32, %c0_i32_0 : i32, i32
  }
  func.func @transform_24(%arg0: i32) -> (i32, i32) {
    %c0_i32 = arith.constant 0 : i32
    %c0_i32_0 = arith.constant 0 : i32
    %c0_i32_1 = arith.constant 0 : i32
    return %c0_i32, %c0_i32_0 : i32, i32
  }
  func.func @transform_25(%arg0: i32) -> (i32, i32) {
    %c0_i32 = arith.constant 0 : i32
    %c0_i32_0 = arith.constant 0 : i32
    %c0_i32_1 = arith.constant 0 : i32
    return %c0_i32, %c0_i32_0 : i32, i32
  }
  func.func @transform_26(%arg0: i32) -> (i32, i32) {
    %c0_i32 = arith.constant 0 : i32
    %c0_i32_0 = arith.constant 0 : i32
    %c0_i32_1 = arith.constant 0 : i32
    return %c0_i32, %c0_i32_0 : i32, i32
  }
  func.func @transform_27(%arg0: i32) -> (i32, i32, i32) {
    %c0_i32 = arith.constant 0 : i32
    %c0_i32_0 = arith.constant 0 : i32
    %c0_i32_1 = arith.constant 0 : i32
    return %arg0, %c0_i32, %c0_i32_0 : i32, i32, i32
  }
}

</mosaic_0001>

<bundles_post_ra>
// kernel: arbitary_unet_forward.1
= control target key start
LH: loop header
LB: loop body
LE: loop exit
PB: predicated region body
PF: predicated region fallthrough
CT: control target
= control target key end

     0   :  { %s7539_s0 = inlined_call_operand.vmem [shape: f32[2,8,256], index: 0, kind: input, shape index: {}]   ;;  %s7540_s1 = inlined_call_operand.vmem [shape: f32[8,72], index: 1, kind: input, shape index: {}]   ;;  %s7541_s2 = inlined_call_operand.vmem [shape: f32[8,1], index: 2, kind: input, shape index: {}]   ;;  %s7542_s3 = inlined_call_operand.vmem [shape: f32[8,72], index: 3, kind: input, shape index: {}]   ;;  %s7543_s4 = inlined_call_operand.vmem [shape: f32[8,1], index: 4, kind: input, shape index: {}]   ;;  %s7544_s5 = inlined_call_operand.vmem [shape: f32[16,72], index: 5, kind: input, shape index: {}]   ;;  %s7545_s6 = inlined_call_operand.vmem [shape: f32[16,1], index: 6, kind: input, shape index: {}]   ;;  %s7546_s7 = inlined_call_operand.vmem [shape: f32[16,144], index: 7, kind: input, shape index: {}]   ;;  %s7547_s8 = inlined_call_operand.vmem [shape: f32[16,1], index: 8, kind: input, shape index: {}]   ;;  %s7548_s9 = inlined_call_operand.vmem [shape: f32[16,144], index: 9, kind: input, shape index: {}]   ;;  %s7549_s10 = inlined_call_operand.vmem [shape: f32[16,1], index: 10, kind: input, shape index: {}]   ;;  %s7550_s11 = inlined_call_operand.vmem [shape: f32[16,144], index: 11, kind: input, shape index: {}]   ;;  %s7551_s12 = inlined_call_operand.vmem [shape: f32[16,1], index: 12, kind: input, shape index: {}]   ;;  %s7552_s13 = inlined_call_operand.vmem [shape: f32[16,288], index: 13, kind: input, shape index: {}]   ;;  %s7553_s14 = inlined_call_operand.vmem [shape: f32[16,1], index: 14, kind: input, shape index: {}]   ;;  %s7554_s15 = inlined_call_operand.vmem [shape: f32[8,144], index: 15, kind: input, shape index: {}]   ;;  %s7555_s16 = inlined_call_operand.vmem [shape: f32[8,1], index: 16, kind: input, shape index: {}]   ;;  %s7556_s17 = inlined_call_operand.vmem [shape: f32[8,144], index: 17, kind: input, shape index: {}]   ;;  %s7557_s18 = inlined_call_operand.vmem [shape: f32[8,1], index: 18, kind: input, shape index: {}]   ;;  %s7558_s19 = inlined_call_operand.vmem [shape: f32[8,72], index: 19, kind: input, shape index: {}]   ;;  %s7559_s20 = inlined_call_operand.vmem [shape: f32[8,1], index: 20, kind: input, shape index: {}]   ;;  %s7560_s21 = inlined_call_operand.vmem [shape: f32[3,8], index: 21, kind: input, shape index: {}]   ;;  %s7561_s22 = inlined_call_operand.vmem [shape: f32[3,1], index: 22, kind: input, shape index: {}]   ;;  %s7562_s23 = inlined_call_operand.vmem [shape: f32[256,64], index: 23, kind: input, shape index: {}]   ;;  %s7563_s24 = inlined_call_operand.vmem [shape: f32[64,16], index: 24, kind: input, shape index: {}]   ;;  %s7564_s25 = inlined_call_operand.vmem [shape: f32[16,64], index: 25, kind: input, shape index: {}]   ;;  %s7565_s26 = inlined_call_operand.vmem [shape: f32[64,256], index: 26, kind: input, shape index: {}]   ;;  %s7566_s27 = inlined_call_operand.vmem [shape: f32[2,3,256], index: 27, kind: output, shape index: {}]  }
   0x1   :  { %7623 = sst [smem:[#allocation7_spill]] %s7539_s0 }
   0x2   :  { %7624 = sst [smem:[#allocation8_spill]] %s7540_s1 }
   0x3   :  { %7625 = sst [smem:[#allocation9_spill]] %s7541_s2 }
   0x4   :  { %7626 = sst [smem:[#allocation10_spill]] %s7542_s3 }
   0x5   :  { %7627 = sst [smem:[#allocation11_spill]] %s7543_s4 }
   0x6   :  { %7628 = sst [smem:[#allocation12_spill]] %s7544_s5 }
   0x7   :  { %7629 = sst [smem:[#allocation13_spill]] %s7545_s6 }
   0x8   :  { %7630 = sst [smem:[#allocation14_spill]] %s7546_s7  ;;  %s5384_s7 = smov 0  }
   0x9   :  { %7631 = sst [smem:[#allocation15_spill]] %s7547_s8 }
   0xa   :  { %7632 = sst [smem:[#allocation16_spill]] %s7548_s9 }
   0xb   :  { %7633 = sst [smem:[#allocation17_spill]] %s7549_s10 }
   0xc   :  { %7634 = sst [smem:[#allocation18_spill]] %s7550_s11 }
   0xd   :  { %7635 = sst [smem:[#allocation19_spill]] %s7551_s12 }
   0xe   :  { %7636 = sst [smem:[#allocation20_spill]] %s7552_s13 }
   0xf   :  { %7637 = sst [smem:[#allocation21_spill]] %s7553_s14 }
  0x10   :  { %7638 = sst [smem:[#allocation22_spill]] %s7554_s15 }
  0x11   :  { %7639 = sst [smem:[#allocation23_spill]] %s7562_s23 }
  0x12 LB: > { %7640 = sst [smem:[#allocation3_spill]] %s5216_s7  ;;  %s4881_s4 = sadd.s32 4294967295, %s5216_s7   ;;  %s5216_s7 = sphi %s5384_s7, %s37_s7  }
  0x13   : > { %p4885_p0 = scmp.ge.s32.totalorder %s5216_s7, 1  ;;  %p737_p1 = scmp.lt.s32.totalorder %s5216_s7, 3 }
  0x15   : > { %p738_p2 = pnand %p4885_p0, %p737_p1 }
  0x17   : > { %741 = sbr.rel (%p738_p2) target bundleno = 6464 (0x1940), region = 128 }
  0x1c   : > { %v843_v0 = vlaneseq  ;;  %v5218_v1 = vmov 0.0   ;;  %p809_p3 = scmp.lt.s32.totalorder %s4881_s4, 1  ;;  %s7574_s8 = smov 17   ;;  %vm954_vm4 = vcmask 138240   ;;  %vm930_vm5 = vcmask 7168  }
  0x1d   : > { %1931 = vst [vmem:[#allocation2 + $0x28] sm:$0xff] %v5218_v1  ;;  %3066 = vst [vmem:[#allocation2 + $0x48] sm:$0xff] %v5218_v1  ;;  %1214 = vmatprep.mubr.f32.mxu0 %v5218_v1  ;;  %1508 = vmatprep.mubr.f32.mxu1 %v5218_v1  ;;  %s7586_s30 = smov 1   ;;  %s5221_s5 = smov 15   ;;  %vm942_vm6 = vcmask 121856   ;;  %vm917_vm7 = vcmask 1039360  }
  0x1e   : > { %3070 = vst [vmem:[#allocation2 + $0x68] sm:$0xff] %v5218_v1  ;;  %4455 = vst [vmem:[#allocation2 + $0x50] sm:$0xff] %v5218_v1  ;;  %v5399_v2 = vand.u32 127, %v843_v0  ;;  %s7684_s4 = smov (!%p809_p3, %s4881_s4), 1  ;;  %s7588_s28 = smov 127   ;;  %vm905_vm8 = vcmask 924672  }
  0x1f   : > { %1690 = vst [vmem:[#allocation2 + $0x8] sm:$0xff] %v5218_v1  ;;  %s4921_s9 = sshll.u32 %s7684_s4, 4  ;;  %s7641_s29 = sld [smem:[#allocation7_spill]]  ;;  %vm1033_vm9 = vcmask 777216   ;;  %v5231_v55 = vmov 0   ;;  %vm891_vm10 = vcmask 908288  }
  0x20   : > { %v845_v3 = vadd.s32 128, %v5399_v2  ;;  %v850_v4 = vand.u32 15, %v5399_v2  ;;  %s5223_s6 = smov 113   ;;  %s7580_s11 = smov 95   ;;  %5149 = vset.pattern.permute.xlu0 %v5231_v55  ;;  %5165 = vset.pattern.permute.xlu1 %v5231_v55  ;;  %vm1045_vm11 = vcmask 769024   ;;  %vm1023_vm12 = vcmask 785408  }
  0x21   : > { %s7594_s2 = smov 111   ;;  %s7576_s3 = smov 94   ;;  %vm1011_vm13 = vcmask 900096   ;;  %vm994_vm14 = vcmask 916480   ;;  %vm982_vm15 = vcmask 1031168  }
  0x22   : > { %v857_v5 = vand.u32 15, %v845_v3  ;;  %vm876_vm0 = vcmp.ne.s32.totalorder %v850_v4, 15  ;;  %vm870_vm1 = vcmp.ne.s32.totalorder %v850_v4, 0  ;;  %s7592_s0 = smov 112   ;;  %s7584_s10 = smov 126  }
  0x23   : > { %v4892_v6 = vsel %vm876_vm0, 1.0, %v5218_v1  ;;  %v4890_v8 = vsel %vm870_vm1, 1.0, %v5218_v1  ;;  %vm1146_vm0 = vcmask 588800   ;;  %s7649_s23 = sld [smem:[#allocation23_spill]]  ;;  %s5238_s7 = smov 3  }
  0x24   : > { %vm877_vm2 = vcmp.ne.s32.totalorder %v857_v5, 15  ;;  %vm871_vm3 = vcmp.ne.s32.totalorder %v857_v5, 0  ;;  %s7668_s12 = sld [smem:[#allocation19_spill]] }
  0x25   : > { %v4893_v7 = vsel %vm877_vm2, 1.0, %v5218_v1  ;;  %v4891_v9 = vsel %vm871_vm3, 1.0, %v5218_v1  ;;  %s813_s1 = scalar_lea.vmem %s7641_s29, %s4921_s9  ;;  %s7582_s9 = smov 110   ;;  %vm1705_vm3 = vcmask 523264  }
  0x26   : > { %v5119_v10 = vpack.i.bf16 %v4893_v7, %v4892_v6  ;;  %v5124_v11 = vpack.i.bf16 %v4891_v9, %v4890_v8  ;;  %v5416_v12 = vld [vmem:[%s813_s1 + $0x8] sm:$0xff]  ;;  %v5420_v13 = vld [vmem:[%s813_s1] sm:$0xff]  ;;  %s7650_s29 = smov 1   ;;  %s5234_s1 = smov 121  }
  0x27   : > { %s7672_s13 = sld [smem:[#allocation20_spill]] }
  0x28   : > { %5120 = vrot.lane.b32.xlu0 %v5119_v10, %s7574_s8  ;;  %5130 = vrot.lane.b32.xlu1 %v5119_v10, %s7586_s30  ;;  %s7651_s30 = smov 126   ;;  %s7673_s14 = sld [smem:[#allocation21_spill]] }
  0x29   : > { %s7674_s15 = sld [smem:[#allocation22_spill]] }
  0x2c   : > { %5125 = vrot.lane.b32.xlu0 %v5124_v11, %s5221_s5  ;;  %5135 = vrot.lane.b32.xlu1 %v5124_v11, %s7588_s28  ;;  %s7578_s5 = smov 96  }
  0x30   : > { %5140 = vrot.lane.b32.xlu0 %v5119_v10, %s5223_s6  ;;  %1029 = vrot.lane.b32.xlu1 %v5416_v12, %s7580_s11  ;;  %s7645_s6 = sld [smem:[#allocation9_spill]] }
  0x34   : > { %1027 = vrot.lane.b32.xlu0 %v5420_v13, %s7580_s11  ;;  %997 = vrot.lane.b32.xlu1 %v5420_v13, %s7594_s2 }
  0x38   : > { %1031 = vrot.lane.b32.xlu0 %v5218_v1, %s7580_s11  ;;  %5145 = vrot.lane.b32.xlu1 %v5124_v11, %s7594_s2 }
  0x3c   : > { %999 = vrot.lane.b32.xlu0 %v5416_v12, %s7594_s2 }
  0x9a   : > { %v5121_v14 = vpop.permute.xlu0 %5120  ;;  %v5131_v15 = vpop.permute.xlu1 %5130 }
  0x9b   : > { %v5431_v16 = vunpack.i.l.bf16 %v5121_v14  ;;  %v5433_v17 = vunpack.i.l.bf16 %v5131_v15  ;;  %v5453_v28 = vunpack.i.h.bf16 %v5121_v14  ;;  %v5455_v29 = vunpack.i.h.bf16 %v5131_v15 }
  0x9d   : > { %v959_v18 = vmul.f32 %v5431_v16, %v5420_v13  ;;  %v935_v19 = vmul.f32 %v5433_v17, %v5420_v13  ;;  %v5469_v33 = vmul.f32 0.0, %v5453_v28  ;;  %v5472_v34 = vmul.f32 0.0, %v5455_v29 }
  0x9e   : > { %v5126_v20 = vpop.permute.xlu0 %5125  ;;  %v5136_v21 = vpop.permute.xlu1 %5135  ;;  %v5488_v38 = vsel %vm954_vm4, %v5431_v16, %v5453_v28  ;;  %v5499_v41 = vsel %vm930_vm5, %v5433_v17, %v5455_v29  ;;  %vm1776_vm5 = vcmask 982016  }
  0x9f   : > { %v5439_v22 = vunpack.i.l.bf16 %v5126_v20  ;;  %1039 = vrot.lane.b32.xlu1 %v959_v18, %s7576_s3  ;;  %v5442_v23 = vunpack.i.l.bf16 %v5136_v21  ;;  %1005 = vrot.lane.b32.xlu0 %v935_v19, %s7582_s9  ;;  %v5464_v31 = vunpack.i.h.bf16 %v5126_v20  ;;  %v5466_v32 = vunpack.i.h.bf16 %v5136_v21 }
  0xa0   : > { %v960_v40 = vmul.f32 %v5488_v38, %v5416_v12  ;;  %v936_v43 = vmul.f32 %v5499_v41, %v5416_v12 }
  0xa1   : > { %v947_v24 = vmul.f32 %v5439_v22, %v5420_v13  ;;  %v5451_v27 = vmul.f32 0.0, %v5442_v23  ;;  %v5481_v36 = vmul.f32 0.0, %v5464_v31  ;;  %v924_v37 = vmul.f32 %v5466_v32, %v5416_v12 }
  0xa2   : > { %v5141_v25 = vpop.permute.xlu0 %5140  ;;  %v5503_v42 = vsel %vm942_vm6, %v5439_v22, %v5464_v31  ;;  %v5514_v45 = vsel %vm917_vm7, %v5442_v23, %v5466_v32  ;;  %v1030_v48 = vpop.permute.xlu1 %1029  ;;  %vm1829_vm6 = vcmask 72704  }
  0xa3   : > { %v5447_v26 = vunpack.i.l.bf16 %v5141_v25  ;;  %1017 = vrot.lane.b32.xlu1 %v947_v24, %s7578_s5  ;;  %v5474_v35 = vunpack.i.h.bf16 %v5141_v25  ;;  %v948_v44 = vmul.f32 %v5503_v42, %v5416_v12  ;;  %v923_v46 = vmul.f32 %v5514_v45, %v5420_v13 }
  0xa5   : > { %v5458_v30 = vmul.f32 0.0, %v5447_v26  ;;  %v912_v39 = vmul.f32 %v5474_v35, %v5416_v12  ;;  %v5522_v47 = vsel %vm905_vm8, %v5447_v26, %v5474_v35  ;;  %vm2126_vm8 = vcmask 130048  }
  0xa6   : > { %v1028_v49 = vpop.permute.xlu0 %1027  ;;  %v911_v50 = vmul.f32 %v5522_v47, %v5420_v13  ;;  %v998_v51 = vpop.permute.xlu1 %997 }
  0xa7   : > { %988 = vrot.lane.b32.xlu1 %v5451_v27, %s7592_s0  ;;  %976 = vrot.lane.b32.xlu0 %v5458_v30, %s7584_s10  ;;  %v1034_v54 = vsel %vm1033_vm9, %v1028_v49, %v1030_v48 }
  0xaa   : > { %v1032_v52 = vpop.permute.xlu0 %1031  ;;  %v5146_v56 = vpop.permute.xlu1 %5145 }
  0xab   : > { %1043 = vrot.lane.b32.xlu1 %v5469_v33, %s7576_s3  ;;  %1009 = vrot.lane.b32.xlu0 %v5472_v34, %s7582_s9  ;;  %v1035_v14 = vsel %vm1033_vm9, %v1030_v48, %v1032_v52  ;;  %v822_v52 = vld [vmem:[%s7645_s6] sm:$0xff]  ;;  %s7646_s6 = sld [smem:[#allocation8_spill]] }
  0xae   : > { %v1000_v53 = vpop.permute.xlu0 %999 }
  0xaf   : > { %1021 = vrot.lane.b32.xlu1 %v5481_v36, %s7578_s5  ;;  %992 = vrot.lane.b32.xlu0 %v924_v37, %s7592_s0  ;;  %v1001_v15 = vsel %vm891_vm10, %v998_v51, %v1000_v53  ;;  %v5561_v37 = vunpack.i.h.bf16 %v5146_v56 }
  0xb1   : > { %7642 = vst [vmem:[#allocation4_spill] sm:$0xff] %v5561_v37 }
  0xb3   : > { %980 = vrot.lane.b32.xlu1 %v912_v39, %s7584_s10  ;;  %1041 = vrot.lane.b32.xlu0 %v960_v40, %s7576_s3  ;;  %v5563_v39 = vunpack.i.l.bf16 %v5146_v56 }
  0xb5   : > { %7643 = vst [vmem:[#allocation5_spill] sm:$0xff] %v5563_v39  ;;  %v5573_v48 = vsel %vm891_vm10, %v5563_v39, %v5561_v37 }
  0xb6   : > { %7644 = vst [vmem:[#allocation6_spill] sm:$0xff] %v5573_v48 }
  0xb7   : > { %1007 = vrot.lane.b32.xlu1 %v936_v43, %s7582_s9  ;;  %1019 = vrot.lane.b32.xlu0 %v948_v44, %s7578_s5 }
  0xbb   : > { %967 = vrot.lane.b32.xlu0 %v5420_v13, %s7588_s28  ;;  %990 = vrot.lane.b32.xlu1 %v923_v46, %s7592_s0 }
  0xbf   : > { %969 = vrot.lane.b32.xlu1 %v5416_v12, %s7588_s28  ;;  %978 = vrot.lane.b32.xlu0 %v911_v50, %s7584_s10  ;;  %v897_v50 = vmul.f32 %v5573_v48, %v5420_v13 }
  0xc3   : > { %965 = vrot.lane.b32.xlu0 %v5218_v1, %s7588_s28  ;;  %1080 = vrot.lane.b32.xlu1 %v998_v51, %s7574_s8  ;;  %v898_v51 = vmul.f32 %v5561_v37, %v5416_v12  ;;  %v5594_v12 = vmul.f32 0.0, %v5563_v39 }
  0xc7   : > { %1098 = vrot.lane.b32.xlu0 %v1028_v49, %s7574_s8 }
  0xcb   : > { %1084 = vrot.lane.b32.xlu0 %v1000_v53, %s7574_s8 }
  0xcf   : > { %1100 = vrot.lane.b32.xlu0 %v1034_v54, %s7574_s8 }
 0x111   : > { %v1040_v57 = vpop.permute.xlu1 %1039  ;;  %v1006_v58 = vpop.permute.xlu0 %1005 }
 0x115   : > { %v1018_v59 = vpop.permute.xlu1 %1017 }
 0x119   : > { %v989_v60 = vpop.permute.xlu1 %988  ;;  %v977_v61 = vpop.permute.xlu0 %976 }
 0x11d   : > { %v1044_v62 = vpop.permute.xlu1 %1043  ;;  %v1010_v63 = vpop.permute.xlu0 %1009 }
 0x121   : > { %v1022_v0 = vpop.permute.xlu1 %1021  ;;  %v993_v3 = vpop.permute.xlu0 %992 }
 0x125   : > { %v981_v4 = vpop.permute.xlu1 %980  ;;  %v1042_v5 = vpop.permute.xlu0 %1041 }
 0x126   : > { %v1047_v18 = vsel %vm1045_vm11, %v1042_v5, %v1044_v62  ;;  %v1046_v21 = vsel %vm1045_vm11, %v1040_v57, %v1042_v5 }
 0x129   : > { %v1008_v6 = vpop.permute.xlu1 %1007  ;;  %v1020_v7 = vpop.permute.xlu0 %1019 }
 0x12a   : > { %v1025_v19 = vsel %vm1023_vm12, %v1020_v7, %v1022_v0  ;;  %v1012_v20 = vsel %vm1011_vm13, %v1006_v58, %v1008_v6  ;;  %v1024_v40 = vsel %vm1023_vm12, %v1018_v59, %v1020_v7  ;;  %v1013_v46 = vsel %vm1011_vm13, %v1008_v6, %v1010_v63 }
 0x12d   : > { %v991_v8 = vpop.permute.xlu1 %990  ;;  %v968_v9 = vpop.permute.xlu0 %967 }
 0x12e   : > { %v996_v24 = vsel %vm994_vm14, %v991_v8, %v993_v3  ;;  %v995_v43 = vsel %vm994_vm14, %v989_v60, %v991_v8 }
 0x131   : > { %v970_v10 = vpop.permute.xlu1 %969  ;;  %v979_v25 = vpop.permute.xlu0 %978 }
 0x132   : > { %1066 = vrot.lane.b32.xlu1 %v970_v10, %s7574_s8  ;;  %v972_v11 = vsel %vm917_vm7, %v968_v9, %v970_v10  ;;  %v984_v53 = vsel %vm982_vm15, %v979_v25, %v981_v4  ;;  %v983_v54 = vsel %vm982_vm15, %v977_v61, %v979_v25 }
 0x133   : > { %1064 = vrot.lane.b32.xlu0 %v972_v11, %s7574_s8 }
 0x135   : > { %v966_v44 = vpop.permute.xlu0 %965  ;;  %v1081_v55 = vpop.permute.xlu1 %1080 }
 0x136   : > { %1102 = vrot.lane.b32.xlu1 %v1035_v14, %s7574_s8  ;;  %v971_v49 = vsel %vm917_vm7, %v966_v44, %v968_v9 }
 0x137   : > { %1086 = vrot.lane.b32.xlu0 %v1006_v58, %s7574_s8 }
 0x139   : > { %v1099_v13 = vpop.permute.xlu0 %1098 }
 0x13a   : > { %1082 = vrot.lane.b32.xlu1 %v1001_v15, %s7574_s8 }
 0x13b   : > { %1072 = vrot.lane.b32.xlu0 %v981_v4, %s7574_s8 }
 0x13e   : > { %1104 = vrot.lane.b32.xlu1 %v1040_v57, %s7574_s8 }
 0x13f   : > { %1108 = vrot.lane.b32.xlu0 %v1047_v18, %s7574_s8 }
 0x142   : > { %1092 = vrot.lane.b32.xlu1 %v1018_v59, %s7574_s8 }
 0x143   : > { %1096 = vrot.lane.b32.xlu0 %v1025_v19, %s7574_s8 }
 0x146   : > { %1078 = vrot.lane.b32.xlu1 %v993_v3, %s7574_s8 }
 0x147   : > { %1088 = vrot.lane.b32.xlu0 %v1012_v20, %s7574_s8 }
 0x14a   : > { %1106 = vrot.lane.b32.xlu1 %v1046_v21, %s7574_s8 }
 0x14b   : > { %1076 = vrot.lane.b32.xlu0 %v996_v24, %s7574_s8 }
 0x14e   : > { %1094 = vrot.lane.b32.xlu1 %v1024_v40, %s7574_s8 }
 0x14f   : > { %1074 = vrot.lane.b32.xlu0 %v995_v43, %s7574_s8 }
 0x152   : > { %1090 = vrot.lane.b32.xlu1 %v1013_v46, %s7574_s8 }
 0x153   : > { %1062 = vrot.lane.b32.xlu0 %v971_v49, %s7574_s8 }
 0x156   : > { %1058 = vrot.lane.b32.xlu1 %v897_v50, %s7574_s8 }
 0x157   : > { %1060 = vrot.lane.b32.xlu0 %v898_v51, %s7574_s8 }
 0x15a   : > { %1070 = vrot.lane.b32.xlu1 %v984_v53, %s7574_s8 }
 0x15b   : > { %1050 = vperm.xlu0 %5149, %v822_v52  }
 0x15e   : > { %1068 = vrot.lane.b32.xlu1 %v983_v54, %s7574_s8 }
 0x15f   : > { %1339 = vrot.lane.b32.xlu0 %v5469_v33, %s7576_s3  ;;  %v1085_v33 = vpop.permute.xlu0 %1084 }
 0x162   : > { %1056 = vrot.lane.b32.xlu1 %v5594_v12, %s7574_s8 }
 0x163   : > { %1319 = vrot.lane.b32.xlu0 %v5481_v36, %s7578_s5  ;;  %v1101_v56 = vpop.permute.xlu0 %1100 }
 0x164   : > { %v1124_v10 = vsel %vm954_vm4, %v1099_v13, %v1101_v56 }
 0x166   : > { %1328 = vrot.lane.b32.xlu1 %v5218_v1, %s7580_s11 }
 0x167   : > { %1288 = vrot.lane.b32.xlu0 %v5451_v27, %s7592_s0 }
 0x16a   : > { %1308 = vrot.lane.b32.xlu1 %v5472_v34, %s7582_s9 }
 0x1a4   : > { %v1067_v57 = vpop.permute.xlu1 %1066 }
 0x1a5   : > { %v1065_v58 = vpop.permute.xlu0 %1064 }
 0x1a6   : > { %v1113_v53 = vsel %vm954_vm4, %v1065_v58, %v1067_v57 }
 0x1a8   : > { %v1103_v59 = vpop.permute.xlu1 %1102 }
 0x1a9   : > { %v1087_v60 = vpop.permute.xlu0 %1086  ;;  %v1125_v8 = vsel %vm954_vm4, %v1101_v56, %v1103_v59 }
 0x1ac   : > { %v1083_v61 = vpop.permute.xlu1 %1082 }
 0x1ad   : > { %v1073_v62 = vpop.permute.xlu0 %1072  ;;  %v1119_v21 = vsel %vm954_vm4, %v1083_v61, %v1085_v33  ;;  %v1118_v25 = vsel %vm954_vm4, %v1081_v55, %v1083_v61  ;;  %v821_v55 = vld [vmem:[%s7646_s6] sm:$0xff]  ;;  %s7647_s6 = sld [smem:[#allocation11_spill]] }
 0x1b0   : > { %v1105_v36 = vpop.permute.xlu1 %1104 }
 0x1b1   : > { %v1109_v63 = vpop.permute.xlu0 %1108 }
 0x1b4   : > { %v1093_v0 = vpop.permute.xlu1 %1092 }
 0x1b5   : > { %v1097_v3 = vpop.permute.xlu0 %1096 }
 0x1b8   : > { %v1079_v4 = vpop.permute.xlu1 %1078 }
 0x1b9   : > { %v1089_v5 = vpop.permute.xlu0 %1088 }
 0x1ba   : > { %v1120_v20 = vsel %vm954_vm4, %v1087_v60, %v1089_v5 }
 0x1bc   : > { %v1107_v27 = vpop.permute.xlu1 %1106 }
 0x1bd   : > { %v1127_v6 = vsel %vm954_vm4, %v1107_v27, %v1109_v63  ;;  %v1126_v34 = vsel %vm954_vm4, %v1105_v36, %v1107_v27  ;;  %v1077_v7 = vpop.permute.xlu0 %1076 }
 0x1be   : > { %1164 = vmatprep.subr.mxu0 %v1127_v6  ;;  %v1117_v40 = vsel %vm954_vm4, %v1077_v7, %v1079_v4 }
 0x1bf   : > { %1165 = vmatpush1.msra.mxu0 %v1126_v34 }
 0x1c0   : > { %v1095_v9 = vpop.permute.xlu1 %1094  ;;  %1166 = vmatprep.subr.mxu0 %v1125_v8 }
 0x1c1   : > { %1167 = vmatpush1.msra.mxu0 %v1124_v10  ;;  %v1123_v11 = vsel %vm954_vm4, %v1095_v9, %v1097_v3  ;;  %v1122_v14 = vsel %vm954_vm4, %v1093_v0, %v1095_v9  ;;  %v1075_v18 = vpop.permute.xlu0 %1074 }
 0x1c2   : > { %1168 = vmatprep.subr.mxu0 %v1123_v11  ;;  %v1116_v43 = vsel %vm954_vm4, %v1075_v18, %v1077_v7 }
 0x1c3   : > { %1169 = vmatpush1.msra.mxu0 %v1122_v14 }
 0x1c4   : > { %v1091_v15 = vpop.permute.xlu1 %1090 }
 0x1c5   : > { %v1121_v19 = vsel %vm954_vm4, %v1089_v5, %v1091_v15  ;;  %v1063_v44 = vpop.permute.xlu0 %1062 }
 0x1c6   : > { %1170 = vmatprep.subr.mxu0 %v1121_v19  ;;  %v1112_v54 = vsel %vm954_vm4, %v1063_v44, %v1065_v58 }
 0x1c7   : > { %1171 = vmatpush1.msra.mxu0 %v1120_v20 }
 0x1c8   : > { %v1059_v24 = vpop.permute.xlu1 %1058  ;;  %1172 = vmatprep.subr.mxu0 %v1119_v21 }
 0x1c9   : > { %1173 = vmatpush1.msra.mxu0 %v1118_v25  ;;  %v1061_v51 = vpop.permute.xlu0 %1060 }
 0x1ca   : > { %1174 = vmatprep.subr.mxu0 %v1117_v40  ;;  %v1111_v33 = vsel %vm954_vm4, %v1059_v24, %v1061_v51 }
 0x1cb   : > { %1175 = vmatpush1.msra.mxu0 %v1116_v43 }
 0x1cc   : > { %v1071_v46 = vpop.permute.xlu1 %1070 }
 0x1cd   : > { %v1115_v49 = vsel %vm954_vm4, %v1071_v46, %v1073_v62 }
 0x1ce   : > { %1176 = vmatprep.subr.mxu0 %v1115_v49 }
 0x1d0   : > { %v1069_v50 = vpop.permute.xlu1 %1068 }
 0x1d1   : > { %v1114_v52 = vsel %vm954_vm4, %v1069_v50, %v1071_v46 }
 0x1d2   : > { %1177 = vmatpush1.msra.mxu0 %v1114_v52 }
 0x1d3   : > { %1178 = vmatprep.subr.mxu0 %v1113_v53 }
 0x1d4   : > { %v1057_v13 = vpop.permute.xlu1 %1056  ;;  %1179 = vmatpush1.msra.mxu0 %v1112_v54 }
 0x1d5   : > { %1180 = vmatprep.subr.mxu0 %v1111_v33  ;;  %v1110_v56 = vsel %vm954_vm4, %v1057_v13, %v1059_v24 }
 0x1d6   : > { %1181 = vmatpush1.msra.mxu0 %v1110_v56  ;;  %v1051_v59 = vpop.permute.xlu0 %1050 }
 0x1d7   : > { %4894 = vmatmul.mubr.msk.f32.vlgmr.msra.gmra.mxu0 %vm1146_vm0, %v821_v55 }
 0x1d8   : > { %v1329_v10 = vpop.permute.xlu1 %1328 }
 0x1da   : > { %v1340_v9 = vpop.permute.xlu0 %1339 }
 0x1dc   : > { %v1309_v14 = vpop.permute.xlu1 %1308 }
 0x1de   : > { %v1320_v11 = vpop.permute.xlu0 %1319 }
 0x1e2   : > { %v1289_v15 = vpop.permute.xlu0 %1288 }
 0x297   : > { %v1216_v57 = vpop.f32.mrf.mxu0 }
 0x298   : > { %v1217_v60 = vadd.f32 %v1216_v57, %v1051_v59 }
 0x299   : > { %v1218_v61 = vpop.f32.mrf.mxu0 }
 0x29a   : > { %v5628_v58 = vmax.f32 %v1217_v60, 0.0  ;;  %v1219_v62 = vadd.f32 %v1218_v61, %v1051_v59 }
 0x29c   : > { %1296 = vrot.lane.b32.xlu0 %v5628_v58, %s7594_s2  ;;  %1324 = vrot.lane.b32.xlu1 %v5628_v58, %s7580_s11  ;;  %v5634_v36 = vmax.f32 %v1219_v62, 0.0  ;;  %v1260_v63 = vmul.f32 %v5431_v16, %v5628_v58  ;;  %v1257_v0 = vmul.f32 %v5439_v22, %v5628_v58  ;;  %v1254_v3 = vmul.f32 %v5433_v17, %v5628_v58 }
 0x29d   : > { %v1251_v4 = vmul.f32 %v5628_v58, %v5514_v45  ;;  %v1248_v27 = vmul.f32 %v5628_v58, %v5522_v47 }
 0x29e   : > { %v1255_v5 = vmul.f32 %v5634_v36, %v5499_v41  ;;  %v1261_v6 = vmul.f32 %v5634_v36, %v5488_v38  ;;  %v1249_v34 = vmul.f32 %v5474_v35, %v5634_v36  ;;  %v1258_v7 = vmul.f32 %v5634_v36, %v5503_v42 }
 0x29f   : > { %v1252_v8 = vmul.f32 %v5466_v32, %v5634_v36 }
 0x2a0   : > { %1326 = vrot.lane.b32.xlu0 %v5634_v36, %s7580_s11  ;;  %1335 = vrot.lane.b32.xlu1 %v1260_v63, %s7576_s3  ;;  %s7590_s11 = smov 118  }
 0x2a4   : > { %1315 = vrot.lane.b32.xlu0 %v1257_v0, %s7578_s5  ;;  %1304 = vrot.lane.b32.xlu1 %v1254_v3, %s7582_s9 }
 0x2a8   : > { %1298 = vrot.lane.b32.xlu1 %v5634_v36, %s7594_s2  ;;  %1290 = vrot.lane.b32.xlu0 %v1251_v4, %s7592_s0 }
 0x2ac   : > { %1306 = vrot.lane.b32.xlu0 %v1255_v5, %s7582_s9  ;;  %1279 = vrot.lane.b32.xlu1 %v1248_v27, %s7584_s10  ;;  %v1246_v27 = vmul.f32 %v5561_v37, %v5634_v36  ;;  %s5232_s9 = smov 7  }
 0x2b0   : > { %1268 = vrot.lane.b32.xlu0 %v5628_v58, %s7588_s28  ;;  %1337 = vrot.lane.b32.xlu1 %v1261_v6, %s7576_s3  ;;  %v824_v6 = vld [vmem:[%s7647_s6] sm:$0xff]  ;;  %s7648_s6 = sld [smem:[#allocation10_spill]]  ;;  %s7652_s3 = smov 110  }
 0x2b4   : > { %1281 = vrot.lane.b32.xlu0 %v1249_v34, %s7584_s10  ;;  %1317 = vrot.lane.b32.xlu1 %v1258_v7, %s7578_s5  ;;  %v1245_v7 = vmul.f32 %v5628_v58, %v5573_v48  ;;  %s7655_s5 = smov 112  }
 0x2b8   : > { %1266 = vrot.lane.b32.xlu0 %v5218_v1, %s7588_s28  ;;  %1277 = vrot.lane.b32.xlu1 %v5458_v30, %s7584_s10  ;;  %s7601_s10 = smov 9  }
 0x2bc   : > { %1292 = vrot.lane.b32.xlu1 %v1252_v8, %s7592_s0 }
 0x2c0   : > { %1270 = vrot.lane.b32.xlu1 %v5634_v36, %s7588_s28 }
 0x30e   : > { %v1325_v18 = vpop.permute.xlu1 %1324  ;;  %v1297_v19 = vpop.permute.xlu0 %1296 }
 0x30f   : > { %1393 = vrot.lane.b32.xlu0 %v1325_v18, %s7574_s8  ;;  %1375 = vrot.lane.b32.xlu1 %v1297_v19, %s7574_s8 }
 0x312   : > { %v1336_v1 = vpop.permute.xlu1 %1335  ;;  %v1327_v30 = vpop.permute.xlu0 %1326 }
 0x313   : > { %1399 = vrot.lane.b32.xlu1 %v1336_v1, %s7574_s8  ;;  %v1330_v40 = vsel %vm1033_vm9, %v1325_v18, %v1327_v30  ;;  %v1331_v33 = vsel %vm1033_vm9, %v1327_v30, %v1329_v10 }
 0x316   : > { %v1305_v20 = vpop.permute.xlu1 %1304  ;;  %v1316_v21 = vpop.permute.xlu0 %1315 }
 0x317   : > { %1381 = vrot.lane.b32.xlu0 %v1305_v20, %s7574_s8  ;;  %1387 = vrot.lane.b32.xlu1 %v1316_v21, %s7574_s8 }
 0x31a   : > { %v1299_v24 = vpop.permute.xlu1 %1298  ;;  %v1291_v43 = vpop.permute.xlu0 %1290 }
 0x31b   : > { %1379 = vrot.lane.b32.xlu0 %v1299_v24, %s7574_s8  ;;  %v1294_v46 = vsel %vm994_vm14, %v1289_v15, %v1291_v43  ;;  %v1300_v56 = vsel %vm891_vm10, %v1297_v19, %v1299_v24 }
 0x31e   : > { %v1280_v25 = vpop.permute.xlu1 %1279  ;;  %v1307_v51 = vpop.permute.xlu0 %1306 }
 0x31f   : > { %1395 = vrot.lane.b32.xlu0 %v1330_v40, %s7574_s8  ;;  %v1310_v61 = vsel %vm1011_vm13, %v1305_v20, %v1307_v51  ;;  %v1311_v5 = vsel %vm1011_vm13, %v1307_v51, %v1309_v14 }
 0x322   : > { %v1338_v44 = vpop.permute.xlu1 %1337  ;;  %v1269_v53 = vpop.permute.xlu0 %1268 }
 0x323   : > { %1369 = vrot.lane.b32.xlu0 %v1294_v46, %s7574_s8  ;;  %v1342_v59 = vsel %vm1045_vm11, %v1338_v44, %v1340_v9  ;;  %v1341_v62 = vsel %vm1045_vm11, %v1336_v1, %v1338_v44 }
 0x326   : > { %v1318_v49 = vpop.permute.xlu1 %1317  ;;  %v1282_v55 = vpop.permute.xlu0 %1281 }
 0x327   : > { %v1322_v60 = vsel %vm1023_vm12, %v1318_v49, %v1320_v11  ;;  %v1321_v3 = vsel %vm1023_vm12, %v1316_v21, %v1318_v49  ;;  %v1284_v34 = vsel %vm982_vm15, %v1280_v25, %v1282_v55 }
 0x32a   : > { %v1278_v50 = vpop.permute.xlu1 %1277  ;;  %v1267_v0 = vpop.permute.xlu0 %1266 }
 0x32b   : > { %v1283_v57 = vsel %vm982_vm15, %v1278_v50, %v1280_v25  ;;  %v1272_v4 = vsel %vm917_vm7, %v1267_v0, %v1269_v53 }
 0x32e   : > { %v1293_v52 = vpop.permute.xlu1 %1292 }
 0x32f   : > { %v1295_v63 = vsel %vm994_vm14, %v1291_v43, %v1293_v52 }
 0x332   : > { %v1271_v54 = vpop.permute.xlu1 %1270 }
 0x333   : > { %1361 = vrot.lane.b32.xlu1 %v1271_v54, %s7574_s8  ;;  %v1273_v13 = vsel %vm917_vm7, %v1269_v53, %v1271_v54 }
 0x334   : > { %1359 = vrot.lane.b32.xlu0 %v1273_v13, %s7574_s8 }
 0x337   : > { %1397 = vrot.lane.b32.xlu1 %v1331_v33, %s7574_s8 }
 0x338   : > { %1367 = vrot.lane.b32.xlu0 %v1282_v55, %s7574_s8 }
 0x33b   : > { %1377 = vrot.lane.b32.xlu1 %v1300_v56, %s7574_s8 }
 0x33c   : > { %1403 = vrot.lane.b32.xlu0 %v1342_v59, %s7574_s8 }
 0x33f   : > { %1363 = vrot.lane.b32.xlu1 %v1283_v57, %s7574_s8 }
 0x340   : > { %1391 = vrot.lane.b32.xlu0 %v1322_v60, %s7574_s8 }
 0x343   : > { %1373 = vrot.lane.b32.xlu1 %v1293_v52, %s7574_s8 }
 0x344   : > { %1383 = vrot.lane.b32.xlu0 %v1310_v61, %s7574_s8 }
 0x347   : > { %1401 = vrot.lane.b32.xlu1 %v1341_v62, %s7574_s8 }
 0x348   : > { %1371 = vrot.lane.b32.xlu0 %v1295_v63, %s7574_s8 }
 0x34b   : > { %1389 = vrot.lane.b32.xlu1 %v1321_v3, %s7574_s8 }
 0x34c   : > { %1357 = vrot.lane.b32.xlu0 %v1272_v4, %s7574_s8 }
 0x34f   : > { %1385 = vrot.lane.b32.xlu1 %v1311_v5, %s7574_s8 }
 0x350   : > { %1355 = vrot.lane.b32.xlu0 %v1246_v27, %s7574_s8 }
 0x353   : > { %1365 = vrot.lane.b32.xlu1 %v1284_v34, %s7574_s8 }
 0x354   : > { %1345 = vperm.xlu0 %5149, %v824_v6  }
 0x357   : > { %1353 = vrot.lane.b32.xlu1 %v1245_v7, %s7574_s8  ;;  %v823_v7 = vld [vmem:[%s7648_s6] sm:$0xff]  ;;  %s7598_s6 = smov 120  }
 0x35b   : > { %1351 = vrot.lane.b32.xlu1 %v5594_v12, %s7574_s8  ;;  %s7596_s8 = smov 119  }
 0x381   : > { %v1394_v36 = vpop.permute.xlu0 %1393  ;;  %v1376_v9 = vpop.permute.xlu1 %1375 }
 0x385   : > { %v1400_v11 = vpop.permute.xlu1 %1399 }
 0x389   : > { %v1382_v8 = vpop.permute.xlu0 %1381  ;;  %v1388_v15 = vpop.permute.xlu1 %1387 }
 0x38d   : > { %v1380_v10 = vpop.permute.xlu0 %1379 }
 0x391   : > { %v1396_v14 = vpop.permute.xlu0 %1395 }
 0x392   : > { %v1419_v51 = vsel %vm954_vm4, %v1394_v36, %v1396_v14 }
 0x395   : > { %v1370_v18 = vpop.permute.xlu0 %1369 }
 0x3a5   : > { %v1362_v19 = vpop.permute.xlu1 %1361 }
 0x3a6   : > { %v1360_v1 = vpop.permute.xlu0 %1359 }
 0x3a7   : > { %v1408_v4 = vsel %vm954_vm4, %v1360_v1, %v1362_v19  ;;  %v1529_v19 = vld [vmem:[%s7649_s23 + $0x60] sm:$0xff] }
 0x3a9   : > { %v1398_v30 = vpop.permute.xlu1 %1397 }
 0x3aa   : > { %v1368_v20 = vpop.permute.xlu0 %1367  ;;  %v1420_v49 = vsel %vm954_vm4, %v1396_v14, %v1398_v30  ;;  %v1546_v14 = vld [vmem:[%s7649_s23 + $0xe8] sm:$0xff]  ;;  %v1528_v30 = vld [vmem:[%s7649_s23 + $0x58] sm:$0xff] }
 0x3ad   : > { %v1378_v21 = vpop.permute.xlu1 %1377 }
 0x3ae   : > { %v1404_v24 = vpop.permute.xlu0 %1403  ;;  %v1414_v56 = vsel %vm954_vm4, %v1378_v21, %v1380_v10  ;;  %v1413_v60 = vsel %vm954_vm4, %v1376_v9, %v1378_v21  ;;  %v1532_v9 = vld [vmem:[%s7649_s23 + $0x78] sm:$0xff]  ;;  %v1547_v10 = vld [vmem:[%s7649_s23 + $0xf0] sm:$0xff] }
 0x3af   : > { %v1527_v21 = vld [vmem:[%s7649_s23 + $0x50] sm:$0xff] }
 0x3b1   : > { %v1364_v58 = vpop.permute.xlu1 %1363 }
 0x3b2   : > { %v1392_v25 = vpop.permute.xlu0 %1391 }
 0x3b5   : > { %v1374_v40 = vpop.permute.xlu1 %1373 }
 0x3b6   : > { %v1384_v43 = vpop.permute.xlu0 %1383 }
 0x3b7   : > { %v1415_v55 = vsel %vm954_vm4, %v1382_v8, %v1384_v43  ;;  %v1548_v8 = vld [vmem:[%s7649_s23 + $0xf8] sm:$0xff] }
 0x3b8   : > { %4923 = vmatprep.subr.mxu0 %v1548_v8 }
 0x3b9   : > { %v1402_v44 = vpop.permute.xlu1 %1401  ;;  %4924 = vmatpush3.msra.mxu0 %v1532_v9 }
 0x3ba   : > { %v1422_v12 = vsel %vm954_vm4, %v1402_v44, %v1404_v24  ;;  %v1421_v46 = vsel %vm954_vm4, %v1400_v11, %v1402_v44  ;;  %v1372_v54 = vpop.permute.xlu0 %1371  ;;  %v1531_v11 = vld [vmem:[%s7649_s23 + $0x70] sm:$0xff]  ;;  %4925 = vmatprep.subr.mxu0 %v1547_v10  ;;  %v1542_v24 = vld [vmem:[%s7649_s23 + $0xc8] sm:$0xff]  ;;  %v1524_v44 = vld [vmem:[%s7649_s23 + $0x38] sm:$0xff] }
 0x3bb   : > { %1458 = vmatprep.subr.mxu1 %v1422_v12  ;;  %v1412_v61 = vsel %vm954_vm4, %v1372_v54, %v1374_v40  ;;  %v1411_v62 = vsel %vm954_vm4, %v1370_v18, %v1372_v54  ;;  %4926 = vmatpush3.msra.mxu0 %v1531_v11  ;;  %v1545_v18 = vld [vmem:[%s7649_s23 + $0xe0] sm:$0xff]  ;;  %v1539_v12 = vld [vmem:[%s7649_s23 + $0xb0] sm:$0xff] }
 0x3bc   : > { %1459 = vmatpush1.msra.mxu1 %v1421_v46  ;;  %4927 = vmatprep.subr.mxu0 %v1546_v14  ;;  %v1525_v40 = vld [vmem:[%s7649_s23 + $0x40] sm:$0xff]  ;;  %v1523_v46 = vld [vmem:[%s7649_s23 + $0x30] sm:$0xff] }
 0x3bd   : > { %v1390_v50 = vpop.permute.xlu1 %1389  ;;  %1460 = vmatprep.subr.mxu1 %v1420_v49  ;;  %v1538_v49 = vld [vmem:[%s7649_s23 + $0xa8] sm:$0xff]  ;;  %v1537_v54 = vld [vmem:[%s7649_s23 + $0xa0] sm:$0xff] }
 0x3be   : > { %1461 = vmatpush1.msra.mxu1 %v1419_v51  ;;  %v1418_v52 = vsel %vm954_vm4, %v1390_v50, %v1392_v25  ;;  %v1417_v53 = vsel %vm954_vm4, %v1388_v15, %v1390_v50  ;;  %v1358_v59 = vpop.permute.xlu0 %1357  ;;  %v1530_v15 = vld [vmem:[%s7649_s23 + $0x68] sm:$0xff]  ;;  %v1541_v25 = vld [vmem:[%s7649_s23 + $0xc0] sm:$0xff] }
 0x3bf   : > { %1462 = vmatprep.subr.mxu1 %v1418_v52  ;;  %v1407_v27 = vsel %vm954_vm4, %v1358_v59, %v1360_v1  ;;  %4928 = vmatpush3.msra.mxu0 %v1530_v15  ;;  %v1544_v1 = vld [vmem:[%s7649_s23 + $0xd8] sm:$0xff]  ;;  %v1522_v50 = vld [vmem:[%s7649_s23 + $0x28] sm:$0xff] }
 0x3c0   : > { %1463 = vmatpush1.msra.mxu1 %v1417_v53  ;;  %4929 = vmatprep.subr.mxu0 %v1545_v18  ;;  %v1536_v59 = vld [vmem:[%s7649_s23 + $0x98] sm:$0xff] }
 0x3c1   : > { %v1386_v13 = vpop.permute.xlu1 %1385  ;;  %4930 = vmatpush3.msra.mxu0 %v1529_v19 }
 0x3c2   : > { %v1416_v33 = vsel %vm954_vm4, %v1384_v43, %v1386_v13  ;;  %v1356_v5 = vpop.permute.xlu0 %1355  ;;  %4931 = vmatprep.subr.mxu0 %v1544_v1  ;;  %v1540_v43 = vld [vmem:[%s7649_s23 + $0xb8] sm:$0xff] }
 0x3c3   : > { %1464 = vmatprep.subr.mxu1 %v1416_v33  ;;  %4932 = vmatpush3.msra.mxu0 %v1528_v30  ;;  %v1521_v33 = vld [vmem:[%s7649_s23 + $0x20] sm:$0xff] }
 0x3c4   : > { %1465 = vmatpush1.msra.mxu1 %v1415_v55 }
 0x3c5   : > { %v1366_v57 = vpop.permute.xlu1 %1365  ;;  %1466 = vmatprep.subr.mxu1 %v1414_v56 }
 0x3c6   : > { %1467 = vmatpush1.msra.mxu1 %v1413_v60  ;;  %v1410_v63 = vsel %vm954_vm4, %v1366_v57, %v1368_v20  ;;  %v1409_v3 = vsel %vm954_vm4, %v1364_v58, %v1366_v57  ;;  %v1543_v20 = vld [vmem:[%s7649_s23 + $0xd0] sm:$0xff]  ;;  %v1526_v58 = vld [vmem:[%s7649_s23 + $0x48] sm:$0xff]  ;;  %v1520_v57 = vld [vmem:[%s7649_s23 + $0x18] sm:$0xff] }
 0x3c7   : > { %1468 = vmatprep.subr.mxu1 %v1412_v61  ;;  %4933 = vmatprep.subr.mxu0 %v1543_v20  ;;  %v1535_v61 = vld [vmem:[%s7649_s23 + $0x90] sm:$0xff] }
 0x3c8   : > { %1469 = vmatpush1.msra.mxu1 %v1411_v62  ;;  %4934 = vmatpush3.msra.mxu0 %v1527_v21  ;;  %v1519_v62 = vld [vmem:[%s7649_s23 + $0x10] sm:$0xff] }
 0x3c9   : > { %v1354_v0 = vpop.permute.xlu1 %1353  ;;  %1470 = vmatprep.subr.mxu1 %v1410_v63  ;;  %4935 = vmatprep.subr.mxu0 %v1542_v24  ;;  %v1534_v63 = vld [vmem:[%s7649_s23 + $0x88] sm:$0xff] }
 0x3ca   : > { %1471 = vmatpush1.msra.mxu1 %v1409_v3  ;;  %v1406_v6 = vsel %vm954_vm4, %v1354_v0, %v1356_v5  ;;  %4936 = vmatpush3.msra.mxu0 %v1526_v58  ;;  %v1533_v5 = vld [vmem:[%s7649_s23 + $0x80] sm:$0xff] }
 0x3cb   : > { %1472 = vmatprep.subr.mxu1 %v1408_v4  ;;  %4937 = vmatprep.subr.mxu0 %v1541_v25  ;;  %v1518_v4 = vld [vmem:[%s7649_s23 + $0x8] sm:$0xff] }
 0x3cc   : > { %1473 = vmatpush1.msra.mxu1 %v1407_v27  ;;  %4938 = vmatpush3.msra.mxu0 %v1525_v40  ;;  %v1517_v27 = vld [vmem:[%s7649_s23] sm:$0xff]  ;;  %s7661_s23 = smov 119  }
 0x3cd   : > { %v1352_v34 = vpop.permute.xlu1 %1351  ;;  %1474 = vmatprep.subr.mxu1 %v1406_v6  ;;  %4939 = vmatprep.subr.mxu0 %v1540_v43  ;;  %v1711_v6 = vand.u32 7, %v5399_v2 }
 0x3ce   : > { %v1405_v36 = vsel %vm954_vm4, %v1352_v34, %v1354_v0  ;;  %4940 = vmatpush3.msra.mxu0 %v1524_v44  ;;  %v5841_v0 = vld [vmem:[#allocation2 + $0x28] sm:$0xff] }
 0x3cf   : > { %1475 = vmatpush1.msra.mxu1 %v1405_v36  ;;  %4941 = vmatprep.subr.mxu0 %v1539_v12  ;;  %v1346_v51 = vpop.permute.xlu0 %1345  ;;  %vm1719_vm1 = vcmp.ne.s32.totalorder %v1711_v6, 0  ;;  %vm1722_vm2 = vcmp.ne.s32.totalorder %v1711_v6, 7 }
 0x3d0   : > { %4895 = vmatmul.mubr.msk.f32.vlgmr.msra.gmra.mxu1 %vm1146_vm0, %v823_v7  ;;  %4942 = vmatpush3.msra.mxu0 %v1523_v46  ;;  %v5861_v34 = vsel %vm1719_vm1, 1.0, %v5841_v0  ;;  %v4897_v7 = vsel %vm1722_vm2, 1.0, %v5841_v0 }
 0x3d1   : > { %4943 = vmatprep.subr.mxu0 %v1538_v49 }
 0x3d2   : > { %4944 = vmatpush3.msra.mxu0 %v1522_v50 }
 0x3d3   : > { %4945 = vmatprep.subr.mxu0 %v1537_v54 }
 0x3d4   : > { %4946 = vmatpush3.msra.mxu0 %v1521_v33 }
 0x3d5   : > { %4947 = vmatprep.subr.mxu0 %v1536_v59 }
 0x3d6   : > { %4948 = vmatpush3.msra.mxu0 %v1520_v57 }
 0x3d7   : > { %4949 = vmatprep.subr.mxu0 %v1535_v61 }
 0x3d8   : > { %4950 = vmatpush3.msra.mxu0 %v1519_v62 }
 0x3d9   : > { %4951 = vmatprep.subr.mxu0 %v1534_v63 }
 0x3da   : > { %4952 = vmatpush3.msra.mxu0 %v1518_v4 }
 0x3db   : > { %4953 = vmatprep.subr.mxu0 %v1533_v5 }
 0x3dc   : > { %4954 = vmatpush3.msra.mxu0 %v1517_v27 }
 0x490   : > { %v1510_v52 = vpop.f32.mrf.mxu1 }
 0x491   : > { %v1511_v53 = vadd.f32 %v1510_v52, %v1346_v51 }
 0x492   : > { %v1512_v13 = vpop.f32.mrf.mxu1 }
 0x493   : > { %v5822_v55 = vmax.f32 %v1511_v53, 0.0  ;;  %v1513_v56 = vadd.f32 %v1512_v13, %v1346_v51 }
 0x495   : > { %v1516_v60 = vmax.f32 %v1513_v56, 0.0  ;;  %1573 = vrot.lane.b32.xlu0 %v5822_v55, %s7588_s28 }
 0x497   : > { %3971 = vst [vmem:[#allocation2 + $0x10] sm:$0xff] %v1516_v60  ;;  %v5150_v3 = vpack.i.bf16 %v5841_v0, %v1516_v60 }
 0x499   : > { %5151 = vrot.lane.b32.xlu1 %v5150_v3, %s7588_s28  ;;  %1585 = vrot.lane.b32.xlu0 %v5822_v55, %s7592_s0 }
 0x49d   : > { %5156 = vrot.lane.b32.xlu1 %v5150_v3, %s7592_s0  ;;  %1597 = vrot.lane.b32.xlu0 %v5822_v55, %s7594_s2 }
 0x4a1   : > { %5161 = vrot.lane.b32.xlu1 %v5150_v3, %s7594_s2  ;;  %1748 = vrot.lane.b32.xlu0 %v5861_v34, %s5232_s9  ;;  %s7656_s9 = smov 118  }
 0x4a5   : > { %1752 = vrot.lane.b32.xlu1 %v4897_v7, %s7601_s10  ;;  %1739 = vrot.lane.b32.xlu0 %v5861_v34, %s7588_s28 }
 0x4a9   : > { %1744 = vrot.lane.b32.xlu1 %v4897_v7, %s7650_s29 }
 0x4ad   : > { %1734 = vrot.lane.b32.xlu1 %v4897_v7, %s5234_s1  ;;  %s7653_s1 = sld [smem:[#allocation12_spill]] }
 0x507   : > { %v1574_v36 = vpop.permute.xlu0 %1573 }
 0x50b   : > { %v5152_v8 = vpop.permute.xlu1 %5151  ;;  %v1586_v11 = vpop.permute.xlu0 %1585 }
 0x50c   : > { %v5154_v9 = vunpack.i.h.bf16 %v5152_v8  ;;  %v5153_v10 = vunpack.i.l.bf16 %v5152_v8 }
 0x50e   : > { %v1579_v15 = vsel %vm917_vm7, %v1574_v36, %v5153_v10  ;;  %v1580_v18 = vsel %vm917_vm7, %v5153_v10, %v5154_v9 }
 0x50f   : > { %v5157_v14 = vpop.permute.xlu1 %5156  ;;  %v1583_v21 = vmax.f32 %v5822_v55, %v1579_v15  ;;  %v1584_v58 = vmax.f32 %v1516_v60, %v1580_v18  ;;  %v1598_v44 = vpop.permute.xlu0 %1597 }
 0x510   : > { %v5159_v19 = vunpack.i.h.bf16 %v5157_v14  ;;  %v5158_v1 = vunpack.i.l.bf16 %v5157_v14 }
 0x512   : > { %v1591_v30 = vsel %vm994_vm14, %v1586_v11, %v5158_v1  ;;  %v1592_v20 = vsel %vm994_vm14, %v5158_v1, %v5159_v19 }
 0x513   : > { %v5162_v24 = vpop.permute.xlu1 %5161  ;;  %v1595_v43 = vmax.f32 %v1583_v21, %v1591_v30  ;;  %v1596_v12 = vmax.f32 %v1584_v58, %v1592_v20  ;;  %v5881_v54 = vpop.permute.xlu0 %1748  ;;  %v1679_v30 = vld [vmem:[%s7653_s1] sm:$0xff] }
 0x514   : > { %v5164_v25 = vunpack.i.h.bf16 %v5162_v24  ;;  %v5163_v40 = vunpack.i.l.bf16 %v5162_v24  ;;  %5045 = vmatprep.mubr.msk.f32.mxu1 %vm1146_vm0, %v1679_v30 }
 0x516   : > { %v1603_v46 = vsel %vm891_vm10, %v1598_v44, %v5163_v40  ;;  %v1604_v49 = vsel %vm891_vm10, %v5163_v40, %v5164_v25 }
 0x517   : > { %v1608_v50 = vmax.f32 %v1596_v12, %v1604_v49  ;;  %v1607_v51 = vmax.f32 %v1595_v43, %v1603_v46  ;;  %v5877_v52 = vpop.permute.xlu1 %1752  ;;  %v5885_v33 = vpop.permute.xlu0 %1739 }
 0x518   : > { %v5893_v59 = vmul.f32 %v5841_v0, %v5885_v33 }
 0x519   : > { %1673 = vmatprep.mubr.f32.mxu0 %v1608_v50 }
 0x51a   : > { %1674 = vmatmul.mubr.f32.vlgmr.msra.gmra.mxu0 %v1607_v51  ;;  %1772 = vrot.lane.b32.xlu0 %v5893_v59, %s7598_s6 }
 0x51b   : > { %v5879_v53 = vpop.permute.xlu1 %1744 }
 0x51f   : > { %v5883_v13 = vpop.permute.xlu1 %1734 }
 0x520   : > { %v5889_v56 = vmul.f32 %v5841_v0, %v5883_v13 }
 0x522   : > { %1765 = vrot.lane.b32.xlu1 %v5889_v56, %s7651_s30 }
 0x58c   : > { %v1773_v7 = vpop.permute.xlu0 %1772 }
 0x594   : > { %v1766_v6 = vpop.permute.xlu1 %1765 }
 0x5da   : > { %v4955_v57 = vpop.f32.mrf.mxu0 }
 0x5dc   : > { %v4956_v60 = vpop.f32.mrf.mxu0 }
 0x5dd   : > { %v4957_v61 = vadd.f32 %v4956_v60, %v4955_v57 }
 0x5df   : > { %1706 = vst.msk [vmem:[#allocation2 + $0x8] sm:$0xff] %vm1705_vm3, %v4957_v61 }
 0x5e6   : > { %v1726_v62 = vld [vmem:[#allocation2 + $0x8] sm:$0xff] }
 0x5e7   : > { %1927 = vst [vmem:[#allocation2 + $0x8] sm:$0xff] %v5841_v0  ;;  %1778 = vrot.lane.b32.xlu0 %v1726_v62, %s7596_s8  ;;  %1786 = vrot.lane.b32.xlu1 %v1726_v62, %s7594_s2  ;;  %v1755_v63 = vmul.f32 %v5877_v52, %v1726_v62  ;;  %v1747_v3 = vmul.f32 %v5879_v53, %v1726_v62 }
 0x5e8   : > { %v1751_v4 = vmul.f32 %v5881_v54, %v1726_v62  ;;  %v1743_v5 = vmul.f32 %v5885_v33, %v1726_v62  ;;  %v1738_v27 = vmul.f32 %v5883_v13, %v1726_v62 }
 0x5eb   : > { %1789 = vrot.lane.b32.xlu0 %v1755_v63, %s7652_s3  ;;  %1781 = vrot.lane.b32.xlu1 %v1747_v3, %s7590_s11  ;;  %s7659_s11 = sld [smem:[#allocation15_spill]] }
 0x5ef   : > { %1784 = vrot.lane.b32.xlu0 %v1751_v4, %s7592_s0  ;;  %1774 = vrot.lane.b32.xlu1 %v1743_v5, %s7598_s6  ;;  %s7657_s0 = smov 127  }
 0x5f3   : > { %1758 = vrot.lane.b32.xlu1 %v5841_v0, %s7588_s28  ;;  %1767 = vrot.lane.b32.xlu0 %v1738_v27, %s7651_s30 }
 0x5f7   : > { %1728 = vrot.lane.b32.xlu1 %v5861_v34, %s7596_s8  ;;  %1760 = vrot.lane.b32.xlu0 %v1726_v62, %s7588_s28  ;;  %s7654_s28 = sld [smem:[#allocation13_spill]] }
 0x5fd   : > { %v1682_v25 = vld [vmem:[%s7654_s28 + $0x8] sm:$0xff]  ;;  %v1681_v40 = vld [vmem:[%s7654_s28] sm:$0xff]  ;;  %s7606_s28 = smov 122  }
 0x659   : > { %v1779_v36 = vpop.permute.xlu0 %1778  ;;  %v1787_v8 = vpop.permute.xlu1 %1786 }
 0x65a   : > { %1825 = vrot.lane.b32.xlu1 %v1787_v8, %s7601_s10  ;;  %1819 = vrot.lane.b32.xlu0 %v1779_v36, %s7601_s10 }
 0x65d   : > { %v1790_v9 = vpop.permute.xlu0 %1789  ;;  %v1782_v10 = vpop.permute.xlu1 %1781 }
 0x661   : > { %v1785_v11 = vpop.permute.xlu0 %1784  ;;  %v1775_v14 = vpop.permute.xlu1 %1774 }
 0x662   : > { %v1777_v1 = vsel %vm1776_vm5, %v1773_v7, %v1775_v14 }
 0x665   : > { %v1768_v15 = vpop.permute.xlu0 %1767  ;;  %v1759_v18 = vpop.permute.xlu1 %1758 }
 0x666   : > { %v1769_v21 = vsel %vm982_vm15, %v1766_v6, %v1768_v15  ;;  %v1680_v6 = vld [vmem:[%s7653_s1 + $0x8] sm:$0xff]  ;;  %s7611_s1 = smov 5  }
 0x669   : > { %v1761_v19 = vpop.permute.xlu0 %1760  ;;  %v5932_v20 = vpop.permute.xlu1 %1728 }
 0x66a   : > { %1809 = vrot.lane.b32.xlu0 %v1761_v19, %s7601_s10  ;;  %v1762_v34 = vsel %vm917_vm7, %v1759_v18, %v1761_v19  ;;  %v5939_v24 = vmul.f32 %v5841_v0, %v5932_v20  ;;  %v1732_v58 = vmul.f32 %v5932_v20, %v1726_v62 }
 0x66b   : > { %1807 = vrot.lane.b32.xlu1 %v1762_v34, %s7601_s10 }
 0x66e   : > { %1827 = vrot.lane.b32.xlu0 %v1790_v9, %s7601_s10 }
 0x66f   : > { %1821 = vrot.lane.b32.xlu1 %v1782_v10, %s7601_s10 }
 0x672   : > { %1823 = vrot.lane.b32.xlu0 %v1785_v11, %s7601_s10 }
 0x673   : > { %1815 = vrot.lane.b32.xlu1 %v1777_v1, %s7601_s10 }
 0x676   : > { %1817 = vrot.lane.b32.xlu0 %v1775_v14, %s7601_s10 }
 0x677   : > { %1811 = vrot.lane.b32.xlu1 %v1769_v21, %s7601_s10 }
 0x67a   : > { %1813 = vrot.lane.b32.xlu0 %v1768_v15, %s7601_s10 }
 0x67b   : > { %1803 = vrot.lane.b32.xlu1 %v5939_v24, %s7601_s10 }
 0x67e   : > { %1805 = vrot.lane.b32.xlu0 %v1732_v58, %s7601_s10 }
 0x67f   : > { %1798 = vperm.xlu1 %5165, %v1682_v25  }
 0x682   : > { %1793 = vperm.xlu0 %5149, %v1681_v40  }
 0x683   : > { %1998 = vrot.lane.b32.xlu1 %v5893_v59, %s7598_s6 }
 0x686   : > { %2002 = vrot.lane.b32.xlu0 %v5893_v59, %s7598_s6 }
 0x687   : > { %1988 = vrot.lane.b32.xlu1 %v5889_v56, %s7651_s30 }
 0x6cc   : > { %v1820_v43 = vpop.permute.xlu0 %1819  ;;  %v1826_v44 = vpop.permute.xlu1 %1825 }
 0x6dc   : > { %v1810_v12 = vpop.permute.xlu0 %1809 }
 0x6dd   : > { %v1808_v46 = vpop.permute.xlu1 %1807 }
 0x6de   : > { %v1831_v4 = vsel %vm1829_vm6, %v1808_v46, %v1810_v12 }
 0x6e0   : > { %v1828_v49 = vpop.permute.xlu0 %1827 }
 0x6e1   : > { %v1822_v50 = vpop.permute.xlu1 %1821  ;;  %5027 = vmatprep.subr.mxu1 %v1828_v49 }
 0x6e2   : > { %5028 = vmatpush3.msra.mxu1 %v1828_v49 }
 0x6e3   : > { %5029 = vmatprep.subr.mxu1 %v1826_v44 }
 0x6e4   : > { %5030 = vmatpush3.msra.mxu1 %v1826_v44  ;;  %v1824_v51 = vpop.permute.xlu0 %1823 }
 0x6e5   : > { %v1816_v57 = vpop.permute.xlu1 %1815  ;;  %5031 = vmatprep.subr.mxu1 %v1824_v51 }
 0x6e6   : > { %5032 = vmatpush3.msra.mxu1 %v1824_v51 }
 0x6e7   : > { %5033 = vmatprep.subr.mxu1 %v1822_v50 }
 0x6e8   : > { %5034 = vmatpush3.msra.mxu1 %v1822_v50  ;;  %v1818_v59 = vpop.permute.xlu0 %1817 }
 0x6e9   : > { %5035 = vmatprep.subr.mxu1 %v1820_v43  ;;  %v1833_v60 = vsel %vm1829_vm6, %v1816_v57, %v1818_v59  ;;  %v1812_v61 = vpop.permute.xlu1 %1811 }
 0x6ea   : > { %5036 = vmatpush3.msra.mxu1 %v1820_v43  ;;  %v6007_v43 = vpack.i.bf16 %v5841_v0, %v5841_v0 }
 0x6eb   : > { %5037 = vmatprep.subr.mxu1 %v1833_v60 }
 0x6ec   : > { %5038 = vmatpush3.msra.mxu1 %v1833_v60  ;;  %v1814_v62 = vpop.permute.xlu0 %1813 }
 0x6ed   : > { %v1832_v63 = vsel %vm1829_vm6, %v1812_v61, %v1814_v62  ;;  %v1804_v3 = vpop.permute.xlu1 %1803 }
 0x6ee   : > { %5039 = vmatprep.subr.mxu1 %v1832_v63 }
 0x6ef   : > { %5040 = vmatpush3.msra.mxu1 %v1832_v63 }
 0x6f0   : > { %5041 = vmatprep.subr.mxu1 %v1831_v4  ;;  %v1806_v5 = vpop.permute.xlu0 %1805 }
 0x6f1   : > { %5042 = vmatpush3.msra.mxu1 %v1831_v4  ;;  %v1830_v27 = vsel %vm1829_vm6, %v1804_v3, %v1806_v5 }
 0x6f2   : > { %5043 = vmatprep.subr.mxu1 %v1830_v27 }
 0x6f3   : > { %5044 = vmatpush3.msra.mxu1 %v1830_v27 }
 0x6f4   : > { %5046 = vmatmul.mubr.msk.f32.vlgmr.msra.gmra.mxu1 %vm1146_vm0, %v1680_v6  ;;  %2133 = vmatprep.subr.mxu1 %v5841_v0 }
 0x6fa   : > { %v1799_v7 = vpop.permute.xlu1 %1798 }
 0x6fd   : > { %v1794_v9 = vpop.permute.xlu0 %1793 }
 0x6fe   : > { %v1999_v46 = vpop.permute.xlu1 %1998 }
 0x701   : > { %v2003_v50 = vpop.permute.xlu0 %2002 }
 0x702   : > { %v1989_v49 = vpop.permute.xlu1 %1988 }
 0x7b4   : > { %v5047_v36 = vpop.f32.mrf.mxu1 }
 0x7b5   : > { %v1921_v8 = vadd.f32 %v5047_v36, %v1799_v7 }
 0x7b6   : > { %v1915_v10 = vpop.f32.mrf.mxu1 }
 0x7b7   : > { %v1925_v11 = vmax.f32 %v1921_v8, 0.0  ;;  %v1916_v14 = vadd.f32 %v1915_v10, %v1794_v9 }
 0x7b9   : > { %1943 = vst.msk [vmem:[#allocation2 + $0x28] sm:$0xff] %vm1705_vm3, %v1925_v11  ;;  %v1924_v15 = vmax.f32 %v1916_v14, 0.0 }
 0x7bb   : > { %1942 = vst.msk [vmem:[#allocation2 + $0x8] sm:$0xff] %vm1705_vm3, %v1924_v15 }
 0x7c0   : > { %v5969_v18 = vld [vmem:[#allocation2 + $0x28] sm:$0xff] }
 0x7c1   : > { %2026 = vrot.lane.b32.xlu1 %v5969_v18, %s7594_s2  ;;  %2223 = vst [vmem:[#allocation2 + $0x28] sm:$0xff] %v5841_v0  ;;  %v1963_v34 = vmul.f32 %v5969_v18, %v5881_v54  ;;  %v1955_v1 = vmul.f32 %v5969_v18, %v5883_v13  ;;  %v1961_v30 = vmul.f32 %v5969_v18, %v5879_v53 }
 0x7c2   : > { %v5974_v19 = vld [vmem:[#allocation2 + $0x8] sm:$0xff]  ;;  %v1959_v58 = vmul.f32 %v5969_v18, %v5885_v33  ;;  %v1965_v12 = vmul.f32 %v5969_v18, %v5877_v52 }
 0x7c3   : > { %2024 = vrot.lane.b32.xlu0 %v5974_v19, %s7594_s2  ;;  %2219 = vst [vmem:[#allocation2 + $0x8] sm:$0xff] %v5841_v0  ;;  %v1962_v21 = vmul.f32 %v5974_v19, %v5881_v54  ;;  %v1960_v25 = vmul.f32 %v5974_v19, %v5879_v53  ;;  %v1957_v40 = vmul.f32 %v5974_v19, %v5885_v33  ;;  %s7608_s2 = smov 123  }
 0x7c4   : > { %v1953_v44 = vmul.f32 %v5974_v19, %v5883_v13 }
 0x7c5   : > { %2010 = vrot.lane.b32.xlu1 %v5969_v18, %s7596_s8 }
 0x7c7   : > { %2008 = vrot.lane.b32.xlu0 %v5974_v19, %s7596_s8  ;;  %s7658_s8 = sld [smem:[#allocation14_spill]] }
 0x7c9   : > { %2022 = vrot.lane.b32.xlu1 %v1963_v34, %s7655_s5 }
 0x7cb   : > { %1990 = vrot.lane.b32.xlu0 %v1955_v1, %s7651_s30 }
 0x7cd   : > { %2016 = vrot.lane.b32.xlu1 %v1961_v30, %s7656_s9 }
 0x7cf   : > { %2020 = vrot.lane.b32.xlu0 %v1962_v21, %s7655_s5 }
 0x7d1   : > { %2004 = vrot.lane.b32.xlu1 %v1959_v58, %s7598_s6  ;;  %v1684_v58 = vld [vmem:[%s7658_s8 + $0x8] sm:$0xff] }
 0x7d2   : > { %4900 = vmatprep.mubr.msk.f32.mxu1 %vm2126_vm8, %v1684_v58 }
 0x7d3   : > { %2014 = vrot.lane.b32.xlu0 %v1960_v25, %s7656_s9  ;;  %v1951_v25 = vmul.f32 %v5969_v18, %v5932_v20 }
 0x7d5   : > { %1984 = vrot.lane.b32.xlu1 %v5889_v56, %s7651_s30  ;;  %v1964_v56 = vmul.f32 %v5974_v19, %v5877_v52 }
 0x7d7   : > { %2000 = vrot.lane.b32.xlu0 %v1957_v40, %s7598_s6  ;;  %s5239_s6 = smov 125  }
 0x7d9   : > { %5167 = vrot.lane.b32.xlu1 %v6007_v43, %s7657_s0 }
 0x7db   : > { %1986 = vrot.lane.b32.xlu0 %v1953_v44, %s7651_s30  ;;  %v1949_v44 = vmul.f32 %v5974_v19, %v5932_v20 }
 0x7dd   : > { %1972 = vrot.lane.b32.xlu1 %v5974_v19, %s7657_s0 }
 0x7df   : > { %1976 = vrot.lane.b32.xlu0 %v5969_v18, %s7657_s0  ;;  %v1688_v18 = vld [vmem:[%s7659_s11 + $0x8] sm:$0xff] }
 0x7e1   : > { %2030 = vrot.lane.b32.xlu1 %v1964_v56, %s7652_s3  ;;  %v1687_v56 = vld [vmem:[%s7659_s11] sm:$0xff]  ;;  %s7660_s11 = smov 120  }
 0x7e3   : > { %2032 = vrot.lane.b32.xlu0 %v1965_v12, %s7652_s3 }
 0x833   : > { %v2027_v51 = vpop.permute.xlu1 %2026 }
 0x834   : > { %2094 = vrot.lane.b32.xlu0 %v2027_v51, %s7601_s10 }
 0x835   : > { %v2025_v57 = vpop.permute.xlu0 %2024 }
 0x837   : > { %v2011_v59 = vpop.permute.xlu1 %2010 }
 0x838   : > { %2082 = vrot.lane.b32.xlu0 %v2011_v59, %s7601_s10 }
 0x839   : > { %v2009_v60 = vpop.permute.xlu0 %2008 }
 0x83b   : > { %v2023_v61 = vpop.permute.xlu1 %2022 }
 0x83d   : > { %v1991_v62 = vpop.permute.xlu0 %1990 }
 0x83e   : > { %v1993_v15 = vsel %vm982_vm15, %v1989_v49, %v1991_v62 }
 0x83f   : > { %v2017_v63 = vpop.permute.xlu1 %2016 }
 0x841   : > { %v2021_v3 = vpop.permute.xlu0 %2020 }
 0x843   : > { %v2005_v4 = vpop.permute.xlu1 %2004 }
 0x844   : > { %v2007_v11 = vsel %vm1776_vm5, %v2003_v50, %v2005_v4 }
 0x845   : > { %v2015_v5 = vpop.permute.xlu0 %2014 }
 0x847   : > { %v1985_v27 = vpop.permute.xlu1 %1984 }
 0x849   : > { %v2001_v6 = vpop.permute.xlu0 %2000 }
 0x84a   : > { %v2006_v30 = vsel %vm1776_vm5, %v1999_v46, %v2001_v6 }
 0x84b   : > { %v5168_v7 = vpop.permute.xlu1 %5167 }
 0x84c   : > { %v5169_v8 = vunpack.i.l.bf16 %v5168_v7  ;;  %v5170_v14 = vunpack.i.h.bf16 %v5168_v7 }
 0x84d   : > { %v1987_v36 = vpop.permute.xlu0 %1986 }
 0x84e   : > { %v1992_v21 = vsel %vm982_vm15, %v1985_v27, %v1987_v36 }
 0x84f   : > { %v1973_v34 = vpop.permute.xlu1 %1972 }
 0x850   : > { %v1978_v1 = vsel %vm917_vm7, %v5170_v14, %v1973_v34 }
 0x851   : > { %v1977_v9 = vpop.permute.xlu0 %1976 }
 0x852   : > { %2062 = vrot.lane.b32.xlu1 %v1977_v9, %s7601_s10  ;;  %v1979_v10 = vsel %vm917_vm7, %v5169_v8, %v1977_v9 }
 0x853   : > { %2060 = vrot.lane.b32.xlu0 %v1979_v10, %s7601_s10 }
 0x855   : > { %v2033_v40 = vpop.permute.xlu0 %2032 }
 0x856   : > { %2092 = vrot.lane.b32.xlu1 %v2025_v57, %s7601_s10 }
 0x857   : > { %2090 = vrot.lane.b32.xlu0 %v2023_v61, %s7601_s10 }
 0x85a   : > { %2080 = vrot.lane.b32.xlu1 %v2009_v60, %s7601_s10 }
 0x85b   : > { %2086 = vrot.lane.b32.xlu0 %v2017_v63, %s7601_s10 }
 0x85e   : > { %2078 = vrot.lane.b32.xlu1 %v2005_v4, %s7601_s10 }
 0x85f   : > { %2076 = vrot.lane.b32.xlu0 %v2007_v11, %s7601_s10 }
 0x862   : > { %2070 = vrot.lane.b32.xlu1 %v1991_v62, %s7601_s10 }
 0x863   : > { %2068 = vrot.lane.b32.xlu0 %v1993_v15, %s7601_s10 }
 0x866   : > { %2088 = vrot.lane.b32.xlu1 %v2021_v3, %s7601_s10 }
 0x867   : > { %2056 = vrot.lane.b32.xlu0 %v1978_v1, %s7601_s10 }
 0x86a   : > { %2084 = vrot.lane.b32.xlu1 %v2015_v5, %s7601_s10 }
 0x86b   : > { %2072 = vrot.lane.b32.xlu0 %v2006_v30, %s7601_s10 }
 0x86e   : > { %2058 = vrot.lane.b32.xlu1 %v1973_v34, %s7601_s10 }
 0x86f   : > { %2064 = vrot.lane.b32.xlu0 %v1992_v21, %s7601_s10 }
 0x872   : > { %2074 = vrot.lane.b32.xlu1 %v2001_v6, %s7601_s10 }
 0x873   : > { %2052 = vrot.lane.b32.xlu0 %v5939_v24, %s7601_s10 }
 0x876   : > { %2066 = vrot.lane.b32.xlu1 %v1987_v36, %s7601_s10 }
 0x877   : > { %2048 = vrot.lane.b32.xlu0 %v5939_v24, %s7601_s10  ;;  %v2031_v24 = vpop.permute.xlu1 %2030 }
 0x87a   : > { %2054 = vrot.lane.b32.xlu1 %v1951_v25, %s7601_s10 }
 0x87b   : > { %2098 = vrot.lane.b32.xlu0 %v2033_v40, %s7601_s10 }
 0x87e   : > { %2050 = vrot.lane.b32.xlu1 %v1949_v44, %s7601_s10 }
 0x87f   : > { %2036 = vperm.xlu0 %5149, %v1687_v56  }
 0x882   : > { %2096 = vrot.lane.b32.xlu1 %v2031_v24, %s7601_s10  ;;  %v1683_v24 = vld [vmem:[%s7658_s8] sm:$0xff]  ;;  %s7663_s10 = sld [smem:[#allocation17_spill]] }
 0x886   : > { %2041 = vperm.xlu1 %5165, %v1688_v18   ;;  %v1686_v18 = vld [vmem:[%s7658_s8 + $0x18] sm:$0xff] }
 0x8a6   : > { %v2095_v12 = vpop.permute.xlu0 %2094 }
 0x8a7   : > { %2134 = vmatpush1.msra.mxu1 %v2095_v12  ;;  %v1685_v12 = vld [vmem:[%s7658_s8 + $0x10] sm:$0xff]  ;;  %s7666_s8 = smov 124  }
 0x8a8   : > { %2135 = vmatprep.subr.mxu1 %v5841_v0 }
 0x8aa   : > { %v2083_v19 = vpop.permute.xlu0 %2082 }
 0x8c4   : > { %v2063_v46 = vpop.permute.xlu1 %2062 }
 0x8c5   : > { %v2061_v49 = vpop.permute.xlu0 %2060 }
 0x8c6   : > { %v2103_v34 = vsel %vm1829_vm6, %v2061_v49, %v2063_v46 }
 0x8c8   : > { %v2093_v50 = vpop.permute.xlu1 %2092 }
 0x8c9   : > { %2136 = vmatpush1.msra.mxu1 %v2093_v50  ;;  %v2091_v51 = vpop.permute.xlu0 %2090  ;;  %v2216_v50 = vld [vmem:[%s7563_s24 + $0x30] sm:$0xff] }
 0x8ca   : > { %2137 = vmatprep.subr.mxu1 %v5841_v0 }
 0x8cb   : > { %2138 = vmatpush1.msra.mxu1 %v2091_v51  ;;  %v2215_v51 = vld [vmem:[%s7563_s24 + $0x28] sm:$0xff] }
 0x8cc   : > { %v2081_v57 = vpop.permute.xlu1 %2080  ;;  %2139 = vmatprep.subr.mxu1 %v5841_v0 }
 0x8cd   : > { %v2087_v59 = vpop.permute.xlu0 %2086 }
 0x8d0   : > { %v2079_v60 = vpop.permute.xlu1 %2078 }
 0x8d1   : > { %v2077_v61 = vpop.permute.xlu0 %2076 }
 0x8d2   : > { %v2107_v36 = vsel %vm1829_vm6, %v2077_v61, %v2079_v60 }
 0x8d4   : > { %v2071_v62 = vpop.permute.xlu1 %2070 }
 0x8d5   : > { %v2069_v63 = vpop.permute.xlu0 %2068 }
 0x8d6   : > { %v2105_v10 = vsel %vm1829_vm6, %v2069_v63, %v2071_v62  ;;  %v2214_v63 = vld [vmem:[%s7563_s24 + $0x20] sm:$0xff] }
 0x8d8   : > { %v2089_v3 = vpop.permute.xlu1 %2088 }
 0x8d9   : > { %2140 = vmatpush1.msra.mxu1 %v2089_v3  ;;  %v2057_v4 = vpop.permute.xlu0 %2056  ;;  %v2213_v3 = vld [vmem:[%s7563_s24 + $0x18] sm:$0xff] }
 0x8da   : > { %2141 = vmatprep.subr.mxu1 %v5841_v0 }
 0x8db   : > { %2142 = vmatpush1.msra.mxu1 %v2087_v59 }
 0x8dc   : > { %v2085_v5 = vpop.permute.xlu1 %2084  ;;  %2143 = vmatprep.subr.mxu1 %v5841_v0 }
 0x8dd   : > { %2144 = vmatpush1.msra.mxu1 %v2085_v5  ;;  %v2073_v27 = vpop.permute.xlu0 %2072 }
 0x8de   : > { %2145 = vmatprep.subr.mxu1 %v5841_v0 }
 0x8df   : > { %2146 = vmatpush1.msra.mxu1 %v2083_v19  ;;  %v2217_v19 = vld [vmem:[%s7563_s24 + $0x38] sm:$0xff] }
 0x8e0   : > { %v2059_v6 = vpop.permute.xlu1 %2058  ;;  %2147 = vmatprep.subr.mxu1 %v5841_v0  ;;  %5048 = vmatprep.subr.mxu0 %v2217_v19 }
 0x8e1   : > { %2148 = vmatpush1.msra.mxu1 %v2081_v57  ;;  %v2065_v7 = vpop.permute.xlu0 %2064  ;;  %v2102_v30 = vsel %vm1829_vm6, %v2057_v4, %v2059_v6  ;;  %5049 = vmatpush3.msra.mxu0 %v2217_v19  ;;  %v2212_v6 = vld [vmem:[%s7563_s24 + $0x10] sm:$0xff] }
 0x8e2   : > { %2149 = vmatprep.subr.mxu1 %v5841_v0  ;;  %5050 = vmatprep.subr.mxu0 %v2216_v50 }
 0x8e3   : > { %2150 = vmatpush1.msra.mxu1 %v2107_v36  ;;  %5051 = vmatpush3.msra.mxu0 %v2216_v50 }
 0x8e4   : > { %v2075_v8 = vpop.permute.xlu1 %2074  ;;  %2151 = vmatprep.subr.mxu1 %v5841_v0  ;;  %5052 = vmatprep.subr.mxu0 %v2215_v51 }
 0x8e5   : > { %v2106_v9 = vsel %vm1829_vm6, %v2073_v27, %v2075_v8  ;;  %v2053_v11 = vpop.permute.xlu0 %2052  ;;  %5053 = vmatpush3.msra.mxu0 %v2215_v51  ;;  %v2210_v8 = vld [vmem:[%s7563_s24] sm:$0xff] }
 0x8e6   : > { %2152 = vmatpush1.msra.mxu1 %v2106_v9  ;;  %5054 = vmatprep.subr.mxu0 %v2214_v63  ;;  %v2379_v9 = vand.u32 3, %v5399_v2 }
 0x8e7   : > { %2153 = vmatprep.subr.mxu1 %v5841_v0  ;;  %5055 = vmatpush3.msra.mxu0 %v2214_v63 }
 0x8e8   : > { %v2067_v14 = vpop.permute.xlu1 %2066  ;;  %2154 = vmatpush1.msra.mxu1 %v2105_v10  ;;  %5056 = vmatprep.subr.mxu0 %v2213_v3  ;;  %vm2387_vm1 = vcmp.ne.s32.totalorder %v2379_v9, 0  ;;  %vm2390_vm2 = vcmp.ne.s32.totalorder %v2379_v9, 3 }
 0x8e9   : > { %v2104_v15 = vsel %vm1829_vm6, %v2065_v7, %v2067_v14  ;;  %2155 = vmatprep.subr.mxu1 %v5841_v0  ;;  %v2049_v21 = vpop.permute.xlu0 %2048  ;;  %5057 = vmatpush3.msra.mxu0 %v2213_v3  ;;  %v2211_v7 = vld [vmem:[%s7563_s24 + $0x8] sm:$0xff]  ;;  %v4905_v2 = vsel %vm2390_vm2, 1.0, %v5841_v0  ;;  %vm2570_vm2 = vcmask 39936  }
 0x8ea   : > { %2156 = vmatpush1.msra.mxu1 %v2104_v15  ;;  %5058 = vmatprep.subr.mxu0 %v2212_v6 }
 0x8eb   : > { %2157 = vmatprep.subr.mxu1 %v5841_v0  ;;  %5059 = vmatpush3.msra.mxu0 %v2212_v6 }
 0x8ec   : > { %v2055_v1 = vpop.permute.xlu1 %2054  ;;  %2158 = vmatpush1.msra.mxu1 %v2103_v34  ;;  %5060 = vmatprep.subr.mxu0 %v2211_v7 }
 0x8ed   : > { %2159 = vmatprep.subr.mxu1 %v5841_v0  ;;  %v2101_v58 = vsel %vm1829_vm6, %v2053_v11, %v2055_v1  ;;  %v2099_v44 = vpop.permute.xlu0 %2098  ;;  %5061 = vmatpush3.msra.mxu0 %v2211_v7  ;;  %v6151_v11 = vsel %vm2387_vm1, 1.0, %v5841_v0  ;;  %vm2475_vm1 = vcmask 1014784  }
 0x8ee   : > { %2160 = vmatpush1.msra.mxu1 %v2102_v30  ;;  %5062 = vmatprep.subr.mxu0 %v2210_v8 }
 0x8ef   : > { %2161 = vmatprep.subr.mxu1 %v5841_v0  ;;  %5063 = vmatpush3.msra.mxu0 %v2210_v8 }
 0x8f0   : > { %v2051_v25 = vpop.permute.xlu1 %2050  ;;  %2162 = vmatpush1.msra.mxu1 %v2101_v58  ;;  %2603 = vmatprep.subr.mxu0 %v5841_v0 }
 0x8f1   : > { %v2100_v40 = vsel %vm1829_vm6, %v2049_v21, %v2051_v25  ;;  %2163 = vmatprep.subr.mxu1 %v5841_v0 }
 0x8f2   : > { %2164 = vmatpush1.msra.mxu1 %v2100_v40 }
 0x8f3   : > { %2193 = vmatprep.subr.mxu1 %v5841_v0 }
 0x8f4   : > { %v2097_v56 = vpop.permute.xlu1 %2096  ;;  %2194 = vmatpush2.msra.mxu1 %v2099_v44 }
 0x8f5   : > { %2195 = vmatprep.subr.mxu1 %v5841_v0 }
 0x8f6   : > { %2196 = vmatpush2.msra.mxu1 %v2097_v56 }
 0x8f7   : > { %2198 = vmatmul.mubr.f32.vlgmr.msra.gmra.mxu1 %v1683_v24  ;;  %2886 = vmatprep.subr.mxu1 %v5841_v0 }
 0x8f8   : > { %4901 = vmatprep.mubr.msk.f32.mxu1 %vm2126_vm8, %v1686_v18 }
 0x8fa   : > { %v2037_v46 = vpop.permute.xlu0 %2036 }
 0x8fb   : > { %2203 = vmatmul.mubr.f32.gmra.mxu1 %v1685_v12 }
 0x901   : > { %v2042_v61 = vpop.permute.xlu1 %2041 }
 0x9b7   : > { %v2199_v49 = vpop.f32.mrf.mxu1 }
 0x9b8   : > { %v2200_v57 = vadd.f32 %v2199_v49, %v2037_v46 }
 0x9b9   : > { %v2201_v59 = vpop.f32.mrf.mxu1 }
 0x9ba   : > { %v6118_v60 = vmax.f32 %v2200_v57, 0.0 }
 0x9bb   : > { %v2204_v62 = vpop.f32.mrf.mxu1 }
 0x9bc   : > { %2234 = vst.msk [vmem:[#allocation2 + $0x8] sm:$0xff] %vm1705_vm3, %v6118_v60  ;;  %v2205_v4 = vadd.f32 %v2204_v62, %v2042_v61 }
 0x9bd   : > { %v2206_v5 = vpop.f32.mrf.mxu1 }
 0x9be   : > { %v6128_v27 = vmax.f32 %v2205_v4, 0.0 }
 0x9c0   : > { %2235 = vst.msk [vmem:[#allocation2 + $0x28] sm:$0xff] %vm1705_vm3, %v6128_v27 }
 0x9c3   : > { %v2236_v36 = vld [vmem:[#allocation2 + $0x8] sm:$0xff] }
 0x9c4   : > { %2240 = vrot.lane.b32.xlu0 %v2236_v36, %s7657_s0  ;;  %2358 = vst [vmem:[#allocation2 + $0x8] sm:$0xff] %v5841_v0 }
 0x9c7   : > { %v2237_v10 = vld [vmem:[#allocation2 + $0x28] sm:$0xff] }
 0x9c8   : > { %2242 = vrot.lane.b32.xlu1 %v2237_v10, %s7657_s0  ;;  %2362 = vst [vmem:[#allocation2 + $0x28] sm:$0xff] %v5841_v0  ;;  %2248 = vrot.lane.b32.xlu0 %v2236_v36, %s7660_s11 }
 0x9cc   : > { %2250 = vrot.lane.b32.xlu1 %v2237_v10, %s7660_s11  ;;  %2256 = vrot.lane.b32.xlu0 %v2236_v36, %s7661_s23 }
 0x9d0   : > { %2258 = vrot.lane.b32.xlu1 %v2237_v10, %s7661_s23  ;;  %2425 = vrot.lane.b32.xlu0 %v6151_v11, %s5238_s7 }
 0x9d4   : > { %2420 = vrot.lane.b32.xlu1 %v4905_v2, %s7650_s29  ;;  %2413 = vrot.lane.b32.xlu0 %v6151_v11, %s7657_s0  ;;  %s7613_s29 = smov 124  }
 0x9d8   : > { %2406 = vrot.lane.b32.xlu1 %v4905_v2, %s5239_s6  ;;  %2430 = vrot.lane.b32.xlu0 %v4905_v2, %s7611_s1  ;;  %s7662_s6 = sld [smem:[#allocation16_spill]] }
 0xa36   : > { %v2241_v14 = vpop.permute.xlu0 %2240 }
 0xa37   : > { %v2246_v1 = vmax.f32 %v6118_v60, %v2241_v14 }
 0xa3a   : > { %v2243_v15 = vpop.permute.xlu1 %2242  ;;  %v2249_v34 = vpop.permute.xlu0 %2248 }
 0xa3b   : > { %v2254_v30 = vmax.f32 %v2246_v1, %v2249_v34  ;;  %v2247_v25 = vmax.f32 %v6128_v27, %v2243_v15 }
 0xa3e   : > { %v2251_v21 = vpop.permute.xlu1 %2250  ;;  %v2257_v58 = vpop.permute.xlu0 %2256 }
 0xa3f   : > { %v2262_v40 = vmax.f32 %v2254_v30, %v2257_v58  ;;  %v2255_v44 = vmax.f32 %v2247_v25, %v2251_v21 }
 0xa41   : > { %5064 = vmatprep.mubr.msk.f32.mxu0 %vm1705_vm3, %v2262_v40 }
 0xa42   : > { %v2259_v56 = vpop.permute.xlu1 %2258  ;;  %v6164_v18 = vpop.permute.xlu0 %2425 }
 0xa43   : > { %v2263_v24 = vmax.f32 %v2255_v44, %v2259_v56 }
 0xa45   : > { %5065 = vmatmul.mubr.msk.f32.vlgmr.msra.gmra.mxu0 %vm1705_vm3, %v2263_v24 }
 0xa46   : > { %v6166_v12 = vpop.permute.xlu1 %2420  ;;  %v6168_v19 = vpop.permute.xlu0 %2413 }
 0xa47   : > { %v2416_v46 = vmul.f32 %v5841_v0, %v6168_v19 }
 0xa49   : > { %2467 = vrot.lane.b32.xlu1 %v2416_v46, %s7613_s29  ;;  %2471 = vrot.lane.b32.xlu0 %v2416_v46, %s7613_s29 }
 0xa4a   : > { %v6174_v49 = vpop.permute.xlu1 %2406  ;;  %v6222_v36 = vpop.permute.xlu0 %2430 }
 0xa4b   : > { %v2411_v50 = vmul.f32 %v5841_v0, %v6174_v49 }
 0xa4d   : > { %2457 = vrot.lane.b32.xlu1 %v2411_v50, %s7651_s30 }
 0xabb   : > { %v2468_v10 = vpop.permute.xlu1 %2467  ;;  %v2472_v14 = vpop.permute.xlu0 %2471 }
 0xabf   : > { %v2458_v2 = vpop.permute.xlu1 %2457 }
 0xb05   : > { %v5066_v51 = vpop.f32.mrf.mxu0 }
 0xb06   : > { %2374 = vst.msk [vmem:[#allocation2 + $0x28] sm:$0xff] %vm2126_vm8, %v5066_v51 }
 0xb07   : > { %v2336_v57 = vpop.f32.mrf.mxu0 }
 0xb08   : > { %2373 = vst.msk [vmem:[#allocation2 + $0x8] sm:$0xff] %vm2126_vm8, %v2336_v57 }
 0xb0d   : > { %v6181_v59 = vld [vmem:[#allocation2 + $0x28] sm:$0xff] }
 0xb0e   : > { %2685 = vst [vmem:[#allocation2 + $0x28] sm:$0xff] %v5841_v0  ;;  %2496 = vrot.lane.b32.xlu1 %v6181_v59, %s7661_s23  ;;  %v2429_v62 = vmul.f32 %v6164_v18, %v6181_v59  ;;  %v2412_v63 = vmul.f32 %v6174_v49, %v6181_v59  ;;  %v2419_v4 = vmul.f32 %v6168_v19, %v6181_v59 }
 0xb0f   : > { %v6186_v61 = vld [vmem:[#allocation2 + $0x8] sm:$0xff]  ;;  %v2434_v8 = vmul.f32 %v6222_v36, %v6181_v59 }
 0xb10   : > { %2681 = vst [vmem:[#allocation2 + $0x8] sm:$0xff] %v5841_v0  ;;  %2494 = vrot.lane.b32.xlu0 %v6186_v61, %s7661_s23  ;;  %v2424_v0 = vmul.f32 %v6166_v12, %v6181_v59  ;;  %v2428_v3 = vmul.f32 %v6164_v18, %v6186_v61  ;;  %v2423_v5 = vmul.f32 %v6166_v12, %v6186_v61 }
 0xb11   : > { %v2417_v6 = vmul.f32 %v6168_v19, %v6186_v61  ;;  %v2410_v7 = vmul.f32 %v6174_v49, %v6186_v61  ;;  %v2433_v9 = vmul.f32 %v6222_v36, %v6186_v61 }
 0xb12   : > { %2480 = vrot.lane.b32.xlu1 %v6181_v59, %s7608_s2 }
 0xb14   : > { %2478 = vrot.lane.b32.xlu0 %v6186_v61, %s7608_s2 }
 0xb16   : > { %2492 = vrot.lane.b32.xlu1 %v2429_v62, %s7660_s11 }
 0xb18   : > { %2459 = vrot.lane.b32.xlu0 %v2412_v63, %s7651_s30 }
 0xb1a   : > { %2486 = vrot.lane.b32.xlu1 %v2424_v0, %s7606_s28 }
 0xb1c   : > { %2490 = vrot.lane.b32.xlu0 %v2428_v3, %s7660_s11 }
 0xb1e   : > { %2473 = vrot.lane.b32.xlu1 %v2419_v4, %s7613_s29 }
 0xb20   : > { %2484 = vrot.lane.b32.xlu0 %v2423_v5, %s7606_s28 }
 0xb22   : > { %2453 = vrot.lane.b32.xlu1 %v2411_v50, %s7651_s30 }
 0xb24   : > { %2469 = vrot.lane.b32.xlu0 %v2417_v6, %s7613_s29 }
 0xb26   : > { %5172 = vrot.lane.b32.xlu1 %v6007_v43, %s7657_s0 }
 0xb28   : > { %2455 = vrot.lane.b32.xlu0 %v2410_v7, %s7651_s30 }
 0xb2a   : > { %2441 = vrot.lane.b32.xlu1 %v6186_v61, %s7657_s0 }
 0xb2c   : > { %2445 = vrot.lane.b32.xlu0 %v6181_v59, %s7657_s0 }
 0xb2e   : > { %2502 = vrot.lane.b32.xlu1 %v2434_v8, %s7656_s9 }
 0xb30   : > { %2398 = vrot.lane.b32.xlu0 %v6151_v11, %s7608_s2  ;;  %s7667_s2 = smov 5  }
 0xb34   : > { %2500 = vrot.lane.b32.xlu0 %v2433_v9, %s7656_s9  ;;  %v6262_v9 = vld [vmem:[#allocation2 + $0x48] sm:$0xff] }
 0xb80   : > { %v2497_v15 = vpop.permute.xlu1 %2496 }
 0xb81   : > { %2564 = vrot.lane.b32.xlu1 %v2497_v15, %s7611_s1 }
 0xb82   : > { %v2495_v34 = vpop.permute.xlu0 %2494 }
 0xb84   : > { %v2481_v1 = vpop.permute.xlu1 %2480 }
 0xb85   : > { %2552 = vrot.lane.b32.xlu1 %v2481_v1, %s7611_s1  ;;  %v2350_v1 = vld [vmem:[%s7663_s10 + $0x8] sm:$0xff] }
 0xb86   : > { %v2479_v30 = vpop.permute.xlu0 %2478 }
 0xb88   : > { %v2493_v21 = vpop.permute.xlu1 %2492 }
 0xb8a   : > { %v2460_v58 = vpop.permute.xlu0 %2459 }
 0xb8b   : > { %v2462_v3 = vsel %vm982_vm15, %v2458_v2, %v2460_v58 }
 0xb8c   : > { %v2487_v25 = vpop.permute.xlu1 %2486 }
 0xb8e   : > { %v2491_v11 = vpop.permute.xlu0 %2490 }
 0xb90   : > { %v2474_v40 = vpop.permute.xlu1 %2473 }
 0xb91   : > { %v2477_v63 = vsel %vm2475_vm1, %v2472_v14, %v2474_v40 }
 0xb92   : > { %v2485_v44 = vpop.permute.xlu0 %2484 }
 0xb94   : > { %v2454_v56 = vpop.permute.xlu1 %2453 }
 0xb96   : > { %v2470_v24 = vpop.permute.xlu0 %2469 }
 0xb97   : > { %v2476_v6 = vsel %vm2475_vm1, %v2468_v10, %v2470_v24  ;;  %v2346_v10 = vld [vmem:[%s7662_s6 + $0x8] sm:$0xff] }
 0xb98   : > { %v5173_v46 = vpop.permute.xlu1 %5172  ;;  %4906 = vmatprep.mubr.msk.f32.mxu0 %vm2126_vm8, %v2346_v10 }
 0xb99   : > { %v5174_v51 = vunpack.i.l.bf16 %v5173_v46  ;;  %v5175_v0 = vunpack.i.h.bf16 %v5173_v46 }
 0xb9a   : > { %v2456_v50 = vpop.permute.xlu0 %2455 }
 0xb9b   : > { %v2461_v8 = vsel %vm982_vm15, %v2454_v56, %v2456_v50 }
 0xb9c   : > { %v2442_v4 = vpop.permute.xlu1 %2441 }
 0xb9d   : > { %v2447_v5 = vsel %vm917_vm7, %v5175_v0, %v2442_v4 }
 0xb9e   : > { %v2446_v57 = vpop.permute.xlu0 %2445 }
 0xb9f   : > { %2532 = vrot.lane.b32.xlu0 %v2446_v57, %s7611_s1  ;;  %v2448_v62 = vsel %vm917_vm7, %v5174_v51, %v2446_v57 }
 0xba0   : > { %2530 = vrot.lane.b32.xlu1 %v2448_v62, %s7611_s1  ;;  %v2503_v15 = vpop.permute.xlu1 %2502 }
 0xba2   : > { %v6257_v7 = vpop.permute.xlu0 %2398 }
 0xba3   : > { %2562 = vrot.lane.b32.xlu0 %v2495_v34, %s7611_s1  ;;  %v6266_v2 = vmul.f32 %v6262_v9, %v6257_v7  ;;  %v2404_v14 = vmul.f32 %v6257_v7, %v6181_v59  ;;  %v2402_v34 = vmul.f32 %v6257_v7, %v6186_v61  ;;  %v2349_v59 = vld [vmem:[%s7663_s10] sm:$0xff]  ;;  %v6297_v61 = vmul.f32 %v6262_v9, %v6174_v49  ;;  %s7678_s10 = smov 17  }
 0xba4   : > { %2560 = vrot.lane.b32.xlu1 %v2493_v21, %s7611_s1  ;;  %v2710_v21 = vmul.f32 %v6262_v9, %v6168_v19 }
 0xba7   : > { %2550 = vrot.lane.b32.xlu0 %v2479_v30, %s7611_s1  ;;  %v2501_v30 = vpop.permute.xlu0 %2500 }
 0xba8   : > { %2556 = vrot.lane.b32.xlu1 %v2487_v25, %s7611_s1 }
 0xbab   : > { %2548 = vrot.lane.b32.xlu0 %v2474_v40, %s7611_s1 }
 0xbac   : > { %2546 = vrot.lane.b32.xlu1 %v2477_v63, %s7611_s1 }
 0xbaf   : > { %2540 = vrot.lane.b32.xlu0 %v2460_v58, %s7611_s1 }
 0xbb0   : > { %2538 = vrot.lane.b32.xlu1 %v2462_v3, %s7611_s1 }
 0xbb3   : > { %2558 = vrot.lane.b32.xlu0 %v2491_v11, %s7611_s1 }
 0xbb4   : > { %2526 = vrot.lane.b32.xlu1 %v2447_v5, %s7611_s1 }
 0xbb7   : > { %2554 = vrot.lane.b32.xlu0 %v2485_v44, %s7611_s1 }
 0xbb8   : > { %2542 = vrot.lane.b32.xlu1 %v2476_v6, %s7611_s1 }
 0xbbb   : > { %2528 = vrot.lane.b32.xlu0 %v2442_v4, %s7611_s1 }
 0xbbc   : > { %2534 = vrot.lane.b32.xlu1 %v2461_v8, %s7611_s1 }
 0xbbf   : > { %2544 = vrot.lane.b32.xlu0 %v2470_v24, %s7611_s1 }
 0xbc0   : > { %2522 = vrot.lane.b32.xlu1 %v6266_v2, %s7611_s1 }
 0xbc3   : > { %2536 = vrot.lane.b32.xlu0 %v2456_v50, %s7611_s1 }
 0xbc4   : > { %2518 = vrot.lane.b32.xlu1 %v6266_v2, %s7611_s1 }
 0xbc7   : > { %2524 = vrot.lane.b32.xlu0 %v2404_v14, %s7611_s1 }
 0xbc8   : > { %2568 = vrot.lane.b32.xlu1 %v2503_v15, %s7611_s1 }
 0xbcb   : > { %2520 = vrot.lane.b32.xlu0 %v2402_v34, %s7611_s1 }
 0xbcc   : > { %2511 = vperm.xlu1 %5165, %v2350_v1  }
 0xbcf   : > { %2566 = vrot.lane.b32.xlu0 %v2501_v30, %s7611_s1  ;;  %s7664_s1 = smov 123  }
 0xbd0   : > { %2752 = vrot.lane.b32.xlu1 %v2710_v21, %s7613_s29 }
 0xbd3   : > { %2506 = vperm.xlu0 %5149, %v2349_v59  }
 0xbd4   : > { %2742 = vrot.lane.b32.xlu1 %v6297_v61, %s7651_s30 }
 0xbd7   : > { %2756 = vrot.lane.b32.xlu0 %v2710_v21, %s7613_s29  ;;  %s7665_s29 = smov 122  }
 0xbf3   : > { %v2565_v58 = vpop.permute.xlu1 %2564 }
 0xbf4   : > { %2604 = vmatpush1.msra.mxu0 %v2565_v58 }
 0xbf5   : > { %2605 = vmatprep.subr.mxu0 %v6262_v9 }
 0xbf7   : > { %v2553_v25 = vpop.permute.xlu1 %2552 }
 0xc11   : > { %v2533_v11 = vpop.permute.xlu0 %2532 }
 0xc12   : > { %v2531_v40 = vpop.permute.xlu1 %2530 }
 0xc13   : > { %v2574_v21 = vsel %vm2570_vm2, %v2531_v40, %v2533_v11 }
 0xc15   : > { %v2563_v44 = vpop.permute.xlu0 %2562 }
 0xc16   : > { %v2561_v56 = vpop.permute.xlu1 %2560  ;;  %2606 = vmatpush1.msra.mxu0 %v2563_v44 }
 0xc17   : > { %2607 = vmatprep.subr.mxu0 %v6262_v9 }
 0xc18   : > { %2608 = vmatpush1.msra.mxu0 %v2561_v56 }
 0xc19   : > { %v2551_v24 = vpop.permute.xlu0 %2550  ;;  %2609 = vmatprep.subr.mxu0 %v6262_v9 }
 0xc1a   : > { %v2557_v46 = vpop.permute.xlu1 %2556 }
 0xc1d   : > { %v2549_v50 = vpop.permute.xlu0 %2548 }
 0xc1e   : > { %v2547_v51 = vpop.permute.xlu1 %2546 }
 0xc1f   : > { %v2578_v8 = vsel %vm2570_vm2, %v2547_v51, %v2549_v50  ;;  %v2348_v50 = vld [vmem:[%s7662_s6 + $0x18] sm:$0xff]  ;;  %v2347_v51 = vld [vmem:[%s7662_s6 + $0x10] sm:$0xff] }
 0xc21   : > { %v2541_v57 = vpop.permute.xlu0 %2540 }
 0xc22   : > { %v2539_v62 = vpop.permute.xlu1 %2538 }
 0xc23   : > { %v2576_v15 = vsel %vm2570_vm2, %v2539_v62, %v2541_v57 }
 0xc25   : > { %v2559_v63 = vpop.permute.xlu0 %2558 }
 0xc26   : > { %v2527_v0 = vpop.permute.xlu1 %2526  ;;  %2610 = vmatpush1.msra.mxu0 %v2559_v63 }
 0xc27   : > { %2611 = vmatprep.subr.mxu0 %v6262_v9 }
 0xc28   : > { %2612 = vmatpush1.msra.mxu0 %v2557_v46  ;;  %v2345_v46 = vld [vmem:[%s7662_s6] sm:$0xff] }
 0xc29   : > { %2613 = vmatprep.subr.mxu0 %v6262_v9  ;;  %v2555_v3 = vpop.permute.xlu0 %2554 }
 0xc2a   : > { %v2543_v4 = vpop.permute.xlu1 %2542  ;;  %2614 = vmatpush1.msra.mxu0 %v2555_v3 }
 0xc2b   : > { %2615 = vmatprep.subr.mxu0 %v6262_v9 }
 0xc2c   : > { %2616 = vmatpush1.msra.mxu0 %v2553_v25 }
 0xc2d   : > { %2617 = vmatprep.subr.mxu0 %v6262_v9  ;;  %v2529_v5 = vpop.permute.xlu0 %2528 }
 0xc2e   : > { %v2535_v6 = vpop.permute.xlu1 %2534  ;;  %2618 = vmatpush1.msra.mxu0 %v2551_v24  ;;  %v2573_v58 = vsel %vm2570_vm2, %v2527_v0, %v2529_v5 }
 0xc2f   : > { %2619 = vmatprep.subr.mxu0 %v6262_v9 }
 0xc30   : > { %2620 = vmatpush1.msra.mxu0 %v2578_v8 }
 0xc31   : > { %v2545_v10 = vpop.permute.xlu0 %2544  ;;  %2621 = vmatprep.subr.mxu0 %v6262_v9 }
 0xc32   : > { %v2577_v14 = vsel %vm2570_vm2, %v2543_v4, %v2545_v10  ;;  %v2523_v34 = vpop.permute.xlu1 %2522 }
 0xc33   : > { %2622 = vmatpush1.msra.mxu0 %v2577_v14 }
 0xc34   : > { %2623 = vmatprep.subr.mxu0 %v6262_v9 }
 0xc35   : > { %2624 = vmatpush1.msra.mxu0 %v2576_v15  ;;  %v2537_v1 = vpop.permute.xlu0 %2536 }
 0xc36   : > { %v2575_v30 = vsel %vm2570_vm2, %v2535_v6, %v2537_v1  ;;  %2625 = vmatprep.subr.mxu0 %v6262_v9  ;;  %v2519_v25 = vpop.permute.xlu1 %2518 }
 0xc37   : > { %2626 = vmatpush1.msra.mxu0 %v2575_v30 }
 0xc38   : > { %2627 = vmatprep.subr.mxu0 %v6262_v9 }
 0xc39   : > { %2628 = vmatpush1.msra.mxu0 %v2574_v21  ;;  %v2525_v59 = vpop.permute.xlu0 %2524 }
 0xc3a   : > { %2629 = vmatprep.subr.mxu0 %v6262_v9  ;;  %v2572_v44 = vsel %vm2570_vm2, %v2523_v34, %v2525_v59  ;;  %v2569_v11 = vpop.permute.xlu1 %2568 }
 0xc3b   : > { %2630 = vmatpush1.msra.mxu0 %v2573_v58 }
 0xc3c   : > { %2631 = vmatprep.subr.mxu0 %v6262_v9 }
 0xc3d   : > { %2632 = vmatpush1.msra.mxu0 %v2572_v44  ;;  %v2521_v56 = vpop.permute.xlu0 %2520 }
 0xc3e   : > { %v2571_v24 = vsel %vm2570_vm2, %v2519_v25, %v2521_v56  ;;  %2633 = vmatprep.subr.mxu0 %v6262_v9 }
 0xc3f   : > { %2634 = vmatpush1.msra.mxu0 %v2571_v24 }
 0xc40   : > { %2663 = vmatprep.subr.mxu0 %v6262_v9 }
 0xc41   : > { %2664 = vmatpush2.msra.mxu0 %v2569_v11  ;;  %v2567_v40 = vpop.permute.xlu0 %2566 }
 0xc42   : > { %2665 = vmatprep.subr.mxu0 %v6262_v9 }
 0xc43   : > { %2666 = vmatpush2.msra.mxu0 %v2567_v40 }
 0xc44   : > { %2668 = vmatmul.mubr.f32.vlgmr.msra.gmra.mxu0 %v2345_v46 }
 0xc45   : > { %4907 = vmatprep.mubr.msk.f32.mxu0 %vm2126_vm8, %v2348_v50 }
 0xc47   : > { %v2512_v4 = vpop.permute.xlu1 %2511 }
 0xc48   : > { %2673 = vmatmul.mubr.f32.gmra.mxu0 %v2347_v51 }
 0xc4e   : > { %v2507_v57 = vpop.permute.xlu0 %2506 }
 0xc52   : > { %v2757_v25 = vpop.permute.xlu0 %2756 }
 0xd04   : > { %v2669_v62 = vpop.f32.mrf.mxu0 }
 0xd05   : > { %v2670_v63 = vadd.f32 %v2669_v62, %v2507_v57 }
 0xd06   : > { %v2671_v0 = vpop.f32.mrf.mxu0 }
 0xd07   : > { %v2678_v3 = vmax.f32 %v2670_v63, 0.0 }
 0xd08   : > { %v2674_v5 = vpop.f32.mrf.mxu0 }
 0xd09   : > { %2696 = vst.msk [vmem:[#allocation2 + $0x8] sm:$0xff] %vm2126_vm8, %v2678_v3  ;;  %v2675_v6 = vadd.f32 %v2674_v5, %v2512_v4 }
 0xd0a   : > { %v2676_v8 = vpop.f32.mrf.mxu0 }
 0xd0b   : > { %v2679_v10 = vmax.f32 %v2675_v6, 0.0 }
 0xd0d   : > { %2697 = vst.msk [vmem:[#allocation2 + $0x28] sm:$0xff] %vm2126_vm8, %v2679_v10 }
 0xd10   : > { %v6339_v14 = vld [vmem:[#allocation2 + $0x8] sm:$0xff] }
 0xd11   : > { %3058 = vst [vmem:[#allocation2 + $0x8] sm:$0xff] %v6262_v9  ;;  %2778 = vrot.lane.b32.xlu0 %v6339_v14, %s7661_s23  ;;  %v2716_v34 = vmul.f32 %v6339_v14, %v6164_v18  ;;  %v2714_v30 = vmul.f32 %v6339_v14, %v6166_v12  ;;  %v2711_v59 = vmul.f32 %v6339_v14, %v6168_v19 }
 0xd12   : > { %3073 = vst.msk [vmem:[#allocation2 + $0x8] sm:$0xff] %vm1705_vm3, %v6118_v60  ;;  %v2707_v58 = vmul.f32 %v6339_v14, %v6174_v49 }
 0xd14   : > { %v6346_v15 = vld [vmem:[#allocation2 + $0x28] sm:$0xff] }
 0xd15   : > { %3062 = vst [vmem:[#allocation2 + $0x28] sm:$0xff] %v6262_v9  ;;  %2780 = vrot.lane.b32.xlu1 %v6346_v15, %s7661_s23  ;;  %2762 = vrot.lane.b32.xlu0 %v6339_v14, %s7664_s1  ;;  %v2717_v1 = vmul.f32 %v6346_v15, %v6164_v18  ;;  %v2715_v21 = vmul.f32 %v6346_v15, %v6166_v12 }
 0xd16   : > { %3074 = vst.msk [vmem:[#allocation2 + $0x28] sm:$0xff] %vm1705_vm3, %v6128_v27  ;;  %v2713_v18 = vmul.f32 %v6346_v15, %v6168_v19  ;;  %v2709_v12 = vmul.f32 %v6346_v15, %v6174_v49  ;;  %v2719_v19 = vmul.f32 %v6346_v15, %v6222_v36  ;;  %v2718_v49 = vmul.f32 %v6339_v14, %v6222_v36 }
 0xd19   : > { %2764 = vrot.lane.b32.xlu1 %v6346_v15, %s7664_s1  ;;  %2774 = vrot.lane.b32.xlu0 %v2716_v34, %s7660_s11  ;;  %v6360_v60 = vld [vmem:[#allocation2 + $0x8] sm:$0xff]  ;;  %s7670_s1 = smov 111  }
 0xd1a   : > { %3591 = vst [vmem:[#allocation2 + $0x8] sm:$0xff] %v6262_v9 }
 0xd1d   : > { %2776 = vrot.lane.b32.xlu1 %v2717_v1, %s7660_s11  ;;  %2768 = vrot.lane.b32.xlu0 %v2714_v30, %s7665_s29  ;;  %v6369_v27 = vld [vmem:[#allocation2 + $0x28] sm:$0xff]  ;;  %v2705_v1 = vmul.f32 %v6346_v15, %v6257_v7  ;;  %v2703_v30 = vmul.f32 %v6339_v14, %v6257_v7 }
 0xd1e   : > { %3595 = vst [vmem:[#allocation2 + $0x28] sm:$0xff] %v6262_v9 }
 0xd21   : > { %2770 = vrot.lane.b32.xlu1 %v2715_v21, %s7665_s29  ;;  %2754 = vrot.lane.b32.xlu0 %v2711_v59, %s7666_s8 }
 0xd25   : > { %2758 = vrot.lane.b32.xlu1 %v2713_v18, %s7666_s8  ;;  %2740 = vrot.lane.b32.xlu0 %v2707_v58, %s7651_s30  ;;  %s7669_s8 = sld [smem:[#allocation18_spill]] }
 0xd29   : > { %2738 = vrot.lane.b32.xlu1 %v6297_v61, %s7651_s30  ;;  %2744 = vrot.lane.b32.xlu0 %v2709_v12, %s7651_s30  ;;  %v2753_v61 = vpop.permute.xlu1 %2752 }
 0xd2b   : > { %v2352_v12 = vld [vmem:[%s7669_s8 + $0x8] sm:$0xff] }
 0xd2c   : > { %4908 = vmatprep.mubr.msk.f32.mxu1 %vm2126_vm8, %v2352_v12 }
 0xd2d   : > { %5177 = vrot.lane.b32.xlu1 %v6007_v43, %s7657_s0  ;;  %2730 = vrot.lane.b32.xlu0 %v6346_v15, %s7657_s0  ;;  %v2743_v44 = vpop.permute.xlu1 %2742  ;;  %v2356_v15 = vld [vmem:[%s7668_s12 + $0x8] sm:$0xff] }
 0xd31   : > { %2726 = vrot.lane.b32.xlu1 %v6339_v14, %s7657_s0  ;;  %2786 = vrot.lane.b32.xlu0 %v2719_v19, %s7656_s9  ;;  %v6439_v14 = vmul.f32 %v6262_v9, %v5885_v33  ;;  %v3104_v19 = vmul.f32 %v6369_v27, %v5885_v33 }
 0xd35   : > { %2784 = vrot.lane.b32.xlu1 %v2718_v49, %s7656_s9 }
 0xd83   : > { %v2779_v43 = vpop.permute.xlu0 %2778 }
 0xd84   : > { %2846 = vrot.lane.b32.xlu1 %v2779_v43, %s7667_s2  ;;  %v3102_v43 = vmul.f32 %v6360_v60, %v5885_v33 }
 0xd87   : > { %v2781_v56 = vpop.permute.xlu1 %2780  ;;  %v2763_v24 = vpop.permute.xlu0 %2762 }
 0xd88   : > { %2834 = vrot.lane.b32.xlu1 %v2763_v24, %s7667_s2  ;;  %v3110_v24 = vmul.f32 %v6369_v27, %v5879_v53 }
 0xd8b   : > { %v2765_v11 = vpop.permute.xlu1 %2764  ;;  %v2775_v40 = vpop.permute.xlu0 %2774 }
 0xd8c   : > { %2842 = vrot.lane.b32.xlu1 %v2775_v40, %s7667_s2  ;;  %v3114_v40 = vmul.f32 %v6369_v27, %v5881_v54 }
 0xd8f   : > { %v2777_v46 = vpop.permute.xlu1 %2776  ;;  %v2769_v50 = vpop.permute.xlu0 %2768 }
 0xd90   : > { %2838 = vrot.lane.b32.xlu1 %v2769_v50, %s7667_s2  ;;  %v3117_v50 = vmul.f32 %v6360_v60, %v5877_v52 }
 0xd93   : > { %v2771_v36 = vpop.permute.xlu1 %2770  ;;  %v2755_v51 = vpop.permute.xlu0 %2754 }
 0xd94   : > { %2828 = vrot.lane.b32.xlu1 %v2755_v51, %s7667_s2  ;;  %v2760_v57 = vsel %vm2475_vm1, %v2753_v61, %v2755_v51  ;;  %v2355_v61 = vld [vmem:[%s7668_s12] sm:$0xff] }
 0xd95   : > { %2826 = vrot.lane.b32.xlu0 %v2760_v57, %s7667_s2 }
 0xd97   : > { %v2759_v62 = vpop.permute.xlu1 %2758  ;;  %v2741_v63 = vpop.permute.xlu0 %2740 }
 0xd98   : > { %2820 = vrot.lane.b32.xlu1 %v2741_v63, %s7667_s2  ;;  %v2761_v21 = vsel %vm2475_vm1, %v2757_v25, %v2759_v62  ;;  %v6464_v25 = vmul.f32 %v6262_v9, %v5883_v13  ;;  %vm3431_vm1 = vcmask 261120  }
 0xd9b   : > { %v2739_v0 = vpop.permute.xlu1 %2738  ;;  %v2745_v3 = vpop.permute.xlu0 %2744 }
 0xd9c   : > { %v2746_v4 = vsel %vm982_vm15, %v2739_v0, %v2741_v63  ;;  %v2747_v58 = vsel %vm982_vm15, %v2743_v44, %v2745_v3  ;;  %v3113_v44 = vmul.f32 %v6360_v60, %v5881_v54 }
 0xd9d   : > { %2818 = vrot.lane.b32.xlu0 %v2746_v4, %s7667_s2 }
 0xd9f   : > { %v2731_v5 = vpop.permute.xlu0 %2730  ;;  %v5178_v6 = vpop.permute.xlu1 %5177 }
 0xda0   : > { %2816 = vrot.lane.b32.xlu1 %v2731_v5, %s7667_s2  ;;  %v5179_v8 = vunpack.i.l.bf16 %v5178_v6  ;;  %v5180_v18 = vunpack.i.h.bf16 %v5178_v6 }
 0xda1   : > { %2848 = vrot.lane.b32.xlu0 %v2781_v56, %s7667_s2  ;;  %v6486_v56 = vpack.i.bf16 %v6262_v9, %v6262_v9 }
 0xda2   : > { %v2733_v10 = vsel %vm917_vm7, %v5179_v8, %v2731_v5 }
 0xda3   : > { %v2727_v34 = vpop.permute.xlu1 %2726  ;;  %v2787_v49 = vpop.permute.xlu0 %2786 }
 0xda4   : > { %2832 = vrot.lane.b32.xlu1 %v2759_v62, %s7667_s2  ;;  %v2732_v7 = vsel %vm917_vm7, %v5180_v18, %v2727_v34  ;;  %v3118_v62 = vmul.f32 %v6369_v27, %v5877_v52 }
 0xda5   : > { %2836 = vrot.lane.b32.xlu0 %v2765_v11, %s7667_s2  ;;  %v3109_v11 = vmul.f32 %v6360_v60, %v5879_v53 }
 0xda7   : > { %v2785_v59 = vpop.permute.xlu1 %2784 }
 0xda8   : > { %2824 = vrot.lane.b32.xlu1 %v2745_v3, %s7667_s2 }
 0xda9   : > { %2814 = vrot.lane.b32.xlu0 %v2733_v10, %s7667_s2 }
 0xdac   : > { %2812 = vrot.lane.b32.xlu1 %v2727_v34, %s7667_s2 }
 0xdad   : > { %2844 = vrot.lane.b32.xlu0 %v2777_v46, %s7667_s2  ;;  %v3094_v46 = vmul.f32 %v6360_v60, %v5883_v13 }
 0xdb0   : > { %2808 = vrot.lane.b32.xlu1 %v2705_v1, %s7667_s2 }
 0xdb1   : > { %2840 = vrot.lane.b32.xlu0 %v2771_v36, %s7667_s2 }
 0xdb4   : > { %2804 = vrot.lane.b32.xlu1 %v2703_v30, %s7667_s2 }
 0xdb5   : > { %2830 = vrot.lane.b32.xlu0 %v2761_v21, %s7667_s2 }
 0xdb8   : > { %2850 = vrot.lane.b32.xlu1 %v2785_v59, %s7667_s2 }
 0xdb9   : > { %2822 = vrot.lane.b32.xlu0 %v2747_v58, %s7667_s2 }
 0xdbc   : > { %2795 = vperm.xlu1 %5165, %v2356_v15  }
 0xdbd   : > { %2810 = vrot.lane.b32.xlu0 %v2732_v7, %s7667_s2 }
 0xdc0   : > { %3193 = vrot.lane.b32.xlu1 %v6439_v14, %s7660_s11 }
 0xdc1   : > { %2806 = vrot.lane.b32.xlu0 %v6266_v2, %s7667_s2 }
 0xdc4   : > { %3191 = vrot.lane.b32.xlu1 %v3104_v19, %s7660_s11 }
 0xdc5   : > { %2802 = vrot.lane.b32.xlu0 %v6266_v2, %s7667_s2  ;;  %v3096_v2 = vmul.f32 %v6369_v27, %v5883_v13 }
 0xdc8   : > { %3185 = vrot.lane.b32.xlu1 %v6439_v14, %s7660_s11 }
 0xdc9   : > { %2852 = vrot.lane.b32.xlu0 %v2787_v49, %s7667_s2  ;;  %s7671_s2 = smov 9  }
 0xdcc   : > { %3237 = vrot.lane.b32.xlu1 %v6360_v60, %s7670_s1 }
 0xdcd   : > { %2790 = vperm.xlu0 %5149, %v2355_v61  }
 0xdd0   : > { %3165 = vrot.lane.b32.xlu1 %v6464_v25, %s7651_s30 }
 0xdd1   : > { %3197 = vrot.lane.b32.xlu0 %v6439_v14, %s7660_s11 }
 0xdd4   : > { %3163 = vrot.lane.b32.xlu1 %v3096_v2, %s7651_s30 }
 0xdd5   : > { %3189 = vrot.lane.b32.xlu0 %v6439_v14, %s7660_s11 }
 0xdd8   : > { %3157 = vrot.lane.b32.xlu1 %v6464_v25, %s7651_s30 }
 0xdd9   : > { %3239 = vrot.lane.b32.xlu0 %v6369_v27, %s7670_s1 }
 0xddc   : > { %3229 = vrot.lane.b32.xlu1 %v3113_v44, %s7655_s5 }
 0xddd   : > { %3187 = vrot.lane.b32.xlu0 %v3102_v43, %s7660_s11 }
 0xde0   : > { %5187 = vrot.lane.b32.xlu1 %v6486_v56, %s7657_s0 }
 0xde1   : > { %3169 = vrot.lane.b32.xlu0 %v6464_v25, %s7651_s30 }
 0xde4   : > { %3219 = vrot.lane.b32.xlu1 %v3110_v24, %s7656_s9 }
 0xde5   : > { %3161 = vrot.lane.b32.xlu0 %v6464_v25, %s7651_s30 }
 0xde8   : > { %3217 = vrot.lane.b32.xlu1 %v3109_v11, %s7656_s9 }
 0xde9   : > { %3231 = vrot.lane.b32.xlu0 %v3114_v40, %s7655_s5 }
 0xdec   : > { %3205 = vrot.lane.b32.xlu1 %v6360_v60, %s7661_s23 }
 0xded   : > { %3159 = vrot.lane.b32.xlu0 %v3094_v46, %s7651_s30 }
 0xdf0   : > { %3249 = vrot.lane.b32.xlu1 %v3117_v50, %s7652_s3 }
 0xdf1   : > { %5182 = vrot.lane.b32.xlu0 %v6486_v56, %s7657_s0 }
 0xdf5   : > { %3135 = vrot.lane.b32.xlu0 %v6369_v27, %s7657_s0 }
 0xdf6   : > { %v2847_v36 = vpop.permute.xlu1 %2846 }
 0xdf9   : > { %3131 = vrot.lane.b32.xlu0 %v6360_v60, %s7657_s0 }
 0xdfa   : > { %v2835_v51 = vpop.permute.xlu1 %2834 }
 0xdfd   : > { %3207 = vrot.lane.b32.xlu0 %v6369_v27, %s7661_s23 }
 0xdfe   : > { %v2843_v57 = vpop.permute.xlu1 %2842 }
 0xe01   : > { %3251 = vrot.lane.b32.xlu0 %v3118_v62, %s7652_s3 }
 0xe02   : > { %v2839_v63 = vpop.permute.xlu1 %2838 }
 0xe06   : > { %v2829_v0 = vpop.permute.xlu1 %2828 }
 0xe07   : > { %v2827_v3 = vpop.permute.xlu0 %2826 }
 0xe08   : > { %v2860_v19 = vsel %vm2570_vm2, %v2827_v3, %v2829_v0  ;;  %v2354_v0 = vld [vmem:[%s7669_s8 + $0x18] sm:$0xff] }
 0xe0a   : > { %v2821_v4 = vpop.permute.xlu1 %2820 }
 0xe0f   : > { %v2819_v5 = vpop.permute.xlu0 %2818 }
 0xe10   : > { %v2858_v44 = vsel %vm2570_vm2, %v2819_v5, %v2821_v4  ;;  %v2353_v4 = vld [vmem:[%s7669_s8 + $0x10] sm:$0xff] }
 0xe12   : > { %v2817_v6 = vpop.permute.xlu1 %2816 }
 0xe13   : > { %v2849_v8 = vpop.permute.xlu0 %2848 }
 0xe14   : > { %2887 = vmatpush1.msra.mxu1 %v2849_v8 }
 0xe15   : > { %2888 = vmatprep.subr.mxu1 %v6262_v9 }
 0xe16   : > { %v2833_v10 = vpop.permute.xlu1 %2832  ;;  %2889 = vmatpush1.msra.mxu1 %v2847_v36 }
 0xe17   : > { %v2837_v34 = vpop.permute.xlu0 %2836  ;;  %2890 = vmatprep.subr.mxu1 %v6262_v9 }
 0xe1a   : > { %v2825_v1 = vpop.permute.xlu1 %2824 }
 0xe1b   : > { %v2815_v30 = vpop.permute.xlu0 %2814 }
 0xe1c   : > { %v2857_v43 = vsel %vm2570_vm2, %v2815_v30, %v2817_v6 }
 0xe1e   : > { %v2813_v59 = vpop.permute.xlu1 %2812 }
 0xe1f   : > { %v2845_v21 = vpop.permute.xlu0 %2844 }
 0xe20   : > { %2891 = vmatpush1.msra.mxu1 %v2845_v21 }
 0xe21   : > { %2892 = vmatprep.subr.mxu1 %v6262_v9 }
 0xe22   : > { %2893 = vmatpush1.msra.mxu1 %v2843_v57  ;;  %v2809_v58 = vpop.permute.xlu1 %2808 }
 0xe23   : > { %2894 = vmatprep.subr.mxu1 %v6262_v9  ;;  %v2841_v18 = vpop.permute.xlu0 %2840 }
 0xe24   : > { %2895 = vmatpush1.msra.mxu1 %v2841_v18 }
 0xe25   : > { %2896 = vmatprep.subr.mxu1 %v6262_v9 }
 0xe26   : > { %2897 = vmatpush1.msra.mxu1 %v2839_v63  ;;  %v2805_v49 = vpop.permute.xlu1 %2804  ;;  %v2351_v63 = vld [vmem:[%s7669_s8] sm:$0xff]  ;;  %s7676_s8 = smov 96  }
 0xe27   : > { %2898 = vmatprep.subr.mxu1 %v6262_v9  ;;  %v2831_v15 = vpop.permute.xlu0 %2830 }
 0xe28   : > { %2899 = vmatpush1.msra.mxu1 %v2837_v34  ;;  %v2861_v7 = vsel %vm2570_vm2, %v2831_v15, %v2833_v10 }
 0xe29   : > { %2900 = vmatprep.subr.mxu1 %v6262_v9 }
 0xe2a   : > { %2901 = vmatpush1.msra.mxu1 %v2835_v51  ;;  %v2851_v24 = vpop.permute.xlu1 %2850 }
 0xe2b   : > { %2902 = vmatprep.subr.mxu1 %v6262_v9  ;;  %v2823_v12 = vpop.permute.xlu0 %2822 }
 0xe2c   : > { %2903 = vmatpush1.msra.mxu1 %v2861_v7  ;;  %v2859_v61 = vsel %vm2570_vm2, %v2823_v12, %v2825_v1 }
 0xe2d   : > { %2904 = vmatprep.subr.mxu1 %v6262_v9 }
 0xe2e   : > { %2905 = vmatpush1.msra.mxu1 %v2860_v19  ;;  %v2964_v19 = vld [vmem:[%s7564_s25 + $0x8] sm:$0xff] }
 0xe2f   : > { %2906 = vmatprep.subr.mxu1 %v6262_v9  ;;  %v2811_v2 = vpop.permute.xlu0 %2810 }
 0xe30   : > { %2907 = vmatpush1.msra.mxu1 %v2859_v61  ;;  %v2856_v40 = vsel %vm2570_vm2, %v2811_v2, %v2813_v59 }
 0xe31   : > { %2908 = vmatprep.subr.mxu1 %v6262_v9 }
 0xe32   : > { %2909 = vmatpush1.msra.mxu1 %v2858_v44 }
 0xe33   : > { %2910 = vmatprep.subr.mxu1 %v6262_v9  ;;  %v2807_v11 = vpop.permute.xlu0 %2806 }
 0xe34   : > { %2911 = vmatpush1.msra.mxu1 %v2857_v43  ;;  %v2855_v46 = vsel %vm2570_vm2, %v2807_v11, %v2809_v58 }
 0xe35   : > { %2912 = vmatprep.subr.mxu1 %v6262_v9 }
 0xe36   : > { %2913 = vmatpush1.msra.mxu1 %v2856_v40 }
 0xe37   : > { %v2796_v50 = vpop.permute.xlu1 %2795  ;;  %2914 = vmatprep.subr.mxu1 %v6262_v9  ;;  %v2803_v36 = vpop.permute.xlu0 %2802 }
 0xe38   : > { %v2854_v51 = vsel %vm2570_vm2, %v2803_v36, %v2805_v49  ;;  %2915 = vmatpush1.msra.mxu1 %v2855_v46  ;;  %v2963_v49 = vld [vmem:[%s7564_s25] sm:$0xff] }
 0xe39   : > { %2916 = vmatprep.subr.mxu1 %v6262_v9 }
 0xe3a   : > { %2917 = vmatpush1.msra.mxu1 %v2854_v51 }
 0xe3b   : > { %v6546_v57 = vpop.permute.xlu1 %3193  ;;  %2946 = vmatprep.subr.mxu1 %v6262_v9  ;;  %v2853_v62 = vpop.permute.xlu0 %2852 }
 0xe3c   : > { %2947 = vmatpush2.msra.mxu1 %v2853_v62 }
 0xe3d   : > { %2948 = vmatprep.subr.mxu1 %v6262_v9 }
 0xe3e   : > { %2949 = vmatpush2.msra.mxu1 %v2851_v24 }
 0xe3f   : > { %v3192_v3 = vpop.permute.xlu1 %3191  ;;  %2951 = vmatmul.mubr.f32.vlgmr.msra.gmra.mxu1 %v2351_v63  ;;  %5067 = vmatprep.subr.mxu1 %v2964_v19 }
 0xe40   : > { %4909 = vmatprep.mubr.msk.f32.mxu1 %vm2126_vm8, %v2354_v0  ;;  %5068 = vmatpush3.msra.mxu1 %v2964_v19 }
 0xe41   : > { %5069 = vmatprep.subr.mxu1 %v2963_v49 }
 0xe42   : > { %5070 = vmatpush3.msra.mxu1 %v2963_v49 }
 0xe43   : > { %v3186_v5 = vpop.permute.xlu1 %3185  ;;  %2956 = vmatmul.mubr.f32.gmra.mxu1 %v2353_v4 }
 0xe47   : > { %v3238_v6 = vpop.permute.xlu1 %3237 }
 0xe48   : > { %3363 = vrot.lane.b32.xlu1 %v3238_v6, %s7671_s2  ;;  %v2791_v8 = vpop.permute.xlu0 %2790 }
 0xe4b   : > { %v6566_v59 = vpop.permute.xlu1 %3165 }
 0xe4c   : > { %v6561_v10 = vpop.permute.xlu0 %3197 }
 0xe4f   : > { %v3164_v15 = vpop.permute.xlu1 %3163 }
 0xe50   : > { %v3190_v34 = vpop.permute.xlu0 %3189 }
 0xe51   : > { %v3202_v58 = vsel %vm1776_vm5, %v3190_v34, %v3192_v3 }
 0xe54   : > { %v3240_v1 = vpop.permute.xlu0 %3239 }
 0xe58   : > { %v3188_v30 = vpop.permute.xlu0 %3187 }
 0xe59   : > { %3325 = vrot.lane.b32.xlu0 %v3188_v30, %s7671_s2  ;;  %v3201_v21 = vsel %vm1776_vm5, %v3186_v5, %v3188_v30 }
 0xe5a   : > { %3323 = vrot.lane.b32.xlu1 %v3201_v21, %s7671_s2 }
 0xe5c   : > { %v6568_v18 = vpop.permute.xlu0 %3169 }
 0xe5d   : > { %3365 = vrot.lane.b32.xlu0 %v3240_v1, %s7671_s2  ;;  %v3158_v1 = vpop.permute.xlu1 %3157 }
 0xe5e   : > { %3329 = vrot.lane.b32.xlu1 %v3192_v3, %s7671_s2 }
 0xe60   : > { %v3162_v7 = vpop.permute.xlu0 %3161 }
 0xe61   : > { %3327 = vrot.lane.b32.xlu0 %v3202_v58, %s7671_s2  ;;  %v3174_v12 = vsel %vm982_vm15, %v3162_v7, %v3164_v15  ;;  %v3230_v58 = vpop.permute.xlu1 %3229 }
 0xe62   : > { %3313 = vrot.lane.b32.xlu1 %v3164_v15, %s7671_s2 }
 0xe64   : > { %v3232_v5 = vpop.permute.xlu0 %3231 }
 0xe65   : > { %3311 = vrot.lane.b32.xlu0 %v3174_v12, %s7671_s2  ;;  %v5188_v19 = vpop.permute.xlu1 %5187 }
 0xeff   : > { %v2952_v61 = vpop.f32.mrf.mxu1 }
 0xf00   : > { %v2953_v2 = vadd.f32 %v2952_v61, %v2791_v8  ;;  %v3160_v8 = vpop.permute.xlu0 %3159  ;;  %v5190_v61 = vunpack.i.h.bf16 %v5188_v19 }
 0xf01   : > { %v2954_v44 = vpop.f32.mrf.mxu1  ;;  %v3173_v30 = vsel %vm982_vm15, %v3158_v1, %v3160_v8 }
 0xf02   : > { %v2961_v43 = vmax.f32 %v2953_v2, 0.0  ;;  %v5189_v2 = vunpack.i.l.bf16 %v5188_v19 }
 0xf03   : > { %v2957_v24 = vpop.f32.mrf.mxu1 }
 0xf04   : > { %v2958_v11 = vadd.f32 %v2957_v24, %v2796_v50  ;;  %5071 = vmatprep.mubr.msk.f32.mxu1 %vm2126_vm8, %v2961_v43  ;;  %v6624_v21 = vpop.permute.xlu0 %5182  ;;  %v3220_v43 = vpop.permute.xlu1 %3219 }
 0xf05   : > { %v2959_v40 = vpop.f32.mrf.mxu1 }
 0xf06   : > { %v2962_v46 = vmax.f32 %v2958_v11, 0.0 }
 0xf08   : > { %5072 = vmatmul.mubr.msk.f32.vlgmr.msra.gmra.mxu1 %vm2126_vm8, %v2962_v46  ;;  %v3136_v12 = vpop.permute.xlu0 %3135  ;;  %v3218_v40 = vpop.permute.xlu1 %3217 }
 0xf09   : > { %v3146_v24 = vsel %vm917_vm7, %v5189_v2, %v3136_v12 }
 0xf0c   : > { %v3132_v44 = vpop.permute.xlu0 %3131 }
 0xf0d   : > { %v3145_v11 = vsel %vm917_vm7, %v5190_v61, %v3132_v44 }
 0xfc8   : > { %v5073_v36 = vpop.f32.mrf.mxu1 }
 0xfc9   : > { %3076 = vst.msk [vmem:[#allocation2 + $0x68] sm:$0xff] %vm1705_vm3, %v5073_v36  ;;  %v6650_v36 = vpop.permute.xlu0 %3207 }
 0xfca   : > { %v3037_v51 = vpop.f32.mrf.mxu1 }
 0xfcb   : > { %3075 = vst.msk [vmem:[#allocation2 + $0x48] sm:$0xff] %vm1705_vm3, %v3037_v51  ;;  %v6652_v51 = vpop.permute.xlu1 %3205 }
 0xfd0   : > { %v6587_v62 = vld [vmem:[#allocation2 + $0x68] sm:$0xff] }
 0xfd1   : > { %4458 = vst [vmem:[#allocation2 + $0x68] sm:$0xff] %v6262_v9  ;;  %3143 = vrot.lane.b32.xlu1 %v6587_v62, %s7657_s0  ;;  %3243 = vrot.lane.b32.xlu0 %v6587_v62, %s7670_s1  ;;  %v3108_v63 = vmul.f32 %v6587_v62, %v5885_v33  ;;  %v3116_v0 = vmul.f32 %v6587_v62, %v5881_v54 }
 0xfd2   : > { %v6594_v50 = vld [vmem:[#allocation2 + $0x48] sm:$0xff]  ;;  %v3100_v3 = vmul.f32 %v6587_v62, %v5883_v13  ;;  %v3112_v4 = vmul.f32 %v6587_v62, %v5879_v53  ;;  %v3120_v6 = vmul.f32 %v6587_v62, %v5877_v52 }
 0xfd3   : > { %4454 = vst [vmem:[#allocation2 + $0x48] sm:$0xff] %v6262_v9  ;;  %v3106_v34 = vmul.f32 %v6594_v50, %v5885_v33  ;;  %v3098_v15 = vmul.f32 %v6594_v50, %v5883_v13  ;;  %v3115_v7 = vmul.f32 %v6594_v50, %v5881_v54  ;;  %v3111_v49 = vmul.f32 %v6594_v50, %v5879_v53 }
 0xfd4   : > { %v3119_v46 = vmul.f32 %v6594_v50, %v5877_v52 }
 0xfd5   : > { %3199 = vrot.lane.b32.xlu1 %v3108_v63, %s7660_s11  ;;  %3211 = vrot.lane.b32.xlu0 %v6587_v62, %s7661_s23  ;;  %v6654_v63 = vpop.permute.xlu0 %3251 }
 0xfd9   : > { %3241 = vrot.lane.b32.xlu1 %v6594_v50, %s7670_s1  ;;  %3235 = vrot.lane.b32.xlu0 %v3116_v0, %s7655_s5  ;;  %v6656_v0 = vpop.permute.xlu1 %3249 }
 0xfdd   : > { %3171 = vrot.lane.b32.xlu1 %v3100_v3, %s7651_s30  ;;  %3223 = vrot.lane.b32.xlu0 %v3112_v4, %s7656_s9  ;;  %v6658_v3 = vpop.permute.xlu0 %3325  ;;  %v6660_v4 = vpop.permute.xlu1 %3363 }
 0xfe1   : > { %3139 = vrot.lane.b32.xlu1 %v6594_v50, %s7657_s0  ;;  %3255 = vrot.lane.b32.xlu0 %v3120_v6, %s7652_s3  ;;  %v6664_v6 = vpop.permute.xlu0 %3365 }
 0xfe5   : > { %3209 = vrot.lane.b32.xlu1 %v6594_v50, %s7661_s23  ;;  %3195 = vrot.lane.b32.xlu0 %v3106_v34, %s7660_s11  ;;  %v6668_v34 = vpop.permute.xlu0 %3327 }
 0xfe9   : > { %3357 = vrot.lane.b32.xlu0 %v3232_v5, %s7671_s2  ;;  %3307 = vrot.lane.b32.xlu1 %v3173_v30, %s7671_s2  ;;  %v6662_v5 = vpop.permute.xlu1 %3323  ;;  %v6672_v30 = vpop.permute.xlu0 %3311 }
 0xfed   : > { %3167 = vrot.lane.b32.xlu0 %v3098_v15, %s7651_s30  ;;  %3233 = vrot.lane.b32.xlu1 %v3115_v7, %s7655_s5  ;;  %v5184_v7 = vunpack.i.l.bf16 %v6624_v21 }
 0xff1   : > { %3355 = vrot.lane.b32.xlu1 %v3230_v58, %s7671_s2  ;;  %3309 = vrot.lane.b32.xlu0 %v3160_v8, %s7671_s2  ;;  %v6666_v8 = vpop.permute.xlu1 %3329 }
 0xff2   : > { %v3392_v48 = vsel %vm1829_vm6, %v6668_v34, %v6666_v8 }
 0xff5   : > { %3221 = vrot.lane.b32.xlu0 %v3111_v49, %s7656_s9  ;;  %3297 = vrot.lane.b32.xlu1 %v3136_v12, %s7671_s2  ;;  %v6670_v1 = vpop.permute.xlu1 %3313 }
 0xff9   : > { %3295 = vrot.lane.b32.xlu0 %v3146_v24, %s7671_s2  ;;  %3291 = vrot.lane.b32.xlu1 %v3145_v11, %s7671_s2  ;;  %v5185_v24 = vunpack.i.h.bf16 %v6624_v21 }
 0xffd   : > { %3349 = vrot.lane.b32.xlu0 %v3220_v43, %s7671_s2  ;;  %3347 = vrot.lane.b32.xlu1 %v3218_v40, %s7671_s2 }
0x1001   : > { %3253 = vrot.lane.b32.xlu1 %v3119_v46, %s7652_s3  ;;  %3293 = vrot.lane.b32.xlu0 %v3132_v44, %s7671_s2 }
0x1043   : > { %v3144_v58 = vpop.permute.xlu1 %3143  ;;  %v3244_v15 = vpop.permute.xlu0 %3243 }
0x1044   : > { %3305 = vrot.lane.b32.xlu1 %v3144_v58, %s7671_s2  ;;  %3369 = vrot.lane.b32.xlu0 %v3244_v15, %s7671_s2  ;;  %v3148_v49 = vsel %vm917_vm7, %v5184_v7, %v3144_v58 }
0x1047   : > { %v3200_v12 = vpop.permute.xlu1 %3199  ;;  %v3212_v19 = vpop.permute.xlu0 %3211 }
0x1048   : > { %3337 = vrot.lane.b32.xlu1 %v3200_v12, %s7671_s2  ;;  %3303 = vrot.lane.b32.xlu0 %v3148_v49, %s7671_s2  ;;  %v3204_v7 = vsel %vm1776_vm5, %v6561_v10, %v3200_v12  ;;  %v6702_v10 = vmul.f32 %v6262_v9, %v5932_v20  ;;  %v3092_v9 = vmul.f32 %v6587_v62, %v5932_v20 }
0x1049   : > { %v3086_v62 = vmul.f32 %v6360_v60, %v5932_v20  ;;  %v3048_v60 = vld [vmem:[%s7672_s13 + $0x10] sm:$0xff] }
0x104a   : > { %5082 = vmatprep.mubr.msk.f32.mxu0 %vm3431_vm1, %v3048_v60 }
0x104b   : > { %v3242_v61 = vpop.permute.xlu1 %3241  ;;  %v3236_v2 = vpop.permute.xlu0 %3235 }
0x104c   : > { %3367 = vrot.lane.b32.xlu1 %v3242_v61, %s7671_s2  ;;  %3361 = vrot.lane.b32.xlu0 %v3236_v2, %s7671_s2 }
0x104f   : > { %v3172_v44 = vpop.permute.xlu1 %3171  ;;  %v3224_v43 = vpop.permute.xlu0 %3223 }
0x1050   : > { %3321 = vrot.lane.b32.xlu1 %v3172_v44, %s7671_s2  ;;  %3353 = vrot.lane.b32.xlu0 %v3224_v43, %s7671_s2  ;;  %v3176_v21 = vsel %vm982_vm15, %v6568_v18, %v3172_v44  ;;  %v3090_v44 = vmul.f32 %v6594_v50, %v5932_v20  ;;  %v3088_v50 = vmul.f32 %v6369_v27, %v5932_v20  ;;  %v3053_v27 = vld [vmem:[%s7673_s14 + $0x8] sm:$0xff] }
0x1053   : > { %v3140_v11 = vpop.permute.xlu1 %3139  ;;  %v3256_v40 = vpop.permute.xlu0 %3255 }
0x1054   : > { %3301 = vrot.lane.b32.xlu0 %v3140_v11, %s7671_s2  ;;  %v3147_v46 = vsel %vm917_vm7, %v5185_v24, %v3140_v11 }
0x1055   : > { %3299 = vrot.lane.b32.xlu1 %v3147_v46, %s7671_s2 }
0x1057   : > { %v3210_v58 = vpop.permute.xlu1 %3209  ;;  %v3196_v15 = vpop.permute.xlu0 %3195 }
0x1058   : > { %3335 = vrot.lane.b32.xlu0 %v3204_v7, %s7671_s2  ;;  %v3203_v18 = vsel %vm1776_vm5, %v6546_v57, %v3196_v15 }
0x105b   : > { %v6691_v49 = vpop.permute.xlu1 %3307  ;;  %v6693_v61 = vpop.permute.xlu0 %3357 }
0x105c   : > { %3319 = vrot.lane.b32.xlu0 %v3176_v21, %s7671_s2 }
0x105f   : > { %v3234_v2 = vpop.permute.xlu1 %3233  ;;  %v3168_v43 = vpop.permute.xlu0 %3167 }
0x1060   : > { %3359 = vrot.lane.b32.xlu1 %v3234_v2, %s7671_s2  ;;  %3333 = vrot.lane.b32.xlu0 %v3196_v15, %s7671_s2  ;;  %v3175_v46 = vsel %vm982_vm15, %v6566_v59, %v3168_v43  ;;  %v3047_v59 = vld [vmem:[%s7672_s13 + $0x8] sm:$0xff] }
0x1061   : > { %3502 = vmatprep.mubr.f32.mxu1 %v3047_v59 }
0x1063   : > { %v6704_v12 = vpop.permute.xlu0 %3309  ;;  %v6720_v11 = vpop.permute.xlu1 %3355 }
0x1064   : > { %3287 = vrot.lane.b32.xlu0 %v6702_v10, %s7671_s2 }
0x1067   : > { %v3222_v24 = vpop.permute.xlu0 %3221  ;;  %v6731_v57 = vpop.permute.xlu1 %3297 }
0x1068   : > { %3351 = vrot.lane.b32.xlu1 %v3222_v24, %s7671_s2  ;;  %3317 = vrot.lane.b32.xlu0 %v3168_v43, %s7671_s2 }
0x106c   : > { %3331 = vrot.lane.b32.xlu1 %v3203_v18, %s7671_s2  ;;  %3345 = vrot.lane.b32.xlu0 %v3212_v19, %s7671_s2  ;;  %v6742_v19 = vpop.permute.xlu1 %3291 }
0x1070   : > { %3289 = vrot.lane.b32.xlu1 %v3092_v9, %s7671_s2  ;;  %3285 = vrot.lane.b32.xlu0 %v3090_v44, %s7671_s2 }
0x1074   : > { %3315 = vrot.lane.b32.xlu1 %v3175_v46, %s7671_s2  ;;  %3279 = vrot.lane.b32.xlu0 %v6702_v10, %s7671_s2 }
0x1078   : > { %3283 = vrot.lane.b32.xlu1 %v6702_v10, %s7671_s2  ;;  %3341 = vrot.lane.b32.xlu0 %v6650_v36, %s7671_s2  ;;  %v6753_v36 = vpop.permute.xlu1 %3347 }
0x107c   : > { %3343 = vrot.lane.b32.xlu1 %v3210_v58, %s7671_s2  ;;  %3277 = vrot.lane.b32.xlu0 %v3086_v62, %s7671_s2 }
0x1080   : > { %3281 = vrot.lane.b32.xlu1 %v3088_v50, %s7671_s2  ;;  %3377 = vrot.lane.b32.xlu0 %v3256_v40, %s7671_s2  ;;  %v3254_v40 = vpop.permute.xlu1 %3253 }
0x1084   : > { %3275 = vrot.lane.b32.xlu1 %v6702_v10, %s7671_s2  ;;  %3373 = vrot.lane.b32.xlu0 %v6654_v63, %s7671_s2  ;;  %v3052_v63 = vld [vmem:[%s7673_s14] sm:$0xff] }
0x1088   : > { %3339 = vrot.lane.b32.xlu1 %v6652_v51, %s7671_s2  ;;  %3264 = vperm.xlu0 %5149, %v3053_v27   ;;  %v3296_v51 = vpop.permute.xlu0 %3295 }
0x108c   : > { %3375 = vrot.lane.b32.xlu1 %v3254_v40, %s7671_s2  ;;  %3662 = vrot.lane.b32.xlu0 %v6439_v14, %s7660_s11  ;;  %v3350_v58 = vpop.permute.xlu0 %3349 }
0x1090   : > { %3371 = vrot.lane.b32.xlu1 %v6656_v0, %s7671_s2  ;;  %3652 = vrot.lane.b32.xlu0 %v6464_v25, %s7651_s30  ;;  %v6773_v15 = vpop.permute.xlu0 %3293 }
0x1094   : > { %3259 = vperm.xlu1 %5165, %v3052_v63  }
0x1098   : > { %3666 = vrot.lane.b32.xlu1 %v6439_v14, %s7660_s11 }
0x10b6   : > { %v3370_v7 = vpop.permute.xlu0 %3369  ;;  %v3306_v21 = vpop.permute.xlu1 %3305 }
0x10b7   : > { %4983 = vmatprep.subr.mxu1 %v3370_v7 }
0x10ba   : > { %v3304_v2 = vpop.permute.xlu0 %3303  ;;  %v3338_v43 = vpop.permute.xlu1 %3337 }
0x10be   : > { %v3362_v0 = vpop.permute.xlu0 %3361  ;;  %v3368_v18 = vpop.permute.xlu1 %3367 }
0x10c2   : > { %v3354_v24 = vpop.permute.xlu0 %3353  ;;  %v3322_v62 = vpop.permute.xlu1 %3321 }
0x10c6   : > { %v3302_v9 = vpop.permute.xlu0 %3301 }
0x10c7   : > { %v3300_v59 = vpop.permute.xlu1 %3299 }
0x10ca   : > { %v3336_v44 = vpop.permute.xlu0 %3335 }
0x10cb   : > { %v3394_v46 = vsel %vm1829_vm6, %v3336_v44, %v3338_v43  ;;  %v3391_v44 = vsel %vm1829_vm6, %v6662_v5, %v6658_v3  ;;  %v3387_v5 = vsel %vm1829_vm6, %v6691_v49, %v6704_v12  ;;  %v3383_v12 = vsel %vm1829_vm6, %v6742_v19, %v6773_v15  ;;  %v3046_v19 = vld [vmem:[%s7672_s13] sm:$0xff] }
0x10cc   : > { %4984 = vmatpush3.msra.mxu1 %v3394_v46 }
0x10cd   : > { %4985 = vmatprep.subr.mxu1 %v3368_v18 }
0x10ce   : > { %v3320_v14 = vpop.permute.xlu0 %3319 }
0x10cf   : > { %v3390_v46 = vsel %vm1829_vm6, %v3320_v14, %v3322_v62  ;;  %v3051_v62 = vld [vmem:[%s7672_s13 + $0x28] sm:$0xff]  ;;  %v6819_v14 = vld [vmem:[#allocation2 + $0x50] sm:$0xff] }
0x10d2   : > { %v3334_v50 = vpop.permute.xlu0 %3333  ;;  %v3360_v60 = vpop.permute.xlu1 %3359 }
0x10d6   : > { %v3288_v27 = vpop.permute.xlu0 %3287 }
0x10da   : > { %v3352_v40 = vpop.permute.xlu1 %3351  ;;  %v3318_v63 = vpop.permute.xlu0 %3317 }
0x10de   : > { %v3332_v7 = vpop.permute.xlu1 %3331  ;;  %v3346_v39 = vpop.permute.xlu0 %3345 }
0x10df   : > { %v3393_v37 = vsel %vm1829_vm6, %v3332_v7, %v3334_v50 }
0x10e0   : > { %4986 = vmatpush3.msra.mxu1 %v3393_v37 }
0x10e1   : > { %4987 = vmatprep.subr.mxu1 %v6664_v6  ;;  %v3386_v6 = vsel %vm1829_vm6, %v3304_v2, %v3306_v21  ;;  %v3049_v2 = vld [vmem:[%s7672_s13 + $0x18] sm:$0xff] }
0x10e2   : > { %v3290_v43 = vpop.permute.xlu1 %3289  ;;  %4988 = vmatpush3.msra.mxu1 %v3392_v48  ;;  %v3286_v18 = vpop.permute.xlu0 %3285  ;;  %v3388_v48 = vsel %vm1829_vm6, %v6672_v30, %v6670_v1  ;;  %v3385_v1 = vsel %vm1829_vm6, %v3300_v59, %v3302_v9  ;;  %v3384_v30 = vsel %vm1829_vm6, %v3296_v51, %v6731_v57 }
0x10e3   : > { %4989 = vmatprep.subr.mxu1 %v6660_v4 }
0x10e4   : > { %4990 = vmatpush3.msra.mxu1 %v3391_v44 }
0x10e5   : > { %4991 = vmatprep.subr.mxu1 %v3362_v0 }
0x10e6   : > { %v3316_v37 = vpop.permute.xlu1 %3315  ;;  %4992 = vmatpush3.msra.mxu1 %v3390_v46  ;;  %v3280_v50 = vpop.permute.xlu0 %3279 }
0x10e7   : > { %v3389_v8 = vsel %vm1829_vm6, %v3316_v37, %v3318_v63  ;;  %4993 = vmatprep.subr.mxu1 %v3360_v60 }
0x10e8   : > { %4994 = vmatpush3.msra.mxu1 %v3389_v8 }
0x10e9   : > { %4995 = vmatprep.subr.mxu1 %v6693_v61 }
0x10ea   : > { %v3284_v3 = vpop.permute.xlu1 %3283  ;;  %4996 = vmatpush3.msra.mxu1 %v3388_v48  ;;  %v3342_v4 = vpop.permute.xlu0 %3341 }
0x10eb   : > { %4997 = vmatprep.subr.mxu1 %v6720_v11  ;;  %v3382_v11 = vsel %vm1829_vm6, %v3288_v27, %v3290_v43  ;;  %v3381_v57 = vsel %vm1829_vm6, %v3284_v3, %v3286_v18 }
0x10ec   : > { %4998 = vmatpush3.msra.mxu1 %v3387_v5 }
0x10ed   : > { %4999 = vmatprep.subr.mxu1 %v3354_v24 }
0x10ee   : > { %v3344_v34 = vpop.permute.xlu1 %3343  ;;  %5000 = vmatpush3.msra.mxu1 %v3386_v6  ;;  %v3278_v0 = vpop.permute.xlu0 %3277 }
0x10ef   : > { %5001 = vmatprep.subr.mxu1 %v3352_v40 }
0x10f0   : > { %5002 = vmatpush3.msra.mxu1 %v3385_v1 }
0x10f1   : > { %5003 = vmatprep.subr.mxu1 %v3350_v58 }
0x10f2   : > { %v3282_v61 = vpop.permute.xlu1 %3281  ;;  %5004 = vmatpush3.msra.mxu1 %v3384_v30  ;;  %v3378_v49 = vpop.permute.xlu0 %3377 }
0x10f3   : > { %5005 = vmatprep.subr.mxu1 %v6753_v36  ;;  %5074 = vmatprep.subr.mxu0 %v3378_v49  ;;  %v3380_v51 = vsel %vm1829_vm6, %v3280_v50, %v3282_v61 }
0x10f4   : > { %5006 = vmatpush3.msra.mxu1 %v3383_v12  ;;  %5075 = vmatpush3.msra.mxu0 %v3378_v49 }
0x10f5   : > { %5007 = vmatprep.subr.mxu1 %v3346_v39  ;;  %v3050_v39 = vld [vmem:[%s7672_s13 + $0x20] sm:$0xff] }
0x10f6   : > { %v3276_v21 = vpop.permute.xlu1 %3275  ;;  %5008 = vmatpush3.msra.mxu1 %v3382_v11  ;;  %v3374_v24 = vpop.permute.xlu0 %3373 }
0x10f7   : > { %5009 = vmatprep.subr.mxu1 %v3344_v34  ;;  %v3379_v36 = vsel %vm1829_vm6, %v3276_v21, %v3278_v0 }
0x10f8   : > { %5010 = vmatpush3.msra.mxu1 %v3381_v57 }
0x10f9   : > { %5011 = vmatprep.subr.mxu1 %v3342_v4 }
0x10fa   : > { %v3340_v58 = vpop.permute.xlu1 %3339  ;;  %5012 = vmatpush3.msra.mxu1 %v3380_v51 }
0x10fb   : > { %5013 = vmatprep.subr.mxu1 %v3340_v58 }
0x10fc   : > { %5014 = vmatpush3.msra.mxu1 %v3379_v36 }
0x10fd   : > { %3503 = vmatmul.mubr.f32.vlgmr.msra.gmra.mxu1 %v3046_v19 }
0x10fe   : > { %v3376_v15 = vpop.permute.xlu1 %3375  ;;  %3507 = vmatprep.mubr.f32.mxu1 %v3050_v39 }
0x10ff   : > { %5076 = vmatprep.subr.mxu0 %v3376_v15 }
0x1100   : > { %5077 = vmatpush3.msra.mxu0 %v3376_v15 }
0x1101   : > { %3508 = vmatmul.mubr.f32.gmra.mxu1 %v3049_v2  ;;  %5078 = vmatprep.subr.mxu0 %v3374_v24 }
0x1102   : > { %v3372_v9 = vpop.permute.xlu1 %3371  ;;  %5079 = vmatpush3.msra.mxu0 %v3374_v24  ;;  %3942 = vmatprep.mubr.f32.mxu1 %v6819_v14 }
0x1103   : > { %5080 = vmatprep.subr.mxu0 %v3372_v9  ;;  %v3265_v7 = vpop.permute.xlu0 %3264 }
0x1104   : > { %5081 = vmatpush3.msra.mxu0 %v3372_v9 }
0x1105   : > { %5083 = vmatmul.mubr.msk.f32.vlgmr.msra.gmra.mxu0 %vm3431_vm1, %v3051_v62  ;;  %3788 = vmatprep.subr.mxu0 %v6819_v14 }
0x110f   : > { %v3260_v18 = vpop.permute.xlu1 %3259 }
0x1113   : > { %v3667_v12 = vpop.permute.xlu1 %3666 }
0x11bd   : > { %v5015_v59 = vpop.f32.mrf.mxu1 }
0x11bf   : > { %v5016_v60 = vpop.f32.mrf.mxu1 }
0x11c0   : > { %v5017_v40 = vadd.f32 %v5016_v60, %v5015_v59 }
0x11c1   : > { %v5018_v27 = vpop.f32.mrf.mxu1 }
0x11c2   : > { %v3505_v37 = vadd.f32 %v5017_v40, %v3260_v18 }
0x11c3   : > { %v5019_v63 = vpop.f32.mrf.mxu1 }
0x11c4   : > { %v5020_v43 = vadd.f32 %v5019_v63, %v5018_v27 }
0x11c5   : > { %v5084_v44 = vpop.f32.mrf.mxu0 }
0x11c6   : > { %v3510_v46 = vadd.f32 %v5020_v43, %v3265_v7 }
0x11c7   : > { %v3579_v50 = vpop.f32.mrf.mxu0 }
0x11c8   : > { %v3585_v8 = vadd.f32 %v5084_v44, %v3510_v46  ;;  %v3580_v48 = vadd.f32 %v3579_v50, %v3505_v37 }
0x11ca   : > { %v3589_v3 = vmax.f32 %v3585_v8, 0.0  ;;  %v3588_v4 = vmax.f32 %v3580_v48, 0.0  ;;  %v5196_v48 = vpack.i.bf16 %v6819_v14, %v6819_v14 }
0x11cc   : > { %3607 = vst.msk [vmem:[#allocation2 + $0x28] sm:$0xff] %vm1705_vm3, %v3589_v3  ;;  %3606 = vst.msk [vmem:[#allocation2 + $0x8] sm:$0xff] %vm1705_vm3, %v3588_v4  ;;  %v6919_v3 = vld [vmem:[#allocation2 + $0x10] sm:$0xff]  ;;  %v4006_v4 = vmul.f32 %v5439_v22, %v5822_v55 }
0x11d3   : > { %v6826_v5 = vld [vmem:[#allocation2 + $0x8] sm:$0xff] }
0x11d4   : > { %v6828_v6 = vld [vmem:[#allocation2 + $0x28] sm:$0xff]  ;;  %3688 = vrot.lane.b32.xlu1 %v6826_v5, %s7670_s1  ;;  %v3626_v34 = vmul.f32 %v6826_v5, %v5881_v54  ;;  %v3624_v1 = vmul.f32 %v6826_v5, %v5879_v53  ;;  %v3621_v61 = vmul.f32 %v6826_v5, %v5885_v33  ;;  %v3617_v49 = vmul.f32 %v6826_v5, %v5883_v13 }
0x11d5   : > { %3690 = vrot.lane.b32.xlu0 %v6828_v6, %s7670_s1  ;;  %4450 = vst [vmem:[#allocation2 + $0x28] sm:$0xff] %v6819_v14  ;;  %v3627_v0 = vmul.f32 %v6828_v6, %v5881_v54  ;;  %v3625_v30 = vmul.f32 %v6828_v6, %v5879_v53  ;;  %v3623_v54 = vmul.f32 %v6828_v6, %v5885_v33 }
0x11d6   : > { %v3619_v53 = vmul.f32 %v6828_v6, %v5883_v13  ;;  %v3628_v33 = vmul.f32 %v6826_v5, %v5877_v52  ;;  %v3663_v13 = vpop.permute.xlu0 %3662  ;;  %v3615_v43 = vmul.f32 %v6828_v6, %v5932_v20  ;;  %v3613_v44 = vmul.f32 %v6826_v5, %v5932_v20  ;;  %v3055_v20 = vld [vmem:[%s7674_s15 + $0x8] sm:$0xff] }
0x11d7   : > { %4914 = vmatprep.mubr.msk.f32.mxu0 %vm2126_vm8, %v3055_v20 }
0x11d8   : > { %3672 = vrot.lane.b32.xlu1 %v6826_v5, %s7661_s23 }
0x11d9   : > { %3674 = vrot.lane.b32.xlu0 %v6828_v6, %s7661_s23  ;;  %s7675_s23 = smov 95  }
0x11dc   : > { %3684 = vrot.lane.b32.xlu1 %v3626_v34, %s7655_s5  ;;  %v3056_v34 = vld [vmem:[%s7555_s16] sm:$0xff] }
0x11dd   : > { %3686 = vrot.lane.b32.xlu0 %v3627_v0, %s7655_s5  ;;  %v4007_v0 = vmul.f32 %v6919_v3, %v5503_v42 }
0x11e0   : > { %3678 = vrot.lane.b32.xlu1 %v3624_v1, %s7656_s9  ;;  %v3993_v1 = vmul.f32 %v5822_v55, %v5514_v45 }
0x11e1   : > { %3680 = vrot.lane.b32.xlu0 %v3625_v30, %s7656_s9  ;;  %v4001_v30 = vmul.f32 %v6919_v3, %v5499_v41 }
0x11e4   : > { %3664 = vrot.lane.b32.xlu1 %v3621_v61, %s7660_s11  ;;  %v3987_v61 = vmul.f32 %v5822_v55, %v5522_v47 }
0x11e5   : > { %3668 = vrot.lane.b32.xlu0 %v3623_v54, %s7660_s11  ;;  %v3994_v54 = vmul.f32 %v5466_v32, %v6919_v3 }
0x11e8   : > { %3650 = vrot.lane.b32.xlu1 %v3617_v49, %s7651_s30  ;;  %v6990_v49 = vmul.f32 %v6819_v14, %v5453_v28 }
0x11e9   : > { %3648 = vrot.lane.b32.xlu0 %v6464_v25, %s7651_s30  ;;  %v3629_v25 = vmul.f32 %v6828_v6, %v5877_v52 }
0x11ec   : > { %3654 = vrot.lane.b32.xlu1 %v3619_v53, %s7651_s30  ;;  %v3988_v53 = vmul.f32 %v5474_v35, %v6919_v3 }
0x11ed   : > { %5192 = vrot.lane.b32.xlu0 %v6486_v56, %s7657_s0  ;;  %v3653_v56 = vpop.permute.xlu0 %3652 }
0x11f0   : > { %3640 = vrot.lane.b32.xlu1 %v6828_v6, %s7657_s0  ;;  %v6931_v6 = vmul.f32 %v6819_v14, %v5464_v31  ;;  %v6945_v31 = vmul.f32 %v6819_v14, %v5455_v29  ;;  %v6963_v29 = vmul.f32 %v6819_v14, %v5442_v23  ;;  %v6977_v23 = vmul.f32 %v6819_v14, %v5447_v26 }
0x11f1   : > { %3636 = vrot.lane.b32.xlu0 %v6826_v5, %s7657_s0  ;;  %v4013_v26 = vmul.f32 %v6919_v3, %v5488_v38 }
0x11f4   : > { %3696 = vrot.lane.b32.xlu1 %v3629_v25, %s7652_s3  ;;  %v4012_v25 = vmul.f32 %v5431_v16, %v5822_v55 }
0x11f5   : > { %3694 = vrot.lane.b32.xlu0 %v3628_v33, %s7652_s3 }
0x1246   : > { %v3689_v11 = vpop.permute.xlu1 %3688 }
0x1247   : > { %v3691_v21 = vpop.permute.xlu0 %3690  ;;  %3751 = vrot.lane.b32.xlu0 %v3689_v11, %s7671_s2 }
0x124a   : > { %v3673_v57 = vpop.permute.xlu1 %3672 }
0x124b   : > { %v3675_v51 = vpop.permute.xlu0 %3674  ;;  %3739 = vrot.lane.b32.xlu0 %v3673_v57, %s7671_s2 }
0x124e   : > { %v3685_v58 = vpop.permute.xlu1 %3684 }
0x124f   : > { %v3687_v19 = vpop.permute.xlu0 %3686  ;;  %3747 = vrot.lane.b32.xlu0 %v3685_v58, %s7671_s2 }
0x1252   : > { %v3679_v52 = vpop.permute.xlu1 %3678 }
0x1253   : > { %v3681_v36 = vpop.permute.xlu0 %3680  ;;  %3743 = vrot.lane.b32.xlu0 %v3679_v52, %s7671_s2 }
0x1256   : > { %v3665_v39 = vpop.permute.xlu1 %3664 }
0x1257   : > { %v3669_v15 = vpop.permute.xlu0 %3668  ;;  %3733 = vrot.lane.b32.xlu0 %v3665_v39, %s7671_s2  ;;  %v3670_v2 = vsel %vm1776_vm5, %v3663_v13, %v3665_v39 }
0x1258   : > { %3731 = vrot.lane.b32.xlu1 %v3670_v2, %s7671_s2  ;;  %v3671_v18 = vsel %vm1776_vm5, %v3667_v12, %v3669_v15 }
0x125a   : > { %v3651_v24 = vpop.permute.xlu1 %3650 }
0x125b   : > { %v3649_v9 = vpop.permute.xlu0 %3648  ;;  %3725 = vrot.lane.b32.xlu0 %v3651_v24, %s7671_s2 }
0x125c   : > { %v3656_v62 = vsel %vm982_vm15, %v3649_v9, %v3651_v24 }
0x125d   : > { %3723 = vrot.lane.b32.xlu1 %v3656_v62, %s7671_s2 }
0x125e   : > { %v3655_v59 = vpop.permute.xlu1 %3654 }
0x125f   : > { %v5193_v60 = vpop.permute.xlu0 %5192  ;;  %v3657_v37 = vsel %vm982_vm15, %v3653_v56, %v3655_v59 }
0x1260   : > { %v5194_v40 = vunpack.i.l.bf16 %v5193_v60  ;;  %v5195_v46 = vunpack.i.h.bf16 %v5193_v60 }
0x1261   : > { %3753 = vrot.lane.b32.xlu1 %v3691_v21, %s7671_s2 }
0x1262   : > { %v3641_v27 = vpop.permute.xlu1 %3640 }
0x1263   : > { %3721 = vrot.lane.b32.xlu0 %v3641_v27, %s7671_s2  ;;  %v3643_v63 = vsel %vm917_vm7, %v5194_v40, %v3641_v27  ;;  %v3637_v7 = vpop.permute.xlu0 %3636 }
0x1264   : > { %v3642_v8 = vsel %vm917_vm7, %v5195_v46, %v3637_v7 }
0x1265   : > { %3741 = vrot.lane.b32.xlu1 %v3675_v51, %s7671_s2 }
0x1266   : > { %v3697_v5 = vpop.permute.xlu1 %3696 }
0x1267   : > { %3737 = vrot.lane.b32.xlu0 %v3669_v15, %s7671_s2  ;;  %v3695_v50 = vpop.permute.xlu0 %3694 }
0x1269   : > { %3719 = vrot.lane.b32.xlu1 %v3643_v63, %s7671_s2 }
0x126b   : > { %3729 = vrot.lane.b32.xlu0 %v3655_v59, %s7671_s2 }
0x126d   : > { %3749 = vrot.lane.b32.xlu1 %v3687_v19, %s7671_s2 }
0x126f   : > { %3717 = vrot.lane.b32.xlu0 %v3637_v7, %s7671_s2 }
0x1271   : > { %3745 = vrot.lane.b32.xlu1 %v3681_v36, %s7671_s2 }
0x1273   : > { %3713 = vrot.lane.b32.xlu0 %v3615_v43, %s7671_s2 }
0x1275   : > { %3735 = vrot.lane.b32.xlu1 %v3671_v18, %s7671_s2 }
0x1277   : > { %3709 = vrot.lane.b32.xlu0 %v3613_v44, %s7671_s2 }
0x1279   : > { %3727 = vrot.lane.b32.xlu1 %v3657_v37, %s7671_s2 }
0x127b   : > { %3755 = vrot.lane.b32.xlu0 %v3695_v50, %s7671_s2 }
0x127d   : > { %3715 = vrot.lane.b32.xlu1 %v3642_v8, %s7671_s2 }
0x127f   : > { %5197 = vrot.lane.b32.xlu0 %v5196_v48, %s7675_s23 }
0x1281   : > { %3711 = vrot.lane.b32.xlu1 %v6702_v10, %s7671_s2 }
0x1283   : > { %4142 = vrot.lane.b32.xlu0 %v6919_v3, %s7675_s23 }
0x1285   : > { %3707 = vrot.lane.b32.xlu1 %v6702_v10, %s7671_s2  ;;  %v4000_v10 = vmul.f32 %v5433_v17, %v5822_v55 }
0x1287   : > { %4122 = vrot.lane.b32.xlu0 %v4006_v4, %s7676_s8 }
0x1289   : > { %3757 = vrot.lane.b32.xlu1 %v3697_v5, %s7671_s2  ;;  %s7677_s2 = smov 94  }
0x128b   : > { %4126 = vrot.lane.b32.xlu0 %v6931_v6, %s7676_s8 }
0x128d   : > { %3700 = vperm.xlu1 %5165, %v3056_v34  }
0x128f   : > { %4100 = vrot.lane.b32.xlu0 %v4000_v10, %s7652_s3 }
0x1291   : > { %4140 = vrot.lane.b32.xlu1 %v5822_v55, %s7675_s23 }
0x1293   : > { %4104 = vrot.lane.b32.xlu0 %v6945_v31, %s7652_s3 }
0x1295   : > { %4132 = vrot.lane.b32.xlu1 %v6931_v6, %s7676_s8 }
0x1297   : > { %4086 = vrot.lane.b32.xlu0 %v6919_v3, %s7670_s1 }
0x1299   : > { %4124 = vrot.lane.b32.xlu1 %v4007_v0, %s7676_s8  ;;  %v3054_v0 = vld [vmem:[%s7674_s15] sm:$0xff] }
0x129b   : > { %4070 = vrot.lane.b32.xlu0 %v3993_v1, %s7655_s5 }
0x129d   : > { %4110 = vrot.lane.b32.xlu1 %v6945_v31, %s7652_s3 }
0x129f   : > { %4068 = vrot.lane.b32.xlu0 %v6963_v29, %s7655_s5 }
0x12a1   : > { %4102 = vrot.lane.b32.xlu1 %v4001_v30, %s7652_s3 }
0x12a3   : > { %4048 = vrot.lane.b32.xlu0 %v3987_v61, %s7651_s30 }
0x12a5   : > { %4084 = vrot.lane.b32.xlu1 %v5822_v55, %s7670_s1 }
0x12a7   : > { %4046 = vrot.lane.b32.xlu0 %v6977_v23, %s7651_s30 }
0x12a9   : > { %4074 = vrot.lane.b32.xlu1 %v6963_v29, %s7655_s5 }
0x12ab   : > { %4026 = vrot.lane.b32.xlu0 %v5822_v55, %s7657_s0 }
0x12ad   : > { %4072 = vrot.lane.b32.xlu1 %v3994_v54, %s7655_s5 }
0x12af   : > { %4172 = vrot.lane.b32.xlu0 %v6990_v49, %s7677_s2 }
0x12b1   : > { %4052 = vrot.lane.b32.xlu1 %v6977_v23, %s7651_s30 }
0x12b3   : > { %4164 = vrot.lane.b32.xlu0 %v4013_v26, %s7677_s2 }
0x12b5   : > { %4050 = vrot.lane.b32.xlu1 %v3988_v53, %s7651_s30 }
0x12b9   : > { %5202 = vrot.lane.b32.xlu1 %v5196_v48, %s7657_s0  ;;  %v3752_v28 = vpop.permute.xlu0 %3751 }
0x12bd   : > { %4028 = vrot.lane.b32.xlu1 %v6919_v3, %s7657_s0  ;;  %v3740_v33 = vpop.permute.xlu0 %3739 }
0x12c1   : > { %4162 = vrot.lane.b32.xlu1 %v4012_v25, %s7677_s2  ;;  %v3748_v13 = vpop.permute.xlu0 %3747 }
0x12c5   : > { %4166 = vrot.lane.b32.xlu1 %v6990_v49, %s7677_s2  ;;  %v3744_v56 = vpop.permute.xlu0 %3743 }
0x12c9   : > { %v3734_v11 = vpop.permute.xlu0 %3733 }
0x12ca   : > { %v3732_v12 = vpop.permute.xlu1 %3731 }
0x12cb   : > { %v3765_v40 = vsel %vm1829_vm6, %v3732_v12, %v3734_v11 }
0x12cd   : > { %v3726_v57 = vpop.permute.xlu0 %3725 }
0x12cf   : > { %v3724_v21 = vpop.permute.xlu1 %3723 }
0x12d0   : > { %v3763_v18 = vsel %vm1829_vm6, %v3724_v21, %v3726_v57 }
0x12d3   : > { %v3754_v51 = vpop.permute.xlu1 %3753 }
0x12d4   : > { %3789 = vmatpush1.msra.mxu0 %v3754_v51 }
0x12d5   : > { %3790 = vmatprep.subr.mxu0 %v6819_v14  ;;  %v3722_v58 = vpop.permute.xlu0 %3721 }
0x12d6   : > { %3791 = vmatpush1.msra.mxu0 %v3752_v28 }
0x12d7   : > { %v3742_v19 = vpop.permute.xlu1 %3741  ;;  %3792 = vmatprep.subr.mxu0 %v6819_v14 }
0x12d9   : > { %v3738_v52 = vpop.permute.xlu0 %3737 }
0x12db   : > { %v3720_v36 = vpop.permute.xlu1 %3719 }
0x12dc   : > { %v3762_v46 = vsel %vm1829_vm6, %v3720_v36, %v3722_v58  ;;  %v3874_v58 = vld [vmem:[%s7565_s26 + $0x78] sm:$0xff]  ;;  %v3871_v36 = vld [vmem:[%s7565_s26 + $0x60] sm:$0xff] }
0x12dd   : > { %v3730_v39 = vpop.permute.xlu0 %3729  ;;  %3894 = vmatprep.subr.mxu1 %v3874_v58 }
0x12df   : > { %v3750_v15 = vpop.permute.xlu1 %3749 }
0x12e0   : > { %3793 = vmatpush1.msra.mxu0 %v3750_v15  ;;  %v3869_v15 = vld [vmem:[%s7565_s26 + $0x50] sm:$0xff] }
0x12e1   : > { %3794 = vmatprep.subr.mxu0 %v6819_v14  ;;  %v3718_v2 = vpop.permute.xlu0 %3717 }
0x12e2   : > { %3795 = vmatpush1.msra.mxu0 %v3748_v13 }
0x12e3   : > { %3796 = vmatprep.subr.mxu0 %v6819_v14  ;;  %v3746_v24 = vpop.permute.xlu1 %3745 }
0x12e4   : > { %3797 = vmatpush1.msra.mxu0 %v3746_v24  ;;  %v3867_v24 = vld [vmem:[%s7565_s26 + $0x40] sm:$0xff] }
0x12e5   : > { %3798 = vmatprep.subr.mxu0 %v6819_v14  ;;  %v3714_v9 = vpop.permute.xlu0 %3713 }
0x12e6   : > { %3799 = vmatpush1.msra.mxu0 %v3744_v56 }
0x12e7   : > { %3800 = vmatprep.subr.mxu0 %v6819_v14  ;;  %v3736_v62 = vpop.permute.xlu1 %3735 }
0x12e8   : > { %3801 = vmatpush1.msra.mxu0 %v3742_v19  ;;  %v3766_v60 = vsel %vm1829_vm6, %v3736_v62, %v3738_v52  ;;  %v3873_v19 = vld [vmem:[%s7565_s26 + $0x70] sm:$0xff]  ;;  %v3872_v52 = vld [vmem:[%s7565_s26 + $0x68] sm:$0xff] }
0x12e9   : > { %3802 = vmatprep.subr.mxu0 %v6819_v14  ;;  %v3710_v59 = vpop.permute.xlu0 %3709  ;;  %3895 = vmatpush1.msra.mxu1 %v3873_v19  ;;  %v3865_v62 = vld [vmem:[%s7565_s26 + $0x30] sm:$0xff] }
0x12ea   : > { %3803 = vmatpush1.msra.mxu0 %v3740_v33  ;;  %3896 = vmatprep.subr.mxu1 %v3872_v52 }
0x12eb   : > { %3804 = vmatprep.subr.mxu0 %v6819_v14  ;;  %v3728_v27 = vpop.permute.xlu1 %3727  ;;  %3897 = vmatpush1.msra.mxu1 %v3871_v36 }
0x12ec   : > { %3805 = vmatpush1.msra.mxu0 %v3766_v60  ;;  %v3764_v7 = vsel %vm1829_vm6, %v3728_v27, %v3730_v39  ;;  %v3870_v39 = vld [vmem:[%s7565_s26 + $0x58] sm:$0xff] }
0x12ed   : > { %3806 = vmatprep.subr.mxu0 %v6819_v14  ;;  %v3756_v63 = vpop.permute.xlu0 %3755  ;;  %3898 = vmatprep.subr.mxu1 %v3870_v39 }
0x12ee   : > { %3807 = vmatpush1.msra.mxu0 %v3765_v40  ;;  %3899 = vmatpush1.msra.mxu1 %v3869_v15  ;;  %v3863_v40 = vld [vmem:[%s7565_s26 + $0x20] sm:$0xff] }
0x12ef   : > { %3808 = vmatprep.subr.mxu0 %v6819_v14  ;;  %v3716_v43 = vpop.permute.xlu1 %3715 }
0x12f0   : > { %3809 = vmatpush1.msra.mxu0 %v3764_v7  ;;  %v3761_v8 = vsel %vm1829_vm6, %v3716_v43, %v3718_v2  ;;  %v3868_v2 = vld [vmem:[%s7565_s26 + $0x48] sm:$0xff]  ;;  %v3861_v7 = vld [vmem:[%s7565_s26 + $0x10] sm:$0xff] }
0x12f1   : > { %3810 = vmatprep.subr.mxu0 %v6819_v14  ;;  %v7025_v44 = vpop.permute.xlu0 %5197  ;;  %3900 = vmatprep.subr.mxu1 %v3868_v2  ;;  %v3860_v43 = vld [vmem:[%s7565_s26 + $0x8] sm:$0xff] }
0x12f2   : > { %3811 = vmatpush1.msra.mxu0 %v3763_v18  ;;  %v5200_v37 = vunpack.i.h.bf16 %v7025_v44  ;;  %3901 = vmatpush1.msra.mxu1 %v3867_v24  ;;  %v3859_v18 = vld [vmem:[%s7565_s26] sm:$0xff] }
0x12f3   : > { %3812 = vmatprep.subr.mxu0 %v6819_v14  ;;  %v3712_v50 = vpop.permute.xlu1 %3711 }
0x12f4   : > { %3813 = vmatpush1.msra.mxu0 %v3762_v46  ;;  %v3760_v20 = vsel %vm1829_vm6, %v3712_v50, %v3714_v9  ;;  %v3866_v9 = vld [vmem:[%s7565_s26 + $0x38] sm:$0xff] }
0x12f5   : > { %3814 = vmatprep.subr.mxu0 %v6819_v14  ;;  %v4143_v48 = vpop.permute.xlu0 %4142  ;;  %3902 = vmatprep.subr.mxu1 %v3866_v9 }
0x12f6   : > { %3815 = vmatpush1.msra.mxu0 %v3761_v8  ;;  %v4153_v5 = vsel %vm1033_vm9, %v4143_v48, %v5200_v37  ;;  %3903 = vmatpush1.msra.mxu1 %v3865_v62 }
0x12f7   : > { %3816 = vmatprep.subr.mxu0 %v6819_v14  ;;  %v3708_v4 = vpop.permute.xlu1 %3707  ;;  %4277 = vrot.lane.b32.xlu0 %v4153_v5, %s7678_s10 }
0x12f8   : > { %v3759_v34 = vsel %vm1829_vm6, %v3708_v4, %v3710_v59  ;;  %3817 = vmatpush1.msra.mxu0 %v3760_v20  ;;  %v3864_v59 = vld [vmem:[%s7565_s26 + $0x28] sm:$0xff] }
0x12f9   : > { %3818 = vmatprep.subr.mxu0 %v6819_v14  ;;  %v4123_v30 = vpop.permute.xlu0 %4122  ;;  %3904 = vmatprep.subr.mxu1 %v3864_v59 }
0x12fa   : > { %3819 = vmatpush1.msra.mxu0 %v3759_v34  ;;  %3905 = vmatpush1.msra.mxu1 %v3863_v40 }
0x12fb   : > { %3848 = vmatprep.subr.mxu0 %v6819_v14  ;;  %v3758_v10 = vpop.permute.xlu1 %3757 }
0x12fc   : > { %3849 = vmatpush2.msra.mxu0 %v3758_v10 }
0x12fd   : > { %3850 = vmatprep.subr.mxu0 %v6819_v14  ;;  %v4127_v54 = vpop.permute.xlu0 %4126 }
0x12fe   : > { %3851 = vmatpush2.msra.mxu0 %v3756_v63  ;;  %v3862_v63 = vld [vmem:[%s7565_s26 + $0x18] sm:$0xff] }
0x12ff   : > { %3853 = vmatmul.mubr.f32.vlgmr.msra.gmra.mxu0 %v3054_v0  ;;  %3906 = vmatprep.subr.mxu1 %v3862_v63 }
0x1300   : > { %3907 = vmatpush1.msra.mxu1 %v3861_v7 }
0x1301   : > { %v4101_v28 = vpop.permute.xlu0 %4100  ;;  %3908 = vmatprep.subr.mxu1 %v3860_v43 }
0x1302   : > { %3909 = vmatpush1.msra.mxu1 %v3859_v18 }
0x1305   : > { %v4105_v13 = vpop.permute.xlu0 %4104 }
0x1308   : > { %v3701_v1 = vpop.permute.xlu1 %3700 }
0x1309   : > { %v4087_v21 = vpop.permute.xlu0 %4086 }
0x130c   : > { %v4141_v61 = vpop.permute.xlu1 %4140 }
0x130d   : > { %4273 = vrot.lane.b32.xlu1 %v4141_v61, %s7678_s10  ;;  %v4152_v57 = vsel %vm1033_vm9, %v4141_v61, %v4143_v48 }
0x1310   : > { %v7044_v26 = vpop.permute.xlu1 %4132 }
0x1314   : > { %v4125_v53 = vpop.permute.xlu1 %4124 }
0x1315   : > { %v4135_v33 = vsel %vm1023_vm12, %v4125_v53, %v4127_v54  ;;  %v4134_v60 = vsel %vm1023_vm12, %v4123_v30, %v4125_v53 }
0x1316   : > { %4265 = vrot.lane.b32.xlu0 %v4135_v33, %s7678_s10 }
0x1318   : > { %v7048_v25 = vpop.permute.xlu1 %4110 }
0x131c   : > { %v4103_v56 = vpop.permute.xlu1 %4102 }
0x131d   : > { %v4113_v12 = vsel %vm1011_vm13, %v4103_v56, %v4105_v13  ;;  %v4112_v27 = vsel %vm1011_vm13, %v4101_v28, %v4103_v56 }
0x131e   : > { %4253 = vrot.lane.b32.xlu0 %v4113_v12, %s7678_s10 }
0x1320   : > { %v4085_v11 = vpop.permute.xlu1 %4084 }
0x1321   : > { %4237 = vrot.lane.b32.xlu1 %v4085_v11, %s7678_s10  ;;  %v4092_v51 = vsel %vm891_vm10, %v4085_v11, %v4087_v21 }
0x1322   : > { %4241 = vrot.lane.b32.xlu0 %v4087_v21, %s7678_s10 }
0x1324   : > { %v7114_v48 = vpop.permute.xlu1 %4074 }
0x1325   : > { %4275 = vrot.lane.b32.xlu1 %v4152_v57, %s7678_s10 }
0x1328   : > { %v4073_v20 = vpop.permute.xlu1 %4072 }
0x1329   : > { %4239 = vrot.lane.b32.xlu1 %v4092_v51, %s7678_s10 }
0x132c   : > { %v7125_v5 = vpop.permute.xlu1 %4052 }
0x132d   : > { %4261 = vrot.lane.b32.xlu1 %v4123_v30, %s7678_s10  ;;  %v4071_v30 = vpop.permute.xlu0 %4070 }
0x132e   : > { %v4081_v54 = vsel %vm994_vm14, %v4071_v30, %v4073_v20 }
0x1330   : > { %v4051_v0 = vpop.permute.xlu1 %4050 }
0x1331   : > { %4249 = vrot.lane.b32.xlu1 %v4101_v28, %s7678_s10  ;;  %v4069_v56 = vpop.permute.xlu0 %4068 }
0x1332   : > { %v4080_v11 = vsel %vm994_vm14, %v4069_v56, %v4071_v30 }
0x1334   : > { %v7164_v21 = vpop.permute.xlu1 %5202 }
0x1335   : > { %4263 = vrot.lane.b32.xlu1 %v4134_v60, %s7678_s10  ;;  %v4049_v57 = vpop.permute.xlu0 %4048 }
0x1336   : > { %v4059_v58 = vsel %vm982_vm15, %v4049_v57, %v4051_v0 }
0x1338   : > { %v4029_v52 = vpop.permute.xlu1 %4028 }
0x1339   : > { %4251 = vrot.lane.b32.xlu1 %v4112_v27, %s7678_s10  ;;  %v4047_v36 = vpop.permute.xlu0 %4046 }
0x133a   : > { %v4058_v39 = vsel %vm982_vm15, %v4047_v36, %v4049_v57 }
0x133c   : > { %v7182_v24 = vpop.permute.xlu1 %4162 }
0x133d   : > { %v7177_v15 = vpop.permute.xlu0 %4026 }
0x133e   : > { %v4037_v2 = vsel %vm917_vm7, %v7177_v15, %v4029_v52 }
0x1340   : > { %v7184_v9 = vpop.permute.xlu1 %4166 }
0x1341   : > { %v7192_v27 = vpop.permute.xlu0 %4172 }
0x1345   : > { %v7196_v63 = vpop.permute.xlu0 %4164 }
0x1369   : > { %v7200_v43 = vpop.permute.xlu0 %4277 }
0x137f   : > { %v7186_v62 = vpop.permute.xlu1 %4273 }
0x1393   : > { %v7188_v59 = vpop.permute.xlu1 %4237 }
0x1397   : > { %v7190_v60 = vpop.permute.xlu1 %4275 }
0x139b   : > { %v7194_v40 = vpop.permute.xlu1 %4239 }
0x139f   : > { %v7198_v7 = vpop.permute.xlu1 %4261 }
0x13a3   : > { %v7202_v18 = vpop.permute.xlu1 %4249 }
0x13bf   : > { %v3854_v46 = vpop.f32.mrf.mxu0 }
0x13c0   : > { %v3855_v37 = vadd.f32 %v3854_v46, %v3701_v1  ;;  %v7204_v46 = vpop.permute.xlu0 %4265 }
0x13c1   : > { %v3856_v50 = vpop.f32.mrf.mxu0 }
0x13c2   : > { %v3858_v8 = vmax.f32 %v3855_v37, 0.0  ;;  %v7208_v50 = vpop.permute.xlu1 %4263 }
0x13c4   : > { %4915 = vmatmul.mubr.msk.f32.vlgmr.msra.gmra.mxu1 %vm1705_vm3, %v3858_v8  ;;  %v7206_v37 = vpop.permute.xlu0 %4253 }
0x13c5   : > { %4730 = vmatprep.mubr.f32.mxu1 %v6819_v14 }
0x13c8   : > { %v7210_v8 = vpop.permute.xlu0 %4241 }
0x1484   : > { %v7116_v4 = vpop.f32.mrf.mxu1 }
0x1485   : > { %4146 = vrot.lane.b32.xlu0 %v7116_v4, %s7675_s23  ;;  %4088 = vrot.lane.b32.xlu1 %v7116_v4, %s7670_s1  ;;  %v4009_v10 = vmul.f32 %v5439_v22, %v7116_v4  ;;  %v4003_v1 = vmul.f32 %v5433_v17, %v7116_v4  ;;  %v4015_v61 = vmul.f32 %v5431_v16, %v7116_v4 }
0x1486   : > { %v7127_v34 = vpop.f32.mrf.mxu1  ;;  %v3996_v53 = vmul.f32 %v7116_v4, %v5514_v45  ;;  %v3990_v33 = vmul.f32 %v7116_v4, %v5522_v47 }
0x1487   : > { %v4010_v28 = vmul.f32 %v7127_v34, %v5503_v42  ;;  %v4004_v13 = vmul.f32 %v7127_v34, %v5499_v41  ;;  %v3997_v12 = vmul.f32 %v5466_v32, %v7127_v34  ;;  %v3991_v51 = vmul.f32 %v5474_v35, %v7127_v34 }
0x1488   : > { %v4016_v19 = vmul.f32 %v7127_v34, %v5488_v38 }
0x1489   : > { %4032 = vrot.lane.b32.xlu1 %v7116_v4, %s7657_s0  ;;  %4229 = vrot.lane.b32.xlu0 %v4073_v20, %s7678_s10  ;;  %v7212_v20 = vpop.permute.xlu1 %4251 }
0x148d   : > { %4148 = vrot.lane.b32.xlu1 %v7127_v34, %s7675_s23  ;;  %4090 = vrot.lane.b32.xlu0 %v7127_v34, %s7670_s1 }
0x1491   : > { %4128 = vrot.lane.b32.xlu1 %v4009_v10, %s7676_s8  ;;  %4217 = vrot.lane.b32.xlu0 %v4051_v0, %s7678_s10 }
0x1495   : > { %4106 = vrot.lane.b32.xlu1 %v4003_v1, %s7652_s3  ;;  %4034 = vrot.lane.b32.xlu0 %v7127_v34, %s7657_s0 }
0x1499   : > { %4227 = vrot.lane.b32.xlu1 %v4081_v54, %s7678_s10  ;;  %4168 = vrot.lane.b32.xlu0 %v4015_v61, %s7677_s2  ;;  %v5204_v61 = vunpack.i.l.bf16 %v7164_v21 }
0x149d   : > { %4076 = vrot.lane.b32.xlu1 %v3996_v53, %s7655_s5  ;;  %4130 = vrot.lane.b32.xlu0 %v4010_v28, %s7676_s8 }
0x14a1   : > { %4054 = vrot.lane.b32.xlu1 %v3990_v33, %s7651_s30  ;;  %4108 = vrot.lane.b32.xlu0 %v4004_v13, %s7652_s3 }
0x14a5   : > { %4225 = vrot.lane.b32.xlu1 %v4080_v11, %s7678_s10  ;;  %4078 = vrot.lane.b32.xlu0 %v3997_v12, %s7655_s5  ;;  %v5199_v11 = vunpack.i.l.bf16 %v7025_v44 }
0x14a9   : > { %4215 = vrot.lane.b32.xlu1 %v4059_v58, %s7678_s10  ;;  %4056 = vrot.lane.b32.xlu0 %v3991_v51, %s7651_s30 }
0x14ad   : > { %4170 = vrot.lane.b32.xlu1 %v4016_v19, %s7677_s2  ;;  %4205 = vrot.lane.b32.xlu0 %v4029_v52, %s7678_s10 }
0x14b1   : > { %4213 = vrot.lane.b32.xlu1 %v4058_v39, %s7678_s10 }
0x14b5   : > { %4203 = vrot.lane.b32.xlu1 %v4037_v2, %s7678_s10 }
0x14f7   : > { %v4147_v10 = vpop.permute.xlu0 %4146  ;;  %v4089_v0 = vpop.permute.xlu1 %4088 }
0x14f8   : > { %4279 = vrot.lane.b32.xlu0 %v4147_v10, %s7678_s10 }
0x14fb   : > { %v7215_v1 = vpop.permute.xlu0 %4229  ;;  %v4033_v30 = vpop.permute.xlu1 %4032 }
0x14fc   : > { %4243 = vrot.lane.b32.xlu0 %v4089_v0, %s7678_s10  ;;  %v4038_v28 = vsel %vm917_vm7, %v5204_v61, %v4033_v30 }
0x14ff   : > { %v4091_v54 = vpop.permute.xlu0 %4090  ;;  %v4149_v53 = vpop.permute.xlu1 %4148 }
0x1500   : > { %4247 = vrot.lane.b32.xlu1 %v4091_v54, %s7678_s10  ;;  %4207 = vrot.lane.b32.xlu0 %v4038_v28, %s7678_s10  ;;  %v4155_v58 = vsel %vm1033_vm9, %v4149_v53, %v5199_v11  ;;  %v4154_v19 = vsel %vm1033_vm9, %v4147_v10, %v4149_v53  ;;  %v4093_v39 = vsel %vm891_vm10, %v4089_v0, %v4091_v54 }
0x1503   : > { %v7222_v33 = vpop.permute.xlu0 %4217  ;;  %v4129_v13 = vpop.permute.xlu1 %4128 }
0x1504   : > { %4267 = vrot.lane.b32.xlu0 %v4129_v13, %s7678_s10 }
0x1507   : > { %v4035_v56 = vpop.permute.xlu0 %4034  ;;  %v4107_v12 = vpop.permute.xlu1 %4106 }
0x1508   : > { %4211 = vrot.lane.b32.xlu1 %v4035_v56, %s7678_s10  ;;  %4255 = vrot.lane.b32.xlu0 %v4107_v12, %s7678_s10 }
0x150b   : > { %v4169_v57 = vpop.permute.xlu0 %4168  ;;  %v7228_v51 = vpop.permute.xlu1 %4227 }
0x150c   : > { %4283 = vrot.lane.b32.xlu1 %v4155_v58, %s7678_s10  ;;  %4281 = vrot.lane.b32.xlu0 %v4154_v19, %s7678_s10  ;;  %v5205_v58 = vunpack.i.h.bf16 %v7164_v21  ;;  %v7680_v21 = vld [vmem:[#allocation4_spill] sm:$0xff] }
0x150f   : > { %v4131_v52 = vpop.permute.xlu0 %4130  ;;  %v4077_v36 = vpop.permute.xlu1 %4076 }
0x1510   : > { %4245 = vrot.lane.b32.xlu0 %v4093_v39, %s7678_s10  ;;  %v4082_v44 = vsel %vm994_vm14, %v7114_v48, %v4077_v36  ;;  %v4039_v48 = vsel %vm917_vm7, %v4033_v30, %v4035_v56  ;;  %v4136_v54 = vsel %vm1023_vm12, %v4129_v13, %v4131_v52  ;;  %v7679_v56 = vld [vmem:[#allocation6_spill] sm:$0xff]  ;;  %v4036_v13 = vsel %vm917_vm7, %v5205_v58, %v7177_v15 }
0x1513   : > { %v4109_v2 = vpop.permute.xlu0 %4108  ;;  %v4055_v61 = vpop.permute.xlu1 %4054 }
0x1514   : > { %4231 = vrot.lane.b32.xlu0 %v4082_v44, %s7678_s10  ;;  %v4060_v10 = vsel %vm982_vm15, %v7125_v5, %v4055_v61  ;;  %v4137_v5 = vsel %vm1023_vm12, %v4131_v52, %v7044_v26  ;;  %v4115_v19 = vsel %vm1011_vm13, %v4109_v2, %v7048_v25  ;;  %v4114_v30 = vsel %vm1011_vm13, %v4107_v12, %v4109_v2  ;;  %v7681_v25 = vld [vmem:[#allocation5_spill] sm:$0xff] }
0x1515   : > { %v3984_v26 = vmul.f32 %v7116_v4, %v7679_v56  ;;  %v3985_v52 = vmul.f32 %v7680_v21, %v7127_v34  ;;  %v7271_v12 = vmul.f32 %v6819_v14, %v7681_v25  ;;  %v3981_v4 = vmul.f32 %v5822_v55, %v7679_v56  ;;  %v3950_v2 = vld [vmem:[%s7556_s17 + $0x8] sm:$0xff] }
0x1516   : > { %v3982_v44 = vmul.f32 %v7680_v21, %v6919_v3  ;;  %v4174_v55 = vsel %vm1045_vm11, %v7182_v24, %v7196_v63  ;;  %4916 = vmatprep.mubr.msk.f32.mxu0 %vm2126_vm8, %v3950_v2 }
0x1517   : > { %v4079_v53 = vpop.permute.xlu0 %4078  ;;  %v4226_v28 = vpop.permute.xlu1 %4225 }
0x1518   : > { %v7243_v11 = vsel %vm954_vm4, %v4226_v28, %v7228_v51  ;;  %4235 = vrot.lane.b32.xlu1 %v4079_v53, %s7678_s10  ;;  %4219 = vrot.lane.b32.xlu0 %v4060_v10, %s7678_s10  ;;  %v4083_v15 = vsel %vm994_vm14, %v4077_v36, %v4079_v53  ;;  %v4175_v10 = vsel %vm1045_vm11, %v7196_v63, %v7184_v9 }
0x151b   : > { %v4057_v0 = vpop.permute.xlu0 %4056  ;;  %v7281_v39 = vpop.permute.xlu1 %4215 }
0x151c   : > { %4223 = vrot.lane.b32.xlu1 %v4057_v0, %s7678_s10  ;;  %4209 = vrot.lane.b32.xlu0 %v4039_v48, %s7678_s10  ;;  %v4061_v34 = vsel %vm982_vm15, %v4055_v61, %v4057_v0 }
0x151f   : > { %v4171_v36 = vpop.permute.xlu1 %4170 }
0x1520   : > { %4271 = vrot.lane.b32.xlu1 %v4137_v5, %s7678_s10  ;;  %4269 = vrot.lane.b32.xlu0 %v4136_v54, %s7678_s10  ;;  %v4177_v61 = vsel %vm1045_vm11, %v4171_v36, %v7192_v27  ;;  %v4176_v3 = vsel %vm1045_vm11, %v4169_v57, %v4171_v36  ;;  %v3951_v27 = vld [vmem:[%s7557_s18] sm:$0xff]  ;;  %v4326_v54 = vsel %vm954_vm4, %v7190_v60, %v7200_v43 }
0x1521   : > { %v4322_v43 = vsel %vm954_vm4, %v7208_v50, %v7204_v46 }
0x1523   : > { %v7325_v9 = vpop.permute.xlu1 %4213 }
0x1524   : > { %4259 = vrot.lane.b32.xlu1 %v4115_v19, %s7678_s10  ;;  %4257 = vrot.lane.b32.xlu0 %v4114_v30, %s7678_s10  ;;  %v4325_v19 = vsel %vm954_vm4, %v7186_v62, %v7190_v60  ;;  %v4321_v60 = vsel %vm954_vm4, %v7198_v7, %v7208_v50 }
0x1528   : > { %4201 = vrot.lane.b32.xlu1 %v4036_v13, %s7678_s10  ;;  %4197 = vrot.lane.b32.xlu0 %v3984_v26, %s7678_s10 }
0x152c   : > { %4199 = vrot.lane.b32.xlu1 %v3985_v52, %s7678_s10  ;;  %4195 = vrot.lane.b32.xlu0 %v7271_v12, %s7678_s10 }
0x1530   : > { %4191 = vrot.lane.b32.xlu1 %v3981_v4, %s7678_s10  ;;  %4233 = vrot.lane.b32.xlu0 %v4083_v15, %s7678_s10 }
0x1534   : > { %4189 = vrot.lane.b32.xlu1 %v7271_v12, %s7678_s10  ;;  %4221 = vrot.lane.b32.xlu0 %v4061_v34, %s7678_s10 }
0x1538   : > { %4287 = vrot.lane.b32.xlu1 %v4174_v55, %s7678_s10  ;;  %4193 = vrot.lane.b32.xlu0 %v3982_v44, %s7678_s10 }
0x153c   : > { %4295 = vrot.lane.b32.xlu1 %v4177_v61, %s7678_s10  ;;  %4291 = vrot.lane.b32.xlu0 %v4169_v57, %s7678_s10  ;;  %v7327_v57 = vpop.permute.xlu1 %4203  ;;  %v4318_v61 = vsel %vm954_vm4, %v7212_v20, %v7206_v37 }
0x1540   : > { %4285 = vrot.lane.b32.xlu1 %v7182_v24, %s7678_s10  ;;  %4293 = vrot.lane.b32.xlu0 %v4176_v3, %s7678_s10 }
0x1544   : > { %4561 = vrot.lane.b32.xlu1 %v6990_v49, %s7677_s2  ;;  %4289 = vrot.lane.b32.xlu0 %v4175_v10, %s7678_s10  ;;  %v7323_v49 = vpop.permute.xlu0 %4205  ;;  %v4317_v10 = vsel %vm954_vm4, %v7202_v18, %v7212_v20 }
0x1548   : > { %4541 = vrot.lane.b32.xlu1 %v6931_v6, %s7676_s8  ;;  %4180 = vperm.xlu0 %5149, %v3951_v27   ;;  %v4314_v27 = vsel %vm954_vm4, %v7194_v40, %v7210_v8  ;;  %v4310_v8 = vsel %vm954_vm4, %v7228_v51, %v7215_v1 }
0x154c   : > { %4510 = vrot.lane.b32.xlu1 %v6963_v29, %s7655_s5  ;;  %4550 = vrot.lane.b32.xlu0 %v6819_v14, %s7675_s23 }
0x1550   : > { %4530 = vrot.lane.b32.xlu0 %v6945_v31, %s7652_s3 }
0x156a   : > { %v4280_v24 = vpop.permute.xlu0 %4279 }
0x156e   : > { %v4244_v63 = vpop.permute.xlu0 %4243 }
0x1572   : > { %v7329_v53 = vpop.permute.xlu0 %4207  ;;  %v4248_v6 = vpop.permute.xlu1 %4247 }
0x1576   : > { %v4268_v28 = vpop.permute.xlu0 %4267 }
0x157a   : > { %v7331_v0 = vpop.permute.xlu1 %4211  ;;  %v4256_v29 = vpop.permute.xlu0 %4255 }
0x157e   : > { %v4284_v48 = vpop.permute.xlu1 %4283  ;;  %v4282_v14 = vpop.permute.xlu0 %4281 }
0x157f   : > { %v4327_v5 = vsel %vm954_vm4, %v4280_v24, %v4282_v14  ;;  %v4328_v31 = vsel %vm954_vm4, %v4282_v14, %v4284_v48 }
0x1580   : > { %4372 = vmatprep.subr.mxu0 %v4328_v31 }
0x1581   : > { %4373 = vmatpush1.msra.mxu0 %v4327_v5  ;;  %v4305_v5 = vsel %vm954_vm4, %v7325_v9, %v7281_v39 }
0x1582   : > { %4374 = vmatprep.subr.mxu0 %v4326_v54  ;;  %v4246_v58 = vpop.permute.xlu0 %4245 }
0x1583   : > { %4375 = vmatpush1.msra.mxu0 %v4325_v19  ;;  %v4316_v7 = vsel %vm954_vm4, %v4246_v58, %v4248_v6  ;;  %v4315_v50 = vsel %vm954_vm4, %v4244_v63, %v4246_v58 }
0x1586   : > { %v4232_v30 = vpop.permute.xlu0 %4231 }
0x158a   : > { %v4236_v26 = vpop.permute.xlu1 %4235  ;;  %v4220_v13 = vpop.permute.xlu0 %4219 }
0x158e   : > { %v4224_v52 = vpop.permute.xlu1 %4223  ;;  %v4210_v25 = vpop.permute.xlu0 %4209 }
0x158f   : > { %v4304_v31 = vsel %vm954_vm4, %v4210_v25, %v7331_v0 }
0x1592   : > { %v4272_v4 = vpop.permute.xlu1 %4271  ;;  %v4270_v15 = vpop.permute.xlu0 %4269 }
0x1593   : > { %v4323_v34 = vsel %vm954_vm4, %v4268_v28, %v4270_v15  ;;  %v4324_v44 = vsel %vm954_vm4, %v4270_v15, %v4272_v4  ;;  %v4313_v28 = vsel %vm954_vm4, %v7188_v59, %v7194_v40  ;;  %v4306_v40 = vsel %vm954_vm4, %v7281_v39, %v7222_v33 }
0x1594   : > { %4376 = vmatprep.subr.mxu0 %v4324_v44  ;;  %v4302_v33 = vsel %vm954_vm4, %v7327_v57, %v7323_v49 }
0x1595   : > { %4377 = vmatpush1.msra.mxu0 %v4323_v34 }
0x1596   : > { %v4260_v55 = vpop.permute.xlu1 %4259  ;;  %4378 = vmatprep.subr.mxu0 %v4322_v43  ;;  %v4258_v62 = vpop.permute.xlu0 %4257 }
0x1597   : > { %v4319_v36 = vsel %vm954_vm4, %v4256_v29, %v4258_v62  ;;  %4379 = vmatpush1.msra.mxu0 %v4321_v60  ;;  %v4320_v2 = vsel %vm954_vm4, %v4258_v62, %v4260_v55 }
0x1598   : > { %4380 = vmatprep.subr.mxu0 %v4320_v2 }
0x1599   : > { %4381 = vmatpush1.msra.mxu0 %v4319_v36 }
0x159a   : > { %v4202_v3 = vpop.permute.xlu1 %4201  ;;  %4382 = vmatprep.subr.mxu0 %v4318_v61  ;;  %v4198_v46 = vpop.permute.xlu0 %4197 }
0x159b   : > { %4383 = vmatpush1.msra.mxu0 %v4317_v10  ;;  %v4301_v54 = vsel %vm954_vm4, %v4202_v3, %v7327_v57 }
0x159c   : > { %4384 = vmatprep.subr.mxu0 %v4316_v7 }
0x159d   : > { %4385 = vmatpush1.msra.mxu0 %v4315_v50 }
0x159e   : > { %v4200_v24 = vpop.permute.xlu1 %4199  ;;  %4386 = vmatprep.subr.mxu0 %v4314_v27  ;;  %v4196_v37 = vpop.permute.xlu0 %4195 }
0x159f   : > { %4387 = vmatpush1.msra.mxu0 %v4313_v28  ;;  %v4300_v58 = vsel %vm954_vm4, %v4198_v46, %v4200_v24  ;;  %v4299_v0 = vsel %vm954_vm4, %v4196_v37, %v4198_v46 }
0x15a2   : > { %v4192_v18 = vpop.permute.xlu1 %4191  ;;  %v4234_v20 = vpop.permute.xlu0 %4233 }
0x15a3   : > { %v4311_v6 = vsel %vm954_vm4, %v4232_v30, %v4234_v20  ;;  %v4312_v63 = vsel %vm954_vm4, %v4234_v20, %v4236_v26 }
0x15a4   : > { %4388 = vmatprep.subr.mxu0 %v4312_v63 }
0x15a5   : > { %4389 = vmatpush1.msra.mxu0 %v4311_v6 }
0x15a6   : > { %v4190_v29 = vpop.permute.xlu1 %4189  ;;  %4390 = vmatprep.subr.mxu0 %v4310_v8  ;;  %v4222_v48 = vpop.permute.xlu0 %4221 }
0x15a7   : > { %v4307_v14 = vsel %vm954_vm4, %v4220_v13, %v4222_v48  ;;  %4391 = vmatpush1.msra.mxu0 %v7243_v11  ;;  %v4308_v59 = vsel %vm954_vm4, %v4222_v48, %v4224_v52  ;;  %v4303_v11 = vsel %vm954_vm4, %v7329_v53, %v4210_v25  ;;  %v4297_v19 = vsel %vm954_vm4, %v4190_v29, %v4192_v18  ;;  %v3949_v25 = vld [vmem:[%s7556_s17] sm:$0xff] }
0x15a8   : > { %4392 = vmatprep.subr.mxu0 %v4308_v59 }
0x15a9   : > { %4393 = vmatpush1.msra.mxu0 %v4307_v14 }
0x15aa   : > { %v4288_v1 = vpop.permute.xlu1 %4287  ;;  %4394 = vmatprep.subr.mxu0 %v4306_v40  ;;  %v4194_v51 = vpop.permute.xlu0 %4193 }
0x15ab   : > { %4395 = vmatpush1.msra.mxu0 %v4305_v5  ;;  %v4298_v53 = vsel %vm954_vm4, %v4192_v18, %v4194_v51 }
0x15ac   : > { %4396 = vmatprep.subr.mxu0 %v4304_v31 }
0x15ad   : > { %4397 = vmatpush1.msra.mxu0 %v4303_v11 }
0x15ae   : > { %4398 = vmatprep.subr.mxu0 %v4302_v33  ;;  %v4292_v39 = vpop.permute.xlu0 %4291  ;;  %v4296_v9 = vpop.permute.xlu1 %4295 }
0x15af   : > { %4399 = vmatpush1.msra.mxu0 %v4301_v54 }
0x15b0   : > { %4400 = vmatprep.subr.mxu0 %v4300_v58 }
0x15b1   : > { %4401 = vmatpush1.msra.mxu0 %v4299_v0 }
0x15b2   : > { %4402 = vmatprep.subr.mxu0 %v4298_v53  ;;  %v4294_v30 = vpop.permute.xlu0 %4293  ;;  %v4286_v26 = vpop.permute.xlu1 %4285 }
0x15b3   : > { %v4331_v49 = vsel %vm954_vm4, %v4292_v39, %v4294_v30  ;;  %4403 = vmatpush1.msra.mxu0 %v4297_v19  ;;  %v4332_v57 = vsel %vm954_vm4, %v4294_v30, %v4296_v9  ;;  %v4329_v4 = vsel %vm954_vm4, %v4286_v26, %v4288_v1  ;;  %v3953_v26 = vld [vmem:[%s7559_s20] sm:$0xff] }
0x15b4   : > { %4432 = vmatprep.subr.mxu0 %v4332_v57 }
0x15b5   : > { %4433 = vmatpush2.msra.mxu0 %v4331_v49 }
0x15b6   : > { %v4290_v13 = vpop.permute.xlu0 %4289 }
0x15b7   : > { %v4330_v52 = vsel %vm954_vm4, %v4288_v1, %v4290_v13 }
0x15b8   : > { %4434 = vmatprep.subr.mxu0 %v4330_v52 }
0x15b9   : > { %4435 = vmatpush2.msra.mxu0 %v4329_v4 }
0x15ba   : > { %4437 = vmatmul.mubr.f32.vlgmr.msra.gmra.mxu0 %v3949_v25 }
0x15c3   : > { %v4181_v15 = vpop.permute.xlu0 %4180 }
0x15c7   : > { %v4551_v46 = vpop.permute.xlu0 %4550 }
0x167a   : > { %v4438_v34 = vpop.f32.mrf.mxu0 }
0x167b   : > { %v4439_v44 = vadd.f32 %v4438_v34, %v4181_v15 }
0x167c   : > { %v4440_v43 = vpop.f32.mrf.mxu0 }
0x167d   : > { %v7399_v55 = vmax.f32 %v4439_v44, 0.0  ;;  %v4441_v62 = vadd.f32 %v4440_v43, %v4181_v15 }
0x167f   : > { %4461 = vst [vmem:[#allocation2 + $0x8] sm:$0xff] %v7399_v55  ;;  %v7402_v60 = vmax.f32 %v4441_v62, 0.0  ;;  %4518 = vrot.lane.b32.xlu1 %v7399_v55, %s7670_s1  ;;  %4546 = vrot.lane.b32.xlu0 %v7399_v55, %s7675_s23  ;;  %v4482_v36 = vmul.f32 %v5431_v16, %v7399_v55  ;;  %v4476_v2 = vmul.f32 %v5433_v17, %v7399_v55 }
0x1680   : > { %v4479_v61 = vmul.f32 %v5439_v22, %v7399_v55  ;;  %v4470_v3 = vmul.f32 %v7399_v55, %v5522_v47  ;;  %v4473_v16 = vmul.f32 %v7399_v55, %v5514_v45  ;;  %v4467_v52 = vmul.f32 %v7399_v55, %v7679_v56 }
0x1681   : > { %4462 = vst [vmem:[#allocation2 + $0x10] sm:$0xff] %v7402_v60  ;;  %v4483_v17 = vmul.f32 %v7402_v60, %v5488_v38  ;;  %v4477_v22 = vmul.f32 %v7402_v60, %v5499_v41  ;;  %v4480_v47 = vmul.f32 %v7402_v60, %v5503_v42  ;;  %v4471_v38 = vmul.f32 %v5474_v35, %v7402_v60  ;;  %v7447_v41 = vld [vmem:[#allocation2 + $0x50] sm:$0xff]  ;;  %v4562_v42 = vpop.permute.xlu1 %4561  ;;  %v4531_v35 = vpop.permute.xlu0 %4530 }
0x1682   : > { %v4474_v45 = vmul.f32 %v5466_v32, %v7402_v60  ;;  %v4468_v57 = vmul.f32 %v7680_v21, %v7402_v60  ;;  %v4740_v21 = vld [vmem:[%s7561_s22] sm:$0x7] }
0x1683   : > { %4557 = vrot.lane.b32.xlu1 %v4482_v36, %s7677_s2  ;;  %4526 = vrot.lane.b32.xlu0 %v4476_v2, %s7652_s3 }
0x1687   : > { %4548 = vrot.lane.b32.xlu1 %v7402_v60, %s7675_s23  ;;  %4520 = vrot.lane.b32.xlu0 %v7402_v60, %s7670_s1 }
0x168b   : > { %4537 = vrot.lane.b32.xlu1 %v4479_v61, %s7676_s8  ;;  %4501 = vrot.lane.b32.xlu0 %v4470_v3, %s7651_s30 }
0x168f   : > { %4512 = vrot.lane.b32.xlu1 %v4473_v16, %s7655_s5  ;;  %4559 = vrot.lane.b32.xlu0 %v4483_v17, %s7677_s2 }
0x1693   : > { %4528 = vrot.lane.b32.xlu1 %v4477_v22, %s7652_s3  ;;  %4539 = vrot.lane.b32.xlu0 %v4480_v47, %s7676_s8 }
0x1697   : > { %4490 = vrot.lane.b32.xlu1 %v7399_v55, %s7657_s0  ;;  %4499 = vrot.lane.b32.xlu0 %v6977_v23, %s7651_s30  ;;  %v4542_v23 = vpop.permute.xlu1 %4541 }
0x169b   : > { %4503 = vrot.lane.b32.xlu1 %v4471_v38, %s7651_s30  ;;  %4514 = vrot.lane.b32.xlu0 %v4474_v45, %s7655_s5  ;;  %v4511_v10 = vpop.permute.xlu1 %4510 }
0x169f   : > { %4488 = vrot.lane.b32.xlu1 %v7447_v41, %s7657_s0  ;;  %4492 = vrot.lane.b32.xlu0 %v7402_v60, %s7657_s0 }
0x16f1   : > { %v4519_v7 = vpop.permute.xlu1 %4518  ;;  %v4547_v50 = vpop.permute.xlu0 %4546 }
0x16f2   : > { %4597 = vrot.lane.b32.xlu0 %v4519_v7, %s7678_s10  ;;  %4615 = vrot.lane.b32.xlu1 %v4547_v50, %s7678_s10 }
0x16f5   : > { %v4558_v32 = vpop.permute.xlu1 %4557  ;;  %v4527_v27 = vpop.permute.xlu0 %4526 }
0x16f6   : > { %4621 = vrot.lane.b32.xlu0 %v4558_v32, %s7678_s10  ;;  %4603 = vrot.lane.b32.xlu1 %v4527_v27, %s7678_s10 }
0x16f9   : > { %v4549_v24 = vpop.permute.xlu1 %4548  ;;  %v4521_v37 = vpop.permute.xlu0 %4520 }
0x16fa   : > { %4601 = vrot.lane.b32.xlu1 %v4521_v37, %s7678_s10  ;;  %v4552_v28 = vsel %vm1033_vm9, %v4547_v50, %v4549_v24  ;;  %v4553_v51 = vsel %vm1033_vm9, %v4549_v24, %v4551_v46  ;;  %v4522_v11 = vsel %vm891_vm10, %v4519_v7, %v4521_v37 }
0x16fd   : > { %v4538_v18 = vpop.permute.xlu1 %4537  ;;  %v4502_v20 = vpop.permute.xlu0 %4501 }
0x16fe   : > { %4609 = vrot.lane.b32.xlu0 %v4538_v18, %s7678_s10  ;;  %4617 = vrot.lane.b32.xlu1 %v4552_v28, %s7678_s10 }
0x1701   : > { %v4513_v6 = vpop.permute.xlu1 %4512  ;;  %v4560_v63 = vpop.permute.xlu0 %4559 }
0x1702   : > { %v4516_v8 = vsel %vm994_vm14, %v4511_v10, %v4513_v6  ;;  %v4564_v33 = vsel %vm1045_vm11, %v4560_v63, %v4562_v42  ;;  %v4563_v58 = vsel %vm1045_vm11, %v4558_v32, %v4560_v63 }
0x1703   : > { %4591 = vrot.lane.b32.xlu1 %v4516_v8, %s7678_s10 }
0x1705   : > { %v4540_v29 = vpop.permute.xlu0 %4539  ;;  %v4529_v14 = vpop.permute.xlu1 %4528 }
0x1706   : > { %v4544_v39 = vsel %vm1023_vm12, %v4540_v29, %v4542_v23  ;;  %v4532_v9 = vsel %vm1011_vm13, %v4527_v27, %v4529_v14  ;;  %v4543_v19 = vsel %vm1023_vm12, %v4538_v18, %v4540_v29  ;;  %v4533_v49 = vsel %vm1011_vm13, %v4529_v14, %v4531_v35 }
0x1709   : > { %v4500_v48 = vpop.permute.xlu0 %4499  ;;  %v4491_v40 = vpop.permute.xlu1 %4490 }
0x170a   : > { %v4505_v54 = vsel %vm982_vm15, %v4500_v48, %v4502_v20 }
0x170d   : > { %v4515_v59 = vpop.permute.xlu0 %4514  ;;  %v4504_v31 = vpop.permute.xlu1 %4503 }
0x170e   : > { %v4517_v0 = vsel %vm994_vm14, %v4513_v6, %v4515_v59  ;;  %v4506_v13 = vsel %vm982_vm15, %v4502_v20, %v4504_v31 }
0x1711   : > { %v4493_v5 = vpop.permute.xlu0 %4492  ;;  %v4489_v53 = vpop.permute.xlu1 %4488 }
0x1712   : > { %v4495_v1 = vsel %vm917_vm7, %v4491_v40, %v4493_v5  ;;  %4583 = vrot.lane.b32.xlu0 %v4493_v5, %s7678_s10  ;;  %v4494_v30 = vsel %vm917_vm7, %v4489_v53, %v4491_v40  ;;  %vm4746_vm7 = vcmask 64512  }
0x1713   : > { %4581 = vrot.lane.b32.xlu1 %v4495_v1, %s7678_s10  ;;  %v3952_v1 = vld [vmem:[%s7558_s19] sm:$0xff] }
0x1716   : > { %4619 = vrot.lane.b32.xlu0 %v4553_v51, %s7678_s10 }
0x1717   : > { %4589 = vrot.lane.b32.xlu1 %v4504_v31, %s7678_s10 }
0x171a   : > { %4599 = vrot.lane.b32.xlu0 %v4522_v11, %s7678_s10 }
0x171b   : > { %4625 = vrot.lane.b32.xlu1 %v4564_v33, %s7678_s10 }
0x171e   : > { %4585 = vrot.lane.b32.xlu0 %v4505_v54, %s7678_s10 }
0x171f   : > { %4613 = vrot.lane.b32.xlu1 %v4544_v39, %s7678_s10 }
0x1722   : > { %4595 = vrot.lane.b32.xlu0 %v4515_v59, %s7678_s10 }
0x1723   : > { %4605 = vrot.lane.b32.xlu1 %v4532_v9, %s7678_s10 }
0x1726   : > { %4623 = vrot.lane.b32.xlu0 %v4563_v58, %s7678_s10 }
0x1727   : > { %4593 = vrot.lane.b32.xlu1 %v4517_v0, %s7678_s10  ;;  %v4739_v0 = vld [vmem:[%s7560_s21] sm:$0x7] }
0x172a   : > { %4611 = vrot.lane.b32.xlu0 %v4543_v19, %s7678_s10 }
0x172b   : > { %4579 = vrot.lane.b32.xlu1 %v4494_v30, %s7678_s10 }
0x172e   : > { %4607 = vrot.lane.b32.xlu0 %v4533_v49, %s7678_s10 }
0x172f   : > { %4577 = vrot.lane.b32.xlu1 %v4468_v57, %s7678_s10 }
0x1732   : > { %4587 = vrot.lane.b32.xlu0 %v4506_v13, %s7678_s10 }
0x1733   : > { %4567 = vperm.xlu1 %5165, %v3953_v26  }
0x1736   : > { %4575 = vrot.lane.b32.xlu0 %v4467_v52, %s7678_s10 }
0x173a   : > { %4573 = vrot.lane.b32.xlu0 %v7271_v12, %s7678_s10  ;;  %s4922_s10 = sshll.u32 %s7684_s4, 3 }
0x173b   : > { %s818_s9 = scalar_lea.vmem %s7566_s27, %s4922_s10 }
0x173e   : > { %4743 = vperm.xlu0 %5149, %v4740_v21  }
0x1764   : > { %v4616_v25 = vpop.permute.xlu1 %4615  ;;  %v4598_v34 = vpop.permute.xlu0 %4597 }
0x1768   : > { %v4604_v4 = vpop.permute.xlu1 %4603  ;;  %v4622_v43 = vpop.permute.xlu0 %4621 }
0x176c   : > { %v4602_v15 = vpop.permute.xlu1 %4601 }
0x1770   : > { %v4618_v44 = vpop.permute.xlu1 %4617  ;;  %v4610_v62 = vpop.permute.xlu0 %4609 }
0x1771   : > { %v4641_v23 = vsel %vm954_vm4, %v4616_v25, %v4618_v44 }
0x1775   : > { %v4592_v60 = vpop.permute.xlu1 %4591 }
0x1784   : > { %v4584_v36 = vpop.permute.xlu0 %4583 }
0x1785   : > { %v4582_v56 = vpop.permute.xlu1 %4581 }
0x1786   : > { %v4630_v48 = vsel %vm954_vm4, %v4582_v56, %v4584_v36 }
0x1788   : > { %v4620_v55 = vpop.permute.xlu0 %4619 }
0x1789   : > { %v4590_v2 = vpop.permute.xlu1 %4589  ;;  %v4642_v42 = vsel %vm954_vm4, %v4618_v44, %v4620_v55 }
0x178c   : > { %v4600_v61 = vpop.permute.xlu0 %4599 }
0x178d   : > { %v4626_v3 = vpop.permute.xlu1 %4625  ;;  %v4636_v24 = vsel %vm954_vm4, %v4600_v61, %v4602_v15  ;;  %v4635_v37 = vsel %vm954_vm4, %v4598_v34, %v4600_v61 }
0x1790   : > { %v4586_v12 = vpop.permute.xlu0 %4585 }
0x1791   : > { %v4614_v16 = vpop.permute.xlu1 %4613 }
0x1794   : > { %v4596_v17 = vpop.permute.xlu0 %4595 }
0x1795   : > { %v4606_v22 = vpop.permute.xlu1 %4605 }
0x1796   : > { %v4637_v27 = vsel %vm954_vm4, %v4604_v4, %v4606_v22 }
0x1798   : > { %v4624_v47 = vpop.permute.xlu0 %4623 }
0x1799   : > { %v4643_v38 = vsel %vm954_vm4, %v4622_v43, %v4624_v47  ;;  %v4644_v45 = vsel %vm954_vm4, %v4624_v47, %v4626_v3  ;;  %v4594_v7 = vpop.permute.xlu1 %4593 }
0x179a   : > { %4680 = vmatprep.subr.mxu1 %v4644_v45  ;;  %v4634_v20 = vsel %vm954_vm4, %v4594_v7, %v4596_v17  ;;  %v4633_v6 = vsel %vm954_vm4, %v4592_v60, %v4594_v7 }
0x179b   : > { %4681 = vmatpush1.msra.mxu1 %v4643_v38 }
0x179c   : > { %4682 = vmatprep.subr.mxu1 %v4642_v42  ;;  %v4612_v46 = vpop.permute.xlu0 %4611 }
0x179d   : > { %v4639_v10 = vsel %vm954_vm4, %v4610_v62, %v4612_v46  ;;  %4683 = vmatpush1.msra.mxu1 %v4641_v23  ;;  %v4640_v35 = vsel %vm954_vm4, %v4612_v46, %v4614_v16  ;;  %v4580_v28 = vpop.permute.xlu1 %4579 }
0x179e   : > { %4684 = vmatprep.subr.mxu1 %v4640_v35  ;;  %v4629_v14 = vsel %vm954_vm4, %v4580_v28, %v4582_v56 }
0x179f   : > { %4685 = vmatpush1.msra.mxu1 %v4639_v10 }
0x17a0   : > { %v4608_v50 = vpop.permute.xlu0 %4607 }
0x17a1   : > { %v4638_v32 = vsel %vm954_vm4, %v4606_v22, %v4608_v50  ;;  %v4578_v59 = vpop.permute.xlu1 %4577 }
0x17a2   : > { %4686 = vmatprep.subr.mxu1 %v4638_v32 }
0x17a3   : > { %4687 = vmatpush1.msra.mxu1 %v4637_v27 }
0x17a4   : > { %4688 = vmatprep.subr.mxu1 %v4636_v24  ;;  %v4588_v18 = vpop.permute.xlu0 %4587 }
0x17a5   : > { %4689 = vmatpush1.msra.mxu1 %v4635_v37  ;;  %v4632_v63 = vsel %vm954_vm4, %v4588_v18, %v4590_v2  ;;  %v4631_v8 = vsel %vm954_vm4, %v4586_v12, %v4588_v18 }
0x17a6   : > { %4690 = vmatprep.subr.mxu1 %v4634_v20 }
0x17a7   : > { %4691 = vmatpush1.msra.mxu1 %v4633_v6 }
0x17a8   : > { %4692 = vmatprep.subr.mxu1 %v4632_v63  ;;  %v4576_v29 = vpop.permute.xlu0 %4575 }
0x17a9   : > { %4693 = vmatpush1.msra.mxu1 %v4631_v8  ;;  %v4628_v40 = vsel %vm954_vm4, %v4576_v29, %v4578_v59 }
0x17aa   : > { %4694 = vmatprep.subr.mxu1 %v4630_v48 }
0x17ab   : > { %4695 = vmatpush1.msra.mxu1 %v4629_v14 }
0x17ac   : > { %4696 = vmatprep.subr.mxu1 %v4628_v40  ;;  %v4574_v5 = vpop.permute.xlu0 %4573 }
0x17ad   : > { %v4627_v51 = vsel %vm954_vm4, %v4574_v5, %v4576_v29 }
0x17ae   : > { %4697 = vmatpush1.msra.mxu1 %v4627_v51  ;;  %v4568_v11 = vpop.permute.xlu1 %4567 }
0x17af   : > { %4917 = vmatmul.mubr.msk.f32.vlgmr.msra.gmra.mxu1 %vm1146_vm0, %v3952_v1 }
0x17b0   : > { %4814 = vmatprep.mubr.f32.mxu1 %v7447_v41 }
0x17b9   : > { %v4744_v19 = vpop.permute.xlu0 %4743 }
0x186f   : > { %v4732_v31 = vpop.f32.mrf.mxu1 }
0x1870   : > { %v4733_v33 = vadd.f32 %v4732_v31, %v4568_v11 }
0x1871   : > { %v4734_v54 = vpop.f32.mrf.mxu1 }
0x1872   : > { %v4735_v39 = vadd.f32 %v4734_v54, %v4568_v11  ;;  %v4737_v58 = vmax.f32 %v4733_v33, 0.0 }
0x1874   : > { %v4738_v9 = vmax.f32 %v4735_v39, 0.0 }
0x1876   : > { %4780 = vmatprep.subr.mxu1 %v4738_v9 }
0x1877   : > { %4781 = vmatpush1.msra.mxu1 %v4737_v58 }
0x1878   : > { %4918 = vmatmul.mubr.msk.f32.vlgmr.msra.gmra.mxu1 %vm4746_vm7, %v4739_v0 }
0x1938   : > { %v4816_v53 = vpop.f32.mrf.mxu1 }
0x1939   : > { %v4817_v41 = vadd.f32 %v4816_v53, %v4744_v19 }
0x193a   : > { %v4818_v30 = vpop.f32.mrf.mxu1 }
0x193b   : > { %v4819_v49 = vadd.f32 %v4818_v30, %v4744_v19 }
0x193d   : > { %v4823_v57 = vcombine.low %v4817_v41, %v4819_v49 }
0x193f   : > { %4825 = vst [vmem:[%s818_s9] sm:$0x77] %v4823_v57 }
0x1940 PF: > { %s7682_s11 = sld [smem:[#allocation3_spill]] }
0x1946   : > { %s37_s7 = sadd.s32 1, %s7682_s11  }
0x1947   : > { %p34_p4 = scmp.ge.s32.totalorder %s37_s7, 4  }
0x1949   :  { %36 = sbr.rel (!%p34_p4) target bundleno = 18 (0x12), region = 158 }

</bundles_post_ra>
